<compile_context>
chip_gen: v7x
topology: tpu7x:2x2x1
jax: 0.10.0
libtpu: 0.0.40
codegen_flags: <defaults>
</compile_context>

<pallas_src>
import functools

import jax
import jax.numpy as jnp
from jax.experimental import pallas as pl
from jax.experimental.pallas import tpu as pltpu


TILE_M = 512
VMEM_LIMIT = 32 * 1024 * 1024
LRELU_SLOPE = 0.2
BN_EPS = 1e-5


# ----------------------------- Pallas kernels ------------------------------

def _conv_bias_lrelu_kernel(x_ref, w_ref, b_ref, o_ref):
    # x: (tm, K) bf16, w: (K, Cout) bf16, b: (1, Cout) f32 -> o: (tm, Cout) bf16
    z = jnp.dot(x_ref[...], w_ref[...], preferred_element_type=jnp.float32)
    y = z + b_ref[...]
    y = jnp.where(y >= 0, y, LRELU_SLOPE * y)
    o_ref[...] = y.astype(o_ref.dtype)


def _conv_bn_stats_kernel(x_ref, w_ref, z_ref, stats_ref, *, tm, m_half, m_real):
    # Pass A: conv (no bias) + per-branch (real/fake) sum & sum-of-squares.
    i = pl.program_id(0)

    @pl.when(i == 0)
    def _():
        stats_ref[...] = jnp.zeros_like(stats_ref)

    z = jnp.dot(x_ref[...], w_ref[...], preferred_element_type=jnp.float32)
    z_ref[...] = z

    rows = i * tm + jax.lax.broadcasted_iota(jnp.int32, (tm, 1), 0)
    is_real = (rows < m_half).astype(jnp.float32)
    is_fake = jnp.logical_and(rows >= m_half, rows < m_real).astype(jnp.float32)
    zr = z * is_real
    zf = z * is_fake
    stats_ref[...] += jnp.concatenate(
        [jnp.sum(zr, axis=0, keepdims=True),
         jnp.sum(zr * z, axis=0, keepdims=True),
         jnp.sum(zf, axis=0, keepdims=True),
         jnp.sum(zf * z, axis=0, keepdims=True)],
        axis=0)


def _bn_apply_lrelu_kernel(z_ref, stats_ref, g_ref, b_ref, o_ref, *, tm, m_half):
    # Pass B: normalize with per-branch batch stats, affine, LeakyReLU.
    inv_n = 1.0 / float(m_half)
    mean_r = stats_ref[0:1, :] * inv_n
    msq_r = stats_ref[1:2, :] * inv_n
    mean_f = stats_ref[2:3, :] * inv_n
    msq_f = stats_ref[3:4, :] * inv_n
    g = g_ref[...]
    b = b_ref[...]
    scale_r = g * jax.lax.rsqrt(msq_r - mean_r * mean_r + BN_EPS)
    scale_f = g * jax.lax.rsqrt(msq_f - mean_f * mean_f + BN_EPS)
    shift_r = b - mean_r * scale_r
    shift_f = b - mean_f * scale_f

    rows = pl.program_id(0) * tm + jax.lax.broadcasted_iota(jnp.int32, (tm, 1), 0)
    is_real = (rows < m_half).astype(jnp.float32)
    scale = is_real * scale_r + (1.0 - is_real) * scale_f
    shift = is_real * shift_r + (1.0 - is_real) * shift_f

    y = z_ref[...] * scale + shift
    y = jnp.where(y >= 0, y, LRELU_SLOPE * y)
    o_ref[...] = y.astype(o_ref.dtype)


def _final_conv_hinge_kernel(x_ref, w_ref, b_ref, o_ref, *, tm, m_half, m_real):
    # Final Cout=1 conv fused with the hinge-D loss reduction.
    i = pl.program_id(0)

    @pl.when(i == 0)
    def _():
        o_ref[...] = jnp.zeros_like(o_ref)

    logit = jnp.dot(x_ref[...], w_ref[...],
                    preferred_element_type=jnp.float32) + b_ref[...]
    rows = i * tm + jax.lax.broadcasted_iota(jnp.int32, (tm, 1), 0)
    valid = (rows < m_real).astype(jnp.float32)
    sign = jnp.where(rows < m_half, -1.0, 1.0) * valid
    # real rows: relu(1 - logit); fake rows: relu(1 + logit); padded rows: 0
    contrib = jnp.maximum(valid + sign * logit, 0.0)
    # 0.5 * (mean_real + mean_fake) == total_sum / m_real (equal halves)
    o_ref[...] += jnp.sum(contrib) * (1.0 / float(m_real))


# ------------------------------ kernel wrappers -----------------------------

def _grid_rows(m):
    if m <= TILE_M:
        return m, m, 1
    mp = ((m + TILE_M - 1) // TILE_M) * TILE_M
    return TILE_M, mp, mp // TILE_M


def _pad_rows(x, mp):
    m = x.shape[0]
    if mp == m:
        return x
    return jnp.pad(x, ((0, mp - m), (0, 0)))


def conv_bias_lrelu(patches, w, b):
    m, k = patches.shape
    cout = w.shape[1]
    tm, mp, nt = _grid_rows(m)
    patches = _pad_rows(patches, mp)
    return pl.pallas_call(
        _conv_bias_lrelu_kernel,
        out_shape=jax.ShapeDtypeStruct((mp, cout), jnp.bfloat16),
        grid=(nt,),
        in_specs=[pl.BlockSpec((tm, k), lambda i: (i, 0)),
                  pl.BlockSpec((k, cout), lambda i: (0, 0)),
                  pl.BlockSpec((1, cout), lambda i: (0, 0))],
        out_specs=pl.BlockSpec((tm, cout), lambda i: (i, 0)),
        compiler_params=pltpu.CompilerParams(
            dimension_semantics=("parallel",),
            vmem_limit_bytes=VMEM_LIMIT),
    )(patches, w, b.reshape(1, cout))


def conv_bn_stats(patches, w, m_real):
    m, k = patches.shape
    cout = w.shape[1]
    tm, mp, nt = _grid_rows(m)
    patches = _pad_rows(patches, mp)
    kernel = functools.partial(_conv_bn_stats_kernel, tm=tm,
                               m_half=m_real // 2, m_real=m_real)
    z, stats = pl.pallas_call(
        kernel,
        out_shape=(jax.ShapeDtypeStruct((mp, cout), jnp.float32),
                   jax.ShapeDtypeStruct((4, cout), jnp.float32)),
        grid=(nt,),
        in_specs=[pl.BlockSpec((tm, k), lambda i: (i, 0)),
                  pl.BlockSpec((k, cout), lambda i: (0, 0))],
        out_specs=(pl.BlockSpec((tm, cout), lambda i: (i, 0)),
                   pl.BlockSpec((4, cout), lambda i: (0, 0))),
        compiler_params=pltpu.CompilerParams(
            dimension_semantics=("arbitrary",),   # stats accumulator
            vmem_limit_bytes=VMEM_LIMIT),
    )(patches, w)
    return z, stats


def bn_apply_lrelu(z, stats, gamma, beta, m_real):
    mp, cout = z.shape
    tm, _, nt = _grid_rows(mp)
    kernel = functools.partial(_bn_apply_lrelu_kernel, tm=tm, m_half=m_real // 2)
    return pl.pallas_call(
        kernel,
        out_shape=jax.ShapeDtypeStruct((mp, cout), jnp.bfloat16),
        grid=(nt,),
        in_specs=[pl.BlockSpec((tm, cout), lambda i: (i, 0)),
                  pl.BlockSpec((4, cout), lambda i: (0, 0)),
                  pl.BlockSpec((1, cout), lambda i: (0, 0)),
                  pl.BlockSpec((1, cout), lambda i: (0, 0))],
        out_specs=pl.BlockSpec((tm, cout), lambda i: (i, 0)),
        compiler_params=pltpu.CompilerParams(
            dimension_semantics=("parallel",),
            vmem_limit_bytes=VMEM_LIMIT),
    )(z, stats, gamma.reshape(1, cout), beta.reshape(1, cout))


def final_conv_hinge(patches, w, b, m_real):
    m, k = patches.shape
    tm, mp, nt = _grid_rows(m)
    patches = _pad_rows(patches, mp)
    kernel = functools.partial(_final_conv_hinge_kernel, tm=tm,
                               m_half=m_real // 2, m_real=m_real)
    out = pl.pallas_call(
        kernel,
        out_shape=jax.ShapeDtypeStruct((1, 1), jnp.float32),
        grid=(nt,),
        in_specs=[pl.BlockSpec((tm, k), lambda i: (i, 0)),
                  pl.BlockSpec((k, 1), lambda i: (0, 0)),
                  pl.BlockSpec((1, 1), lambda i: (0, 0))],
        out_specs=pl.BlockSpec((1, 1), lambda i: (0, 0)),
        compiler_params=pltpu.CompilerParams(
            dimension_semantics=("arbitrary",),   # loss accumulator
            vmem_limit_bytes=VMEM_LIMIT),
    )(patches, w, b.reshape(1, 1))
    return out[0, 0]


# --------------------------------- glue -------------------------------------

def extract_patches(x, stride, k=4, pad=1):
    """NHWC -> (N*OH*OW, k*k*C) patches, K ordered (kh, kw, C). No transposes."""
    n, h, w, c = x.shape
    xp = jnp.pad(x, ((0, 0), (pad, pad), (pad, pad), (0, 0)))
    oh = (h + 2 * pad - k) // stride + 1
    ow = (w + 2 * pad - k) // stride + 1
    taps = []
    for i in range(k):
        for j in range(k):
            taps.append(xp[:, i:i + stride * oh:stride, j:j + stride * ow:stride, :])
    p = jnp.stack(taps, axis=3)                    # (N, OH, OW, k*k, C)
    return p.reshape(n * oh * ow, k * k * c), n, oh, ow


def _w_to_mat(w):
    # PyTorch (Cout, Cin, kh, kw) -> (kh*kw*Cin, Cout), bf16 for the MXU.
    cout = w.shape[0]
    return w.transpose(2, 3, 1, 0).reshape(-1, cout).astype(jnp.bfloat16)


def make_params(key, num_layers=3, num_channels=16):
    """Synthetic init matching init_weights semantics (normal(0,0.02) convs,
    normal(1,0.02) BN gamma, zero BN beta / conv bias)."""
    channels = [num_channels * min(2 ** i, 8) for i in range(num_layers + 1)]
    strides = [2] * (num_layers - 1) + [1]
    keys = list(jax.random.split(key, 2 * (num_layers + 2)))
    ki = [0]

    def nk():
        kk = keys[ki[0]]
        ki[0] += 1
        return kk

    body = []
    # Conv2d(3, num_channels, 4, stride=2, padding=1) + LeakyReLU(0.2)
    w = 0.02 * jax.random.normal(nk(), (num_channels, 3, 4, 4), jnp.float32)
    body.append(dict(kind="conv_lrelu", w=_w_to_mat(w),
                     b=jnp.zeros((num_channels,), jnp.float32), stride=2))
    # Conv2d(cin, cout, 4, stride, 1, bias=False) + BatchNorm2d + LeakyReLU
    for cin, cout, s in zip(channels[:-1], channels[1:], strides):
        w = 0.02 * jax.random.normal(nk(), (cout, cin, 4, 4), jnp.float32)
        gamma = 1.0 + 0.02 * jax.random.normal(nk(), (cout,), jnp.float32)
        body.append(dict(kind="conv_bn_lrelu", w=_w_to_mat(w), gamma=gamma,
                         beta=jnp.zeros((cout,), jnp.float32), stride=s))
    # Conv2d(cout, 1, 4, stride=1, padding=1)
    w = 0.02 * jax.random.normal(nk(), (1, channels[-1], 4, 4), jnp.float32)
    return dict(body=body, head_w=_w_to_mat(w),
                head_b=jnp.zeros((1,), jnp.float32))


def d_loss(real, fake, params):
    """hinge_d_loss(disc(real), disc(fake)), single fused pass over [real;fake]."""
    x = jnp.concatenate([real, fake], axis=0)                 # (2N, 3, H, W)
    x = jnp.transpose(x, (0, 2, 3, 1)).astype(jnp.bfloat16)   # NHWC once

    for layer in params["body"]:
        p, n, oh, ow = extract_patches(x, layer["stride"])
        m = n * oh * ow
        cout = layer["w"].shape[1]
        if layer["kind"] == "conv_lrelu":
            y = conv_bias_lrelu(p, layer["w"], layer["b"])
        else:
            z, stats = conv_bn_stats(p, layer["w"], m)
            y = bn_apply_lrelu(z, stats, layer["gamma"], layer["beta"], m)
        x = y[:m].reshape(n, oh, ow, cout)

    p, n, oh, ow = extract_patches(x, 1)
    return final_conv_hinge(p, params["head_w"], params["head_b"], n * oh * ow)


# --------------------------------- main --------------------------------------

if __name__ == "__main__":
    key = jax.random.PRNGKey(0)
    kp, kr, kf = jax.random.split(key, 3)

    # Small but valid shapes: 32x32 input survives all 5 conv layers.
    params = make_params(kp, num_layers=3, num_channels=16)
    real = jax.random.normal(kr, (2, 3, 32, 32), jnp.float32)
    fake = jax.random.normal(kf, (2, 3, 32, 32), jnp.float32)

    loss_fn = jax.jit(functools.partial(d_loss, params=params))
    loss = loss_fn(real, fake)
    jax.block_until_ready(loss)
    assert loss.shape == () and bool(jnp.isfinite(loss))
    print("KERNEL_OK")
</pallas_src>

<mosaic_0001>
module attributes {stable_mosaic.version = 11 : i64} {
  func.func @_conv_bias_lrelu_kernel(%arg0: i32, %arg1: memref<512x48xbf16, #tpu.memory_space<vmem>>, %arg2: memref<48x16xbf16, #tpu.memory_space<vmem>>, %arg3: memref<1x16xf32, #tpu.memory_space<vmem>>, %arg4: memref<512x16xbf16, #tpu.memory_space<vmem>>) attributes {dimension_semantics = [#tpu.dimension_semantics<parallel>], iteration_bounds = array<i64: 2>, scalar_prefetch = 0 : i64, scratch_operands = 0 : i64, tpu.core_type = #tpu.core_type<tc>, window_params = [{transform_indices = @transform_0, window_bounds = array<i64: 512, 48>}, {pipeline_mode = #tpu.pipeline_mode<synchronous>, transform_indices = @transform_1, window_bounds = array<i64: 48, 16>}, {pipeline_mode = #tpu.pipeline_mode<synchronous>, transform_indices = @transform_2, window_bounds = array<i64: 1, 16>}, {transform_indices = @transform_3, window_bounds = array<i64: 512, 16>}]} {
    %c0 = arith.constant 0 : index
    %c0_0 = arith.constant 0 : index
    %0 = vector.load %arg1[%c0, %c0_0] : memref<512x48xbf16, #tpu.memory_space<vmem>>, vector<512x48xbf16>
    %c0_1 = arith.constant 0 : index
    %c0_2 = arith.constant 0 : index
    %1 = vector.load %arg2[%c0_1, %c0_2] : memref<48x16xbf16, #tpu.memory_space<vmem>>, vector<48x16xbf16>
    %cst = arith.constant dense<0.000000e+00> : vector<512x16xf32>
    %2 = tpu.matmul %0, %1, %cst {dimension_numbers = #tpu.dot_dimension_numbers<[1], [0], [0], [1], [0, 0, 1, 1], [], []>} : vector<512x48xbf16>, vector<48x16xbf16>, vector<512x16xf32> -> vector<512x16xf32>
    %c0_3 = arith.constant 0 : index
    %c0_4 = arith.constant 0 : index
    %3 = vector.load %arg3[%c0_3, %c0_4] : memref<1x16xf32, #tpu.memory_space<vmem>>, vector<1x16xf32>
    %4 = vector.broadcast %3 : vector<1x16xf32> to vector<512x16xf32>
    %5 = arith.addf %2, %4 : vector<512x16xf32>
    %cst_5 = arith.constant 0.000000e+00 : f32
    %6 = vector.broadcast %cst_5 : f32 to vector<512x16xf32>
    %7 = arith.cmpf oge, %5, %6 : vector<512x16xf32>
    %cst_6 = arith.constant 2.000000e-01 : f32
    %8 = vector.broadcast %cst_6 : f32 to vector<512x16xf32>
    %9 = arith.mulf %8, %5 : vector<512x16xf32>
    %10 = arith.select %7, %5, %9 : vector<512x16xi1>, vector<512x16xf32>
    %11 = arith.truncf %10 : vector<512x16xf32> to vector<512x16xbf16>
    %c0_7 = arith.constant 0 : index
    %c0_8 = arith.constant 0 : index
    %12 = vector.load %arg4[%c0_7, %c0_8] : memref<512x16xbf16, #tpu.memory_space<vmem>>, vector<512x16xbf16>
    tpu.vector_store %arg4[%c0_7, %c0_8], %11 {strides = array<i32>} : memref<512x16xbf16, #tpu.memory_space<vmem>>, vector<512x16xbf16>,
    return
  }
  func.func @transform_0(%arg0: i32) -> (i32, i32) {
    %c0_i32 = arith.constant 0 : i32
    %c0_i32_0 = arith.constant 0 : i32
    return %arg0, %c0_i32 : i32, i32
  }
  func.func @transform_1(%arg0: i32) -> (i32, i32) {
    %c0_i32 = arith.constant 0 : i32
    %c0_i32_0 = arith.constant 0 : i32
    %c0_i32_1 = arith.constant 0 : i32
    return %c0_i32, %c0_i32_0 : i32, i32
  }
  func.func @transform_2(%arg0: i32) -> (i32, i32) {
    %c0_i32 = arith.constant 0 : i32
    %c0_i32_0 = arith.constant 0 : i32
    %c0_i32_1 = arith.constant 0 : i32
    return %c0_i32, %c0_i32_0 : i32, i32
  }
  func.func @transform_3(%arg0: i32) -> (i32, i32) {
    %c0_i32 = arith.constant 0 : i32
    %c0_i32_0 = arith.constant 0 : i32
    return %arg0, %c0_i32 : i32, i32
  }
}

module attributes {stable_mosaic.version = 11 : i64} {
  func.func @_conv_bn_stats_kernel(%arg0: i32, %arg1: memref<256x256xbf16, #tpu.memory_space<vmem>>, %arg2: memref<256x32xbf16, #tpu.memory_space<vmem>>, %arg3: memref<256x32xf32, #tpu.memory_space<vmem>>, %arg4: memref<4x32xf32, #tpu.memory_space<vmem>>) attributes {dimension_semantics = [#tpu.dimension_semantics<arbitrary>], iteration_bounds = array<i64: 1>, scalar_prefetch = 0 : i64, scratch_operands = 0 : i64, tpu.core_type = #tpu.core_type<tc>, window_params = [{transform_indices = @transform_0, window_bounds = array<i64: 256, 256>}, {pipeline_mode = #tpu.pipeline_mode<synchronous>, transform_indices = @transform_1, window_bounds = array<i64: 256, 32>}, {transform_indices = @transform_2, window_bounds = array<i64: 256, 32>}, {pipeline_mode = #tpu.pipeline_mode<synchronous>, transform_indices = @transform_3, window_bounds = array<i64: 4, 32>}]} {
    %c0_i32 = arith.constant 0 : i32
    %0 = arith.cmpi eq, %arg0, %c0_i32 : i32
    %1 = arith.extui %0 : i1 to i32
    %c0_i32_0 = arith.constant 0 : i32
    %2 = arith.cmpi ne, %1, %c0_i32_0 : i32
    scf.if %2 {
      %cst_16 = arith.constant 0.000000e+00 : f32
      %40 = vector.broadcast %cst_16 : f32 to vector<4x32xf32>
      %c0_17 = arith.constant 0 : index
      %c0_18 = arith.constant 0 : index
      %41 = vector.load %arg4[%c0_17, %c0_18] : memref<4x32xf32, #tpu.memory_space<vmem>>, vector<4x32xf32>
      tpu.vector_store %arg4[%c0_17, %c0_18], %40 {strides = array<i32>} : memref<4x32xf32, #tpu.memory_space<vmem>>, vector<4x32xf32>,
    } else {
    }
    %c0 = arith.constant 0 : index
    %c0_1 = arith.constant 0 : index
    %3 = vector.load %arg1[%c0, %c0_1] : memref<256x256xbf16, #tpu.memory_space<vmem>>, vector<256x256xbf16>
    %c0_2 = arith.constant 0 : index
    %c0_3 = arith.constant 0 : index
    %4 = vector.load %arg2[%c0_2, %c0_3] : memref<256x32xbf16, #tpu.memory_space<vmem>>, vector<256x32xbf16>
    %cst = arith.constant dense<0.000000e+00> : vector<256x32xf32>
    %5 = tpu.matmul %3, %4, %cst {dimension_numbers = #tpu.dot_dimension_numbers<[1], [0], [0], [1], [0, 0, 1, 1], [], []>} : vector<256x256xbf16>, vector<256x32xbf16>, vector<256x32xf32> -> vector<256x32xf32>
    %c0_4 = arith.constant 0 : index
    %c0_5 = arith.constant 0 : index
    %6 = vector.load %arg3[%c0_4, %c0_5] : memref<256x32xf32, #tpu.memory_space<vmem>>, vector<256x32xf32>
    tpu.vector_store %arg3[%c0_4, %c0_5], %5 {strides = array<i32>} : memref<256x32xf32, #tpu.memory_space<vmem>>, vector<256x32xf32>,
    %c256_i32 = arith.constant 256 : i32
    %7 = arith.muli %arg0, %c256_i32 : i32
    %8 = tpu.iota {dimensions = array<i32: 0>} : vector<256x1xi32>
    %9 = vector.broadcast %7 : i32 to vector<256x1xi32>
    %10 = arith.addi %9, %8 : vector<256x1xi32>
    %c128_i32 = arith.constant 128 : i32
    %11 = vector.broadcast %c128_i32 : i32 to vector<256x1xi32>
    %12 = arith.cmpi slt, %10, %11 : vector<256x1xi32>
    %13 = arith.extui %12 : vector<256x1xi1> to vector<256x1xi32>
    %14 = arith.sitofp %13 : vector<256x1xi32> to vector<256x1xf32>
    %c128_i32_6 = arith.constant 128 : i32
    %15 = vector.broadcast %c128_i32_6 : i32 to vector<256x1xi32>
    %16 = arith.cmpi sge, %10, %15 : vector<256x1xi32>
    %c256_i32_7 = arith.constant 256 : i32
    %17 = vector.broadcast %c256_i32_7 : i32 to vector<256x1xi32>
    %18 = arith.cmpi slt, %10, %17 : vector<256x1xi32>
    %19 = arith.andi %16, %18 : vector<256x1xi1>
    %20 = arith.extui %19 : vector<256x1xi1> to vector<256x1xi32>
    %21 = arith.sitofp %20 : vector<256x1xi32> to vector<256x1xf32>
    %22 = vector.broadcast %14 : vector<256x1xf32> to vector<256x32xf32>
    %23 = arith.mulf %5, %22 : vector<256x32xf32>
    %24 = vector.broadcast %21 : vector<256x1xf32> to vector<256x32xf32>
    %25 = arith.mulf %5, %24 : vector<256x32xf32>
    %c0_8 = arith.constant 0 : index
    %c0_9 = arith.constant 0 : index
    %26 = vector.load %arg4[%c0_8, %c0_9] : memref<4x32xf32, #tpu.memory_space<vmem>>, vector<4x32xf32>
    %cst_10 = arith.constant dense<0.000000e+00> : vector<32xf32>
    %27 = vector.multi_reduction <add>, %23, %cst_10 [0] : vector<256x32xf32> to vector<32xf32>
    %28 = vector.shape_cast %27 : vector<32xf32> to vector<1x32xf32>
    %29 = arith.mulf %23, %5 : vector<256x32xf32>
    %cst_11 = arith.constant dense<0.000000e+00> : vector<32xf32>
    %30 = vector.multi_reduction <add>, %29, %cst_11 [0] : vector<256x32xf32> to vector<32xf32>
    %31 = vector.shape_cast %30 : vector<32xf32> to vector<1x32xf32>
    %cst_12 = arith.constant dense<0.000000e+00> : vector<32xf32>
    %32 = vector.multi_reduction <add>, %25, %cst_12 [0] : vector<256x32xf32> to vector<32xf32>
    %33 = vector.shape_cast %32 : vector<32xf32> to vector<1x32xf32>
    %34 = arith.mulf %25, %5 : vector<256x32xf32>
    %cst_13 = arith.constant dense<0.000000e+00> : vector<32xf32>
    %35 = vector.multi_reduction <add>, %34, %cst_13 [0] : vector<256x32xf32> to vector<32xf32>
    %36 = vector.shape_cast %35 : vector<32xf32> to vector<1x32xf32>
    %37 = tpu.concatenate %28, %31, %33, %36 in 0 : vector<1x32xf32>, vector<1x32xf32>, vector<1x32xf32>, vector<1x32xf32> -> vector<4x32xf32>
    %38 = arith.addf %26, %37 : vector<4x32xf32>
    %c0_14 = arith.constant 0 : index
    %c0_15 = arith.constant 0 : index
    %39 = vector.load %arg4[%c0_14, %c0_15] : memref<4x32xf32, #tpu.memory_space<vmem>>, vector<4x32xf32>
    tpu.vector_store %arg4[%c0_14, %c0_15], %38 {strides = array<i32>} : memref<4x32xf32, #tpu.memory_space<vmem>>, vector<4x32xf32>,
    return
  }
  func.func @transform_0(%arg0: i32) -> (i32, i32) {
    %c0_i32 = arith.constant 0 : i32
    %c0_i32_0 = arith.constant 0 : i32
    return %arg0, %c0_i32 : i32, i32
  }
  func.func @transform_1(%arg0: i32) -> (i32, i32) {
    %c0_i32 = arith.constant 0 : i32
    %c0_i32_0 = arith.constant 0 : i32
    %c0_i32_1 = arith.constant 0 : i32
    return %c0_i32, %c0_i32_0 : i32, i32
  }
  func.func @transform_2(%arg0: i32) -> (i32, i32) {
    %c0_i32 = arith.constant 0 : i32
    %c0_i32_0 = arith.constant 0 : i32
    return %arg0, %c0_i32 : i32, i32
  }
  func.func @transform_3(%arg0: i32) -> (i32, i32) {
    %c0_i32 = arith.constant 0 : i32
    %c0_i32_0 = arith.constant 0 : i32
    %c0_i32_1 = arith.constant 0 : i32
    return %c0_i32, %c0_i32_0 : i32, i32
  }
}

module attributes {stable_mosaic.version = 11 : i64} {
  func.func @_bn_apply_lrelu_kernel(%arg0: i32, %arg1: memref<256x32xf32, #tpu.memory_space<vmem>>, %arg2: memref<4x32xf32, #tpu.memory_space<vmem>>, %arg3: memref<1x32xf32, #tpu.memory_space<vmem>>, %arg4: memref<1x32xf32, #tpu.memory_space<vmem>>, %arg5: memref<256x32xbf16, #tpu.memory_space<vmem>>) attributes {dimension_semantics = [#tpu.dimension_semantics<parallel>], iteration_bounds = array<i64: 1>, scalar_prefetch = 0 : i64, scratch_operands = 0 : i64, tpu.core_type = #tpu.core_type<tc>, window_params = [{transform_indices = @transform_0, window_bounds = array<i64: 256, 32>}, {pipeline_mode = #tpu.pipeline_mode<synchronous>, transform_indices = @transform_1, window_bounds = array<i64: 4, 32>}, {pipeline_mode = #tpu.pipeline_mode<synchronous>, transform_indices = @transform_2, window_bounds = array<i64: 1, 32>}, {pipeline_mode = #tpu.pipeline_mode<synchronous>, transform_indices = @transform_3, window_bounds = array<i64: 1, 32>}, {transform_indices = @transform_4, window_bounds = array<i64: 256, 32>}]} {
    %c0 = arith.constant 0 : index
    %c0_0 = arith.constant 0 : index
    %0 = vector.load %arg2[%c0, %c0_0] : memref<4x32xf32, #tpu.memory_space<vmem>>, vector<1x32xf32>
    %cst = arith.constant 7.812500e-03 : f32
    %1 = vector.broadcast %cst : f32 to vector<1x32xf32>
    %2 = arith.mulf %0, %1 : vector<1x32xf32>
    %c1 = arith.constant 1 : index
    %c0_1 = arith.constant 0 : index
    %3 = vector.load %arg2[%c1, %c0_1] : memref<4x32xf32, #tpu.memory_space<vmem>>, vector<1x32xf32>
    %cst_2 = arith.constant 7.812500e-03 : f32
    %4 = vector.broadcast %cst_2 : f32 to vector<1x32xf32>
    %5 = arith.mulf %3, %4 : vector<1x32xf32>
    %c2 = arith.constant 2 : index
    %c0_3 = arith.constant 0 : index
    %6 = vector.load %arg2[%c2, %c0_3] : memref<4x32xf32, #tpu.memory_space<vmem>>, vector<1x32xf32>
    %cst_4 = arith.constant 7.812500e-03 : f32
    %7 = vector.broadcast %cst_4 : f32 to vector<1x32xf32>
    %8 = arith.mulf %6, %7 : vector<1x32xf32>
    %c3 = arith.constant 3 : index
    %c0_5 = arith.constant 0 : index
    %9 = vector.load %arg2[%c3, %c0_5] : memref<4x32xf32, #tpu.memory_space<vmem>>, vector<1x32xf32>
    %cst_6 = arith.constant 7.812500e-03 : f32
    %10 = vector.broadcast %cst_6 : f32 to vector<1x32xf32>
    %11 = arith.mulf %9, %10 : vector<1x32xf32>
    %c0_7 = arith.constant 0 : index
    %c0_8 = arith.constant 0 : index
    %12 = vector.load %arg3[%c0_7, %c0_8] : memref<1x32xf32, #tpu.memory_space<vmem>>, vector<1x32xf32>
    %c0_9 = arith.constant 0 : index
    %c0_10 = arith.constant 0 : index
    %13 = vector.load %arg4[%c0_9, %c0_10] : memref<1x32xf32, #tpu.memory_space<vmem>>, vector<1x32xf32>
    %14 = arith.mulf %2, %2 : vector<1x32xf32>
    %15 = arith.subf %5, %14 : vector<1x32xf32>
    %cst_11 = arith.constant 9.99999974E-6 : f32
    %16 = vector.broadcast %cst_11 : f32 to vector<1x32xf32>
    %17 = arith.addf %15, %16 : vector<1x32xf32>
    %18 = math.rsqrt %17 : vector<1x32xf32>
    %19 = arith.mulf %12, %18 : vector<1x32xf32>
    %20 = arith.mulf %8, %8 : vector<1x32xf32>
    %21 = arith.subf %11, %20 : vector<1x32xf32>
    %cst_12 = arith.constant 9.99999974E-6 : f32
    %22 = vector.broadcast %cst_12 : f32 to vector<1x32xf32>
    %23 = arith.addf %21, %22 : vector<1x32xf32>
    %24 = math.rsqrt %23 : vector<1x32xf32>
    %25 = arith.mulf %12, %24 : vector<1x32xf32>
    %26 = arith.mulf %2, %19 : vector<1x32xf32>
    %27 = arith.subf %13, %26 : vector<1x32xf32>
    %28 = arith.mulf %8, %25 : vector<1x32xf32>
    %29 = arith.subf %13, %28 : vector<1x32xf32>
    %c256_i32 = arith.constant 256 : i32
    %30 = arith.muli %arg0, %c256_i32 : i32
    %31 = tpu.iota {dimensions = array<i32: 0>} : vector<256x1xi32>
    %32 = vector.broadcast %30 : i32 to vector<256x1xi32>
    %33 = arith.addi %32, %31 : vector<256x1xi32>
    %c128_i32 = arith.constant 128 : i32
    %34 = vector.broadcast %c128_i32 : i32 to vector<256x1xi32>
    %35 = arith.cmpi slt, %33, %34 : vector<256x1xi32>
    %36 = arith.extui %35 : vector<256x1xi1> to vector<256x1xi32>
    %37 = arith.sitofp %36 : vector<256x1xi32> to vector<256x1xf32>
    %38 = vector.broadcast %37 : vector<256x1xf32> to vector<256x32xf32>
    %39 = vector.broadcast %19 : vector<1x32xf32> to vector<256x32xf32>
    %40 = arith.mulf %38, %39 : vector<256x32xf32>
    %cst_13 = arith.constant 1.000000e+00 : f32
    %41 = vector.broadcast %cst_13 : f32 to vector<256x1xf32>
    %42 = arith.subf %41, %37 : vector<256x1xf32>
    %43 = vector.broadcast %42 : vector<256x1xf32> to vector<256x32xf32>
    %44 = vector.broadcast %25 : vector<1x32xf32> to vector<256x32xf32>
    %45 = arith.mulf %43, %44 : vector<256x32xf32>
    %46 = arith.addf %40, %45 : vector<256x32xf32>
    %47 = vector.broadcast %37 : vector<256x1xf32> to vector<256x32xf32>
    %48 = vector.broadcast %27 : vector<1x32xf32> to vector<256x32xf32>
    %49 = arith.mulf %47, %48 : vector<256x32xf32>
    %cst_14 = arith.constant 1.000000e+00 : f32
    %50 = vector.broadcast %cst_14 : f32 to vector<256x1xf32>
    %51 = arith.subf %50, %37 : vector<256x1xf32>
    %52 = vector.broadcast %51 : vector<256x1xf32> to vector<256x32xf32>
    %53 = vector.broadcast %29 : vector<1x32xf32> to vector<256x32xf32>
    %54 = arith.mulf %52, %53 : vector<256x32xf32>
    %55 = arith.addf %49, %54 : vector<256x32xf32>
    %c0_15 = arith.constant 0 : index
    %c0_16 = arith.constant 0 : index
    %56 = vector.load %arg1[%c0_15, %c0_16] : memref<256x32xf32, #tpu.memory_space<vmem>>, vector<256x32xf32>
    %57 = arith.mulf %56, %46 : vector<256x32xf32>
    %58 = arith.addf %57, %55 : vector<256x32xf32>
    %cst_17 = arith.constant 0.000000e+00 : f32
    %59 = vector.broadcast %cst_17 : f32 to vector<256x32xf32>
    %60 = arith.cmpf oge, %58, %59 : vector<256x32xf32>
    %cst_18 = arith.constant 2.000000e-01 : f32
    %61 = vector.broadcast %cst_18 : f32 to vector<256x32xf32>
    %62 = arith.mulf %61, %58 : vector<256x32xf32>
    %63 = arith.select %60, %58, %62 : vector<256x32xi1>, vector<256x32xf32>
    %64 = arith.truncf %63 : vector<256x32xf32> to vector<256x32xbf16>
    %c0_19 = arith.constant 0 : index
    %c0_20 = arith.constant 0 : index
    %65 = vector.load %arg5[%c0_19, %c0_20] : memref<256x32xbf16, #tpu.memory_space<vmem>>, vector<256x32xbf16>
    tpu.vector_store %arg5[%c0_19, %c0_20], %64 {strides = array<i32>} : memref<256x32xbf16, #tpu.memory_space<vmem>>, vector<256x32xbf16>,
    return
  }
  func.func @transform_0(%arg0: i32) -> (i32, i32) {
    %c0_i32 = arith.constant 0 : i32
    %c0_i32_0 = arith.constant 0 : i32
    return %arg0, %c0_i32 : i32, i32
  }
  func.func @transform_1(%arg0: i32) -> (i32, i32) {
    %c0_i32 = arith.constant 0 : i32
    %c0_i32_0 = arith.constant 0 : i32
    %c0_i32_1 = arith.constant 0 : i32
    return %c0_i32, %c0_i32_0 : i32, i32
  }
  func.func @transform_2(%arg0: i32) -> (i32, i32) {
    %c0_i32 = arith.constant 0 : i32
    %c0_i32_0 = arith.constant 0 : i32
    %c0_i32_1 = arith.constant 0 : i32
    return %c0_i32, %c0_i32_0 : i32, i32
  }
  func.func @transform_3(%arg0: i32) -> (i32, i32) {
    %c0_i32 = arith.constant 0 : i32
    %c0_i32_0 = arith.constant 0 : i32
    %c0_i32_1 = arith.constant 0 : i32
    return %c0_i32, %c0_i32_0 : i32, i32
  }
  func.func @transform_4(%arg0: i32) -> (i32, i32) {
    %c0_i32 = arith.constant 0 : i32
    %c0_i32_0 = arith.constant 0 : i32
    return %arg0, %c0_i32 : i32, i32
  }
}

module attributes {stable_mosaic.version = 11 : i64} {
  func.func @_conv_bn_stats_kernel(%arg0: i32, %arg1: memref<64x512xbf16, #tpu.memory_space<vmem>>, %arg2: memref<512x64xbf16, #tpu.memory_space<vmem>>, %arg3: memref<64x64xf32, #tpu.memory_space<vmem>>, %arg4: memref<4x64xf32, #tpu.memory_space<vmem>>) attributes {dimension_semantics = [#tpu.dimension_semantics<arbitrary>], iteration_bounds = array<i64: 1>, scalar_prefetch = 0 : i64, scratch_operands = 0 : i64, tpu.core_type = #tpu.core_type<tc>, window_params = [{transform_indices = @transform_0, window_bounds = array<i64: 64, 512>}, {pipeline_mode = #tpu.pipeline_mode<synchronous>, transform_indices = @transform_1, window_bounds = array<i64: 512, 64>}, {transform_indices = @transform_2, window_bounds = array<i64: 64, 64>}, {pipeline_mode = #tpu.pipeline_mode<synchronous>, transform_indices = @transform_3, window_bounds = array<i64: 4, 64>}]} {
    %c0_i32 = arith.constant 0 : i32
    %0 = arith.cmpi eq, %arg0, %c0_i32 : i32
    %1 = arith.extui %0 : i1 to i32
    %c0_i32_0 = arith.constant 0 : i32
    %2 = arith.cmpi ne, %1, %c0_i32_0 : i32
    scf.if %2 {
      %cst_16 = arith.constant 0.000000e+00 : f32
      %40 = vector.broadcast %cst_16 : f32 to vector<4x64xf32>
      %c0_17 = arith.constant 0 : index
      %c0_18 = arith.constant 0 : index
      %41 = vector.load %arg4[%c0_17, %c0_18] : memref<4x64xf32, #tpu.memory_space<vmem>>, vector<4x64xf32>
      tpu.vector_store %arg4[%c0_17, %c0_18], %40 {strides = array<i32>} : memref<4x64xf32, #tpu.memory_space<vmem>>, vector<4x64xf32>,
    } else {
    }
    %c0 = arith.constant 0 : index
    %c0_1 = arith.constant 0 : index
    %3 = vector.load %arg1[%c0, %c0_1] : memref<64x512xbf16, #tpu.memory_space<vmem>>, vector<64x512xbf16>
    %c0_2 = arith.constant 0 : index
    %c0_3 = arith.constant 0 : index
    %4 = vector.load %arg2[%c0_2, %c0_3] : memref<512x64xbf16, #tpu.memory_space<vmem>>, vector<512x64xbf16>
    %cst = arith.constant dense<0.000000e+00> : vector<64x64xf32>
    %5 = tpu.matmul %3, %4, %cst {dimension_numbers = #tpu.dot_dimension_numbers<[1], [0], [0], [1], [0, 0, 1, 1], [], []>} : vector<64x512xbf16>, vector<512x64xbf16>, vector<64x64xf32> -> vector<64x64xf32>
    %c0_4 = arith.constant 0 : index
    %c0_5 = arith.constant 0 : index
    %6 = vector.load %arg3[%c0_4, %c0_5] : memref<64x64xf32, #tpu.memory_space<vmem>>, vector<64x64xf32>
    tpu.vector_store %arg3[%c0_4, %c0_5], %5 {strides = array<i32>} : memref<64x64xf32, #tpu.memory_space<vmem>>, vector<64x64xf32>,
    %c64_i32 = arith.constant 64 : i32
    %7 = arith.muli %arg0, %c64_i32 : i32
    %8 = tpu.iota {dimensions = array<i32: 0>} : vector<64x1xi32>
    %9 = vector.broadcast %7 : i32 to vector<64x1xi32>
    %10 = arith.addi %9, %8 : vector<64x1xi32>
    %c32_i32 = arith.constant 32 : i32
    %11 = vector.broadcast %c32_i32 : i32 to vector<64x1xi32>
    %12 = arith.cmpi slt, %10, %11 : vector<64x1xi32>
    %13 = arith.extui %12 : vector<64x1xi1> to vector<64x1xi32>
    %14 = arith.sitofp %13 : vector<64x1xi32> to vector<64x1xf32>
    %c32_i32_6 = arith.constant 32 : i32
    %15 = vector.broadcast %c32_i32_6 : i32 to vector<64x1xi32>
    %16 = arith.cmpi sge, %10, %15 : vector<64x1xi32>
    %c64_i32_7 = arith.constant 64 : i32
    %17 = vector.broadcast %c64_i32_7 : i32 to vector<64x1xi32>
    %18 = arith.cmpi slt, %10, %17 : vector<64x1xi32>
    %19 = arith.andi %16, %18 : vector<64x1xi1>
    %20 = arith.extui %19 : vector<64x1xi1> to vector<64x1xi32>
    %21 = arith.sitofp %20 : vector<64x1xi32> to vector<64x1xf32>
    %22 = vector.broadcast %14 : vector<64x1xf32> to vector<64x64xf32>
    %23 = arith.mulf %5, %22 : vector<64x64xf32>
    %24 = vector.broadcast %21 : vector<64x1xf32> to vector<64x64xf32>
    %25 = arith.mulf %5, %24 : vector<64x64xf32>
    %c0_8 = arith.constant 0 : index
    %c0_9 = arith.constant 0 : index
    %26 = vector.load %arg4[%c0_8, %c0_9] : memref<4x64xf32, #tpu.memory_space<vmem>>, vector<4x64xf32>
    %cst_10 = arith.constant dense<0.000000e+00> : vector<64xf32>
    %27 = vector.multi_reduction <add>, %23, %cst_10 [0] : vector<64x64xf32> to vector<64xf32>
    %28 = vector.shape_cast %27 : vector<64xf32> to vector<1x64xf32>
    %29 = arith.mulf %23, %5 : vector<64x64xf32>
    %cst_11 = arith.constant dense<0.000000e+00> : vector<64xf32>
    %30 = vector.multi_reduction <add>, %29, %cst_11 [0] : vector<64x64xf32> to vector<64xf32>
    %31 = vector.shape_cast %30 : vector<64xf32> to vector<1x64xf32>
    %cst_12 = arith.constant dense<0.000000e+00> : vector<64xf32>
    %32 = vector.multi_reduction <add>, %25, %cst_12 [0] : vector<64x64xf32> to vector<64xf32>
    %33 = vector.shape_cast %32 : vector<64xf32> to vector<1x64xf32>
    %34 = arith.mulf %25, %5 : vector<64x64xf32>
    %cst_13 = arith.constant dense<0.000000e+00> : vector<64xf32>
    %35 = vector.multi_reduction <add>, %34, %cst_13 [0] : vector<64x64xf32> to vector<64xf32>
    %36 = vector.shape_cast %35 : vector<64xf32> to vector<1x64xf32>
    %37 = tpu.concatenate %28, %31, %33, %36 in 0 : vector<1x64xf32>, vector<1x64xf32>, vector<1x64xf32>, vector<1x64xf32> -> vector<4x64xf32>
    %38 = arith.addf %26, %37 : vector<4x64xf32>
    %c0_14 = arith.constant 0 : index
    %c0_15 = arith.constant 0 : index
    %39 = vector.load %arg4[%c0_14, %c0_15] : memref<4x64xf32, #tpu.memory_space<vmem>>, vector<4x64xf32>
    tpu.vector_store %arg4[%c0_14, %c0_15], %38 {strides = array<i32>} : memref<4x64xf32, #tpu.memory_space<vmem>>, vector<4x64xf32>,
    return
  }
  func.func @transform_0(%arg0: i32) -> (i32, i32) {
    %c0_i32 = arith.constant 0 : i32
    %c0_i32_0 = arith.constant 0 : i32
    return %arg0, %c0_i32 : i32, i32
  }
  func.func @transform_1(%arg0: i32) -> (i32, i32) {
    %c0_i32 = arith.constant 0 : i32
    %c0_i32_0 = arith.constant 0 : i32
    %c0_i32_1 = arith.constant 0 : i32
    return %c0_i32, %c0_i32_0 : i32, i32
  }
  func.func @transform_2(%arg0: i32) -> (i32, i32) {
    %c0_i32 = arith.constant 0 : i32
    %c0_i32_0 = arith.constant 0 : i32
    return %arg0, %c0_i32 : i32, i32
  }
  func.func @transform_3(%arg0: i32) -> (i32, i32) {
    %c0_i32 = arith.constant 0 : i32
    %c0_i32_0 = arith.constant 0 : i32
    %c0_i32_1 = arith.constant 0 : i32
    return %c0_i32, %c0_i32_0 : i32, i32
  }
}

module attributes {stable_mosaic.version = 11 : i64} {
  func.func @_bn_apply_lrelu_kernel(%arg0: i32, %arg1: memref<64x64xf32, #tpu.memory_space<vmem>>, %arg2: memref<4x64xf32, #tpu.memory_space<vmem>>, %arg3: memref<1x64xf32, #tpu.memory_space<vmem>>, %arg4: memref<1x64xf32, #tpu.memory_space<vmem>>, %arg5: memref<64x64xbf16, #tpu.memory_space<vmem>>) attributes {dimension_semantics = [#tpu.dimension_semantics<parallel>], iteration_bounds = array<i64: 1>, scalar_prefetch = 0 : i64, scratch_operands = 0 : i64, tpu.core_type = #tpu.core_type<tc>, window_params = [{transform_indices = @transform_0, window_bounds = array<i64: 64, 64>}, {pipeline_mode = #tpu.pipeline_mode<synchronous>, transform_indices = @transform_1, window_bounds = array<i64: 4, 64>}, {pipeline_mode = #tpu.pipeline_mode<synchronous>, transform_indices = @transform_2, window_bounds = array<i64: 1, 64>}, {pipeline_mode = #tpu.pipeline_mode<synchronous>, transform_indices = @transform_3, window_bounds = array<i64: 1, 64>}, {transform_indices = @transform_4, window_bounds = array<i64: 64, 64>}]} {
    %c0 = arith.constant 0 : index
    %c0_0 = arith.constant 0 : index
    %0 = vector.load %arg2[%c0, %c0_0] : memref<4x64xf32, #tpu.memory_space<vmem>>, vector<1x64xf32>
    %cst = arith.constant 3.125000e-02 : f32
    %1 = vector.broadcast %cst : f32 to vector<1x64xf32>
    %2 = arith.mulf %0, %1 : vector<1x64xf32>
    %c1 = arith.constant 1 : index
    %c0_1 = arith.constant 0 : index
    %3 = vector.load %arg2[%c1, %c0_1] : memref<4x64xf32, #tpu.memory_space<vmem>>, vector<1x64xf32>
    %cst_2 = arith.constant 3.125000e-02 : f32
    %4 = vector.broadcast %cst_2 : f32 to vector<1x64xf32>
    %5 = arith.mulf %3, %4 : vector<1x64xf32>
    %c2 = arith.constant 2 : index
    %c0_3 = arith.constant 0 : index
    %6 = vector.load %arg2[%c2, %c0_3] : memref<4x64xf32, #tpu.memory_space<vmem>>, vector<1x64xf32>
    %cst_4 = arith.constant 3.125000e-02 : f32
    %7 = vector.broadcast %cst_4 : f32 to vector<1x64xf32>
    %8 = arith.mulf %6, %7 : vector<1x64xf32>
    %c3 = arith.constant 3 : index
    %c0_5 = arith.constant 0 : index
    %9 = vector.load %arg2[%c3, %c0_5] : memref<4x64xf32, #tpu.memory_space<vmem>>, vector<1x64xf32>
    %cst_6 = arith.constant 3.125000e-02 : f32
    %10 = vector.broadcast %cst_6 : f32 to vector<1x64xf32>
    %11 = arith.mulf %9, %10 : vector<1x64xf32>
    %c0_7 = arith.constant 0 : index
    %c0_8 = arith.constant 0 : index
    %12 = vector.load %arg3[%c0_7, %c0_8] : memref<1x64xf32, #tpu.memory_space<vmem>>, vector<1x64xf32>
    %c0_9 = arith.constant 0 : index
    %c0_10 = arith.constant 0 : index
    %13 = vector.load %arg4[%c0_9, %c0_10] : memref<1x64xf32, #tpu.memory_space<vmem>>, vector<1x64xf32>
    %14 = arith.mulf %2, %2 : vector<1x64xf32>
    %15 = arith.subf %5, %14 : vector<1x64xf32>
    %cst_11 = arith.constant 9.99999974E-6 : f32
    %16 = vector.broadcast %cst_11 : f32 to vector<1x64xf32>
    %17 = arith.addf %15, %16 : vector<1x64xf32>
    %18 = math.rsqrt %17 : vector<1x64xf32>
    %19 = arith.mulf %12, %18 : vector<1x64xf32>
    %20 = arith.mulf %8, %8 : vector<1x64xf32>
    %21 = arith.subf %11, %20 : vector<1x64xf32>
    %cst_12 = arith.constant 9.99999974E-6 : f32
    %22 = vector.broadcast %cst_12 : f32 to vector<1x64xf32>
    %23 = arith.addf %21, %22 : vector<1x64xf32>
    %24 = math.rsqrt %23 : vector<1x64xf32>
    %25 = arith.mulf %12, %24 : vector<1x64xf32>
    %26 = arith.mulf %2, %19 : vector<1x64xf32>
    %27 = arith.subf %13, %26 : vector<1x64xf32>
    %28 = arith.mulf %8, %25 : vector<1x64xf32>
    %29 = arith.subf %13, %28 : vector<1x64xf32>
    %c64_i32 = arith.constant 64 : i32
    %30 = arith.muli %arg0, %c64_i32 : i32
    %31 = tpu.iota {dimensions = array<i32: 0>} : vector<64x1xi32>
    %32 = vector.broadcast %30 : i32 to vector<64x1xi32>
    %33 = arith.addi %32, %31 : vector<64x1xi32>
    %c32_i32 = arith.constant 32 : i32
    %34 = vector.broadcast %c32_i32 : i32 to vector<64x1xi32>
    %35 = arith.cmpi slt, %33, %34 : vector<64x1xi32>
    %36 = arith.extui %35 : vector<64x1xi1> to vector<64x1xi32>
    %37 = arith.sitofp %36 : vector<64x1xi32> to vector<64x1xf32>
    %38 = vector.broadcast %37 : vector<64x1xf32> to vector<64x64xf32>
    %39 = vector.broadcast %19 : vector<1x64xf32> to vector<64x64xf32>
    %40 = arith.mulf %38, %39 : vector<64x64xf32>
    %cst_13 = arith.constant 1.000000e+00 : f32
    %41 = vector.broadcast %cst_13 : f32 to vector<64x1xf32>
    %42 = arith.subf %41, %37 : vector<64x1xf32>
    %43 = vector.broadcast %42 : vector<64x1xf32> to vector<64x64xf32>
    %44 = vector.broadcast %25 : vector<1x64xf32> to vector<64x64xf32>
    %45 = arith.mulf %43, %44 : vector<64x64xf32>
    %46 = arith.addf %40, %45 : vector<64x64xf32>
    %47 = vector.broadcast %37 : vector<64x1xf32> to vector<64x64xf32>
    %48 = vector.broadcast %27 : vector<1x64xf32> to vector<64x64xf32>
    %49 = arith.mulf %47, %48 : vector<64x64xf32>
    %cst_14 = arith.constant 1.000000e+00 : f32
    %50 = vector.broadcast %cst_14 : f32 to vector<64x1xf32>
    %51 = arith.subf %50, %37 : vector<64x1xf32>
    %52 = vector.broadcast %51 : vector<64x1xf32> to vector<64x64xf32>
    %53 = vector.broadcast %29 : vector<1x64xf32> to vector<64x64xf32>
    %54 = arith.mulf %52, %53 : vector<64x64xf32>
    %55 = arith.addf %49, %54 : vector<64x64xf32>
    %c0_15 = arith.constant 0 : index
    %c0_16 = arith.constant 0 : index
    %56 = vector.load %arg1[%c0_15, %c0_16] : memref<64x64xf32, #tpu.memory_space<vmem>>, vector<64x64xf32>
    %57 = arith.mulf %56, %46 : vector<64x64xf32>
    %58 = arith.addf %57, %55 : vector<64x64xf32>
    %cst_17 = arith.constant 0.000000e+00 : f32
    %59 = vector.broadcast %cst_17 : f32 to vector<64x64xf32>
    %60 = arith.cmpf oge, %58, %59 : vector<64x64xf32>
    %cst_18 = arith.constant 2.000000e-01 : f32
    %61 = vector.broadcast %cst_18 : f32 to vector<64x64xf32>
    %62 = arith.mulf %61, %58 : vector<64x64xf32>
    %63 = arith.select %60, %58, %62 : vector<64x64xi1>, vector<64x64xf32>
    %64 = arith.truncf %63 : vector<64x64xf32> to vector<64x64xbf16>
    %c0_19 = arith.constant 0 : index
    %c0_20 = arith.constant 0 : index
    %65 = vector.load %arg5[%c0_19, %c0_20] : memref<64x64xbf16, #tpu.memory_space<vmem>>, vector<64x64xbf16>
    tpu.vector_store %arg5[%c0_19, %c0_20], %64 {strides = array<i32>} : memref<64x64xbf16, #tpu.memory_space<vmem>>, vector<64x64xbf16>,
    return
  }
  func.func @transform_0(%arg0: i32) -> (i32, i32) {
    %c0_i32 = arith.constant 0 : i32
    %c0_i32_0 = arith.constant 0 : i32
    return %arg0, %c0_i32 : i32, i32
  }
  func.func @transform_1(%arg0: i32) -> (i32, i32) {
    %c0_i32 = arith.constant 0 : i32
    %c0_i32_0 = arith.constant 0 : i32
    %c0_i32_1 = arith.constant 0 : i32
    return %c0_i32, %c0_i32_0 : i32, i32
  }
  func.func @transform_2(%arg0: i32) -> (i32, i32) {
    %c0_i32 = arith.constant 0 : i32
    %c0_i32_0 = arith.constant 0 : i32
    %c0_i32_1 = arith.constant 0 : i32
    return %c0_i32, %c0_i32_0 : i32, i32
  }
  func.func @transform_3(%arg0: i32) -> (i32, i32) {
    %c0_i32 = arith.constant 0 : i32
    %c0_i32_0 = arith.constant 0 : i32
    %c0_i32_1 = arith.constant 0 : i32
    return %c0_i32, %c0_i32_0 : i32, i32
  }
  func.func @transform_4(%arg0: i32) -> (i32, i32) {
    %c0_i32 = arith.constant 0 : i32
    %c0_i32_0 = arith.constant 0 : i32
    return %arg0, %c0_i32 : i32, i32
  }
}

module attributes {stable_mosaic.version = 11 : i64} {
  func.func @_conv_bn_stats_kernel(%arg0: i32, %arg1: memref<36x1024xbf16, #tpu.memory_space<vmem>>, %arg2: memref<1024x128xbf16, #tpu.memory_space<vmem>>, %arg3: memref<36x128xf32, #tpu.memory_space<vmem>>, %arg4: memref<4x128xf32, #tpu.memory_space<vmem>>) attributes {dimension_semantics = [#tpu.dimension_semantics<arbitrary>], iteration_bounds = array<i64: 1>, scalar_prefetch = 0 : i64, scratch_operands = 0 : i64, tpu.core_type = #tpu.core_type<tc>, window_params = [{transform_indices = @transform_0, window_bounds = array<i64: 36, 1024>}, {pipeline_mode = #tpu.pipeline_mode<synchronous>, transform_indices = @transform_1, window_bounds = array<i64: 1024, 128>}, {transform_indices = @transform_2, window_bounds = array<i64: 36, 128>}, {pipeline_mode = #tpu.pipeline_mode<synchronous>, transform_indices = @transform_3, window_bounds = array<i64: 4, 128>}]} {
    %c0_i32 = arith.constant 0 : i32
    %0 = arith.cmpi eq, %arg0, %c0_i32 : i32
    %1 = arith.extui %0 : i1 to i32
    %c0_i32_0 = arith.constant 0 : i32
    %2 = arith.cmpi ne, %1, %c0_i32_0 : i32
    scf.if %2 {
      %cst_16 = arith.constant 0.000000e+00 : f32
      %40 = vector.broadcast %cst_16 : f32 to vector<4x128xf32>
      %c0_17 = arith.constant 0 : index
      %c0_18 = arith.constant 0 : index
      %41 = vector.load %arg4[%c0_17, %c0_18] : memref<4x128xf32, #tpu.memory_space<vmem>>, vector<4x128xf32>
      tpu.vector_store %arg4[%c0_17, %c0_18], %40 {strides = array<i32>} : memref<4x128xf32, #tpu.memory_space<vmem>>, vector<4x128xf32>,
    } else {
    }
    %c0 = arith.constant 0 : index
    %c0_1 = arith.constant 0 : index
    %3 = vector.load %arg1[%c0, %c0_1] : memref<36x1024xbf16, #tpu.memory_space<vmem>>, vector<36x1024xbf16>
    %c0_2 = arith.constant 0 : index
    %c0_3 = arith.constant 0 : index
    %4 = vector.load %arg2[%c0_2, %c0_3] : memref<1024x128xbf16, #tpu.memory_space<vmem>>, vector<1024x128xbf16>
    %cst = arith.constant dense<0.000000e+00> : vector<36x128xf32>
    %5 = tpu.matmul %3, %4, %cst {dimension_numbers = #tpu.dot_dimension_numbers<[1], [0], [0], [1], [0, 0, 1, 1], [], []>} : vector<36x1024xbf16>, vector<1024x128xbf16>, vector<36x128xf32> -> vector<36x128xf32>
    %c0_4 = arith.constant 0 : index
    %c0_5 = arith.constant 0 : index
    %6 = vector.load %arg3[%c0_4, %c0_5] : memref<36x128xf32, #tpu.memory_space<vmem>>, vector<36x128xf32>
    tpu.vector_store %arg3[%c0_4, %c0_5], %5 {strides = array<i32>} : memref<36x128xf32, #tpu.memory_space<vmem>>, vector<36x128xf32>,
    %c36_i32 = arith.constant 36 : i32
    %7 = arith.muli %arg0, %c36_i32 : i32
    %8 = tpu.iota {dimensions = array<i32: 0>} : vector<36x1xi32>
    %9 = vector.broadcast %7 : i32 to vector<36x1xi32>
    %10 = arith.addi %9, %8 : vector<36x1xi32>
    %c18_i32 = arith.constant 18 : i32
    %11 = vector.broadcast %c18_i32 : i32 to vector<36x1xi32>
    %12 = arith.cmpi slt, %10, %11 : vector<36x1xi32>
    %13 = arith.extui %12 : vector<36x1xi1> to vector<36x1xi32>
    %14 = arith.sitofp %13 : vector<36x1xi32> to vector<36x1xf32>
    %c18_i32_6 = arith.constant 18 : i32
    %15 = vector.broadcast %c18_i32_6 : i32 to vector<36x1xi32>
    %16 = arith.cmpi sge, %10, %15 : vector<36x1xi32>
    %c36_i32_7 = arith.constant 36 : i32
    %17 = vector.broadcast %c36_i32_7 : i32 to vector<36x1xi32>
    %18 = arith.cmpi slt, %10, %17 : vector<36x1xi32>
    %19 = arith.andi %16, %18 : vector<36x1xi1>
    %20 = arith.extui %19 : vector<36x1xi1> to vector<36x1xi32>
    %21 = arith.sitofp %20 : vector<36x1xi32> to vector<36x1xf32>
    %22 = vector.broadcast %14 : vector<36x1xf32> to vector<36x128xf32>
    %23 = arith.mulf %5, %22 : vector<36x128xf32>
    %24 = vector.broadcast %21 : vector<36x1xf32> to vector<36x128xf32>
    %25 = arith.mulf %5, %24 : vector<36x128xf32>
    %c0_8 = arith.constant 0 : index
    %c0_9 = arith.constant 0 : index
    %26 = vector.load %arg4[%c0_8, %c0_9] : memref<4x128xf32, #tpu.memory_space<vmem>>, vector<4x128xf32>
    %cst_10 = arith.constant dense<0.000000e+00> : vector<128xf32>
    %27 = vector.multi_reduction <add>, %23, %cst_10 [0] : vector<36x128xf32> to vector<128xf32>
    %28 = vector.shape_cast %27 : vector<128xf32> to vector<1x128xf32>
    %29 = arith.mulf %23, %5 : vector<36x128xf32>
    %cst_11 = arith.constant dense<0.000000e+00> : vector<128xf32>
    %30 = vector.multi_reduction <add>, %29, %cst_11 [0] : vector<36x128xf32> to vector<128xf32>
    %31 = vector.shape_cast %30 : vector<128xf32> to vector<1x128xf32>
    %cst_12 = arith.constant dense<0.000000e+00> : vector<128xf32>
    %32 = vector.multi_reduction <add>, %25, %cst_12 [0] : vector<36x128xf32> to vector<128xf32>
    %33 = vector.shape_cast %32 : vector<128xf32> to vector<1x128xf32>
    %34 = arith.mulf %25, %5 : vector<36x128xf32>
    %cst_13 = arith.constant dense<0.000000e+00> : vector<128xf32>
    %35 = vector.multi_reduction <add>, %34, %cst_13 [0] : vector<36x128xf32> to vector<128xf32>
    %36 = vector.shape_cast %35 : vector<128xf32> to vector<1x128xf32>
    %37 = tpu.concatenate %28, %31, %33, %36 in 0 : vector<1x128xf32>, vector<1x128xf32>, vector<1x128xf32>, vector<1x128xf32> -> vector<4x128xf32>
    %38 = arith.addf %26, %37 : vector<4x128xf32>
    %c0_14 = arith.constant 0 : index
    %c0_15 = arith.constant 0 : index
    %39 = vector.load %arg4[%c0_14, %c0_15] : memref<4x128xf32, #tpu.memory_space<vmem>>, vector<4x128xf32>
    tpu.vector_store %arg4[%c0_14, %c0_15], %38 {strides = array<i32>} : memref<4x128xf32, #tpu.memory_space<vmem>>, vector<4x128xf32>,
    return
  }
  func.func @transform_0(%arg0: i32) -> (i32, i32) {
    %c0_i32 = arith.constant 0 : i32
    %c0_i32_0 = arith.constant 0 : i32
    return %arg0, %c0_i32 : i32, i32
  }
  func.func @transform_1(%arg0: i32) -> (i32, i32) {
    %c0_i32 = arith.constant 0 : i32
    %c0_i32_0 = arith.constant 0 : i32
    %c0_i32_1 = arith.constant 0 : i32
    return %c0_i32, %c0_i32_0 : i32, i32
  }
  func.func @transform_2(%arg0: i32) -> (i32, i32) {
    %c0_i32 = arith.constant 0 : i32
    %c0_i32_0 = arith.constant 0 : i32
    return %arg0, %c0_i32 : i32, i32
  }
  func.func @transform_3(%arg0: i32) -> (i32, i32) {
    %c0_i32 = arith.constant 0 : i32
    %c0_i32_0 = arith.constant 0 : i32
    %c0_i32_1 = arith.constant 0 : i32
    return %c0_i32, %c0_i32_0 : i32, i32
  }
}

module attributes {stable_mosaic.version = 11 : i64} {
  func.func @_bn_apply_lrelu_kernel(%arg0: i32, %arg1: memref<36x128xf32, #tpu.memory_space<vmem>>, %arg2: memref<4x128xf32, #tpu.memory_space<vmem>>, %arg3: memref<1x128xf32, #tpu.memory_space<vmem>>, %arg4: memref<1x128xf32, #tpu.memory_space<vmem>>, %arg5: memref<36x128xbf16, #tpu.memory_space<vmem>>) attributes {dimension_semantics = [#tpu.dimension_semantics<parallel>], iteration_bounds = array<i64: 1>, scalar_prefetch = 0 : i64, scratch_operands = 0 : i64, tpu.core_type = #tpu.core_type<tc>, window_params = [{transform_indices = @transform_0, window_bounds = array<i64: 36, 128>}, {pipeline_mode = #tpu.pipeline_mode<synchronous>, transform_indices = @transform_1, window_bounds = array<i64: 4, 128>}, {pipeline_mode = #tpu.pipeline_mode<synchronous>, transform_indices = @transform_2, window_bounds = array<i64: 1, 128>}, {pipeline_mode = #tpu.pipeline_mode<synchronous>, transform_indices = @transform_3, window_bounds = array<i64: 1, 128>}, {transform_indices = @transform_4, window_bounds = array<i64: 36, 128>}]} {
    %c0 = arith.constant 0 : index
    %c0_0 = arith.constant 0 : index
    %0 = vector.load %arg2[%c0, %c0_0] : memref<4x128xf32, #tpu.memory_space<vmem>>, vector<1x128xf32>
    %cst = arith.constant 0.055555556 : f32
    %1 = vector.broadcast %cst : f32 to vector<1x128xf32>
    %2 = arith.mulf %0, %1 : vector<1x128xf32>
    %c1 = arith.constant 1 : index
    %c0_1 = arith.constant 0 : index
    %3 = vector.load %arg2[%c1, %c0_1] : memref<4x128xf32, #tpu.memory_space<vmem>>, vector<1x128xf32>
    %cst_2 = arith.constant 0.055555556 : f32
    %4 = vector.broadcast %cst_2 : f32 to vector<1x128xf32>
    %5 = arith.mulf %3, %4 : vector<1x128xf32>
    %c2 = arith.constant 2 : index
    %c0_3 = arith.constant 0 : index
    %6 = vector.load %arg2[%c2, %c0_3] : memref<4x128xf32, #tpu.memory_space<vmem>>, vector<1x128xf32>
    %cst_4 = arith.constant 0.055555556 : f32
    %7 = vector.broadcast %cst_4 : f32 to vector<1x128xf32>
    %8 = arith.mulf %6, %7 : vector<1x128xf32>
    %c3 = arith.constant 3 : index
    %c0_5 = arith.constant 0 : index
    %9 = vector.load %arg2[%c3, %c0_5] : memref<4x128xf32, #tpu.memory_space<vmem>>, vector<1x128xf32>
    %cst_6 = arith.constant 0.055555556 : f32
    %10 = vector.broadcast %cst_6 : f32 to vector<1x128xf32>
    %11 = arith.mulf %9, %10 : vector<1x128xf32>
    %c0_7 = arith.constant 0 : index
    %c0_8 = arith.constant 0 : index
    %12 = vector.load %arg3[%c0_7, %c0_8] : memref<1x128xf32, #tpu.memory_space<vmem>>, vector<1x128xf32>
    %c0_9 = arith.constant 0 : index
    %c0_10 = arith.constant 0 : index
    %13 = vector.load %arg4[%c0_9, %c0_10] : memref<1x128xf32, #tpu.memory_space<vmem>>, vector<1x128xf32>
    %14 = arith.mulf %2, %2 : vector<1x128xf32>
    %15 = arith.subf %5, %14 : vector<1x128xf32>
    %cst_11 = arith.constant 9.99999974E-6 : f32
    %16 = vector.broadcast %cst_11 : f32 to vector<1x128xf32>
    %17 = arith.addf %15, %16 : vector<1x128xf32>
    %18 = math.rsqrt %17 : vector<1x128xf32>
    %19 = arith.mulf %12, %18 : vector<1x128xf32>
    %20 = arith.mulf %8, %8 : vector<1x128xf32>
    %21 = arith.subf %11, %20 : vector<1x128xf32>
    %cst_12 = arith.constant 9.99999974E-6 : f32
    %22 = vector.broadcast %cst_12 : f32 to vector<1x128xf32>
    %23 = arith.addf %21, %22 : vector<1x128xf32>
    %24 = math.rsqrt %23 : vector<1x128xf32>
    %25 = arith.mulf %12, %24 : vector<1x128xf32>
    %26 = arith.mulf %2, %19 : vector<1x128xf32>
    %27 = arith.subf %13, %26 : vector<1x128xf32>
    %28 = arith.mulf %8, %25 : vector<1x128xf32>
    %29 = arith.subf %13, %28 : vector<1x128xf32>
    %c36_i32 = arith.constant 36 : i32
    %30 = arith.muli %arg0, %c36_i32 : i32
    %31 = tpu.iota {dimensions = array<i32: 0>} : vector<36x1xi32>
    %32 = vector.broadcast %30 : i32 to vector<36x1xi32>
    %33 = arith.addi %32, %31 : vector<36x1xi32>
    %c18_i32 = arith.constant 18 : i32
    %34 = vector.broadcast %c18_i32 : i32 to vector<36x1xi32>
    %35 = arith.cmpi slt, %33, %34 : vector<36x1xi32>
    %36 = arith.extui %35 : vector<36x1xi1> to vector<36x1xi32>
    %37 = arith.sitofp %36 : vector<36x1xi32> to vector<36x1xf32>
    %38 = vector.broadcast %37 : vector<36x1xf32> to vector<36x128xf32>
    %39 = vector.broadcast %19 : vector<1x128xf32> to vector<36x128xf32>
    %40 = arith.mulf %38, %39 : vector<36x128xf32>
    %cst_13 = arith.constant 1.000000e+00 : f32
    %41 = vector.broadcast %cst_13 : f32 to vector<36x1xf32>
    %42 = arith.subf %41, %37 : vector<36x1xf32>
    %43 = vector.broadcast %42 : vector<36x1xf32> to vector<36x128xf32>
    %44 = vector.broadcast %25 : vector<1x128xf32> to vector<36x128xf32>
    %45 = arith.mulf %43, %44 : vector<36x128xf32>
    %46 = arith.addf %40, %45 : vector<36x128xf32>
    %47 = vector.broadcast %37 : vector<36x1xf32> to vector<36x128xf32>
    %48 = vector.broadcast %27 : vector<1x128xf32> to vector<36x128xf32>
    %49 = arith.mulf %47, %48 : vector<36x128xf32>
    %cst_14 = arith.constant 1.000000e+00 : f32
    %50 = vector.broadcast %cst_14 : f32 to vector<36x1xf32>
    %51 = arith.subf %50, %37 : vector<36x1xf32>
    %52 = vector.broadcast %51 : vector<36x1xf32> to vector<36x128xf32>
    %53 = vector.broadcast %29 : vector<1x128xf32> to vector<36x128xf32>
    %54 = arith.mulf %52, %53 : vector<36x128xf32>
    %55 = arith.addf %49, %54 : vector<36x128xf32>
    %c0_15 = arith.constant 0 : index
    %c0_16 = arith.constant 0 : index
    %56 = vector.load %arg1[%c0_15, %c0_16] : memref<36x128xf32, #tpu.memory_space<vmem>>, vector<36x128xf32>
    %57 = arith.mulf %56, %46 : vector<36x128xf32>
    %58 = arith.addf %57, %55 : vector<36x128xf32>
    %cst_17 = arith.constant 0.000000e+00 : f32
    %59 = vector.broadcast %cst_17 : f32 to vector<36x128xf32>
    %60 = arith.cmpf oge, %58, %59 : vector<36x128xf32>
    %cst_18 = arith.constant 2.000000e-01 : f32
    %61 = vector.broadcast %cst_18 : f32 to vector<36x128xf32>
    %62 = arith.mulf %61, %58 : vector<36x128xf32>
    %63 = arith.select %60, %58, %62 : vector<36x128xi1>, vector<36x128xf32>
    %64 = arith.truncf %63 : vector<36x128xf32> to vector<36x128xbf16>
    %c0_19 = arith.constant 0 : index
    %c0_20 = arith.constant 0 : index
    %65 = vector.load %arg5[%c0_19, %c0_20] : memref<36x128xbf16, #tpu.memory_space<vmem>>, vector<36x128xbf16>
    tpu.vector_store %arg5[%c0_19, %c0_20], %64 {strides = array<i32>} : memref<36x128xbf16, #tpu.memory_space<vmem>>, vector<36x128xbf16>,
    return
  }
  func.func @transform_0(%arg0: i32) -> (i32, i32) {
    %c0_i32 = arith.constant 0 : i32
    %c0_i32_0 = arith.constant 0 : i32
    return %arg0, %c0_i32 : i32, i32
  }
  func.func @transform_1(%arg0: i32) -> (i32, i32) {
    %c0_i32 = arith.constant 0 : i32
    %c0_i32_0 = arith.constant 0 : i32
    %c0_i32_1 = arith.constant 0 : i32
    return %c0_i32, %c0_i32_0 : i32, i32
  }
  func.func @transform_2(%arg0: i32) -> (i32, i32) {
    %c0_i32 = arith.constant 0 : i32
    %c0_i32_0 = arith.constant 0 : i32
    %c0_i32_1 = arith.constant 0 : i32
    return %c0_i32, %c0_i32_0 : i32, i32
  }
  func.func @transform_3(%arg0: i32) -> (i32, i32) {
    %c0_i32 = arith.constant 0 : i32
    %c0_i32_0 = arith.constant 0 : i32
    %c0_i32_1 = arith.constant 0 : i32
    return %c0_i32, %c0_i32_0 : i32, i32
  }
  func.func @transform_4(%arg0: i32) -> (i32, i32) {
    %c0_i32 = arith.constant 0 : i32
    %c0_i32_0 = arith.constant 0 : i32
    return %arg0, %c0_i32 : i32, i32
  }
}

module attributes {stable_mosaic.version = 11 : i64} {
  func.func @_final_conv_hinge_kernel(%arg0: i32, %arg1: memref<16x2048xbf16, #tpu.memory_space<vmem>>, %arg2: memref<2048x1xbf16, #tpu.memory_space<vmem>>, %arg3: memref<1x1xf32, #tpu.memory_space<vmem>>, %arg4: memref<1x1xf32, #tpu.memory_space<vmem>>) attributes {dimension_semantics = [#tpu.dimension_semantics<arbitrary>], iteration_bounds = array<i64: 1>, scalar_prefetch = 0 : i64, scratch_operands = 0 : i64, tpu.core_type = #tpu.core_type<tc>, window_params = [{transform_indices = @transform_0, window_bounds = array<i64: 16, 2048>}, {pipeline_mode = #tpu.pipeline_mode<synchronous>, transform_indices = @transform_1, window_bounds = array<i64: 2048, 1>}, {pipeline_mode = #tpu.pipeline_mode<synchronous>, transform_indices = @transform_2, window_bounds = array<i64: 1, 1>}, {pipeline_mode = #tpu.pipeline_mode<synchronous>, transform_indices = @transform_3, window_bounds = array<i64: 1, 1>}]} {
    %c0_i32 = arith.constant 0 : i32
    %0 = arith.cmpi eq, %arg0, %c0_i32 : i32
    %1 = arith.extui %0 : i1 to i32
    %c0_i32_0 = arith.constant 0 : i32
    %2 = arith.cmpi ne, %1, %c0_i32_0 : i32
    scf.if %2 {
      %cst_16 = arith.constant 0.000000e+00 : f32
      %36 = vector.broadcast %cst_16 : f32 to vector<1x1xf32>
      %c0_17 = arith.constant 0 : index
      %c0_18 = arith.constant 0 : index
      %37 = vector.load %arg4[%c0_17, %c0_18] : memref<1x1xf32, #tpu.memory_space<vmem>>, vector<1x1xf32>
      tpu.vector_store %arg4[%c0_17, %c0_18], %36 {strides = array<i32>} : memref<1x1xf32, #tpu.memory_space<vmem>>, vector<1x1xf32>,
    } else {
    }
    %c0 = arith.constant 0 : index
    %c0_1 = arith.constant 0 : index
    %3 = vector.load %arg1[%c0, %c0_1] : memref<16x2048xbf16, #tpu.memory_space<vmem>>, vector<16x2048xbf16>
    %c0_2 = arith.constant 0 : index
    %c0_3 = arith.constant 0 : index
    %4 = vector.load %arg2[%c0_2, %c0_3] : memref<2048x1xbf16, #tpu.memory_space<vmem>>, vector<2048x1xbf16>
    %cst = arith.constant dense<0.000000e+00> : vector<16x1xf32>
    %5 = tpu.matmul %3, %4, %cst {dimension_numbers = #tpu.dot_dimension_numbers<[1], [0], [0], [1], [0, 0, 1, 1], [], []>} : vector<16x2048xbf16>, vector<2048x1xbf16>, vector<16x1xf32> -> vector<16x1xf32>
    %c0_4 = arith.constant 0 : index
    %c0_5 = arith.constant 0 : index
    %6 = vector.load %arg3[%c0_4, %c0_5] : memref<1x1xf32, #tpu.memory_space<vmem>>, vector<1x1xf32>
    %7 = vector.broadcast %6 : vector<1x1xf32> to vector<16x1xf32>
    %8 = arith.addf %5, %7 : vector<16x1xf32>
    %c16_i32 = arith.constant 16 : i32
    %9 = arith.muli %arg0, %c16_i32 : i32
    %10 = tpu.iota {dimensions = array<i32: 0>} : vector<16x1xi32>
    %11 = vector.broadcast %9 : i32 to vector<16x1xi32>
    %12 = arith.addi %11, %10 : vector<16x1xi32>
    %c16_i32_6 = arith.constant 16 : i32
    %13 = vector.broadcast %c16_i32_6 : i32 to vector<16x1xi32>
    %14 = arith.cmpi slt, %12, %13 : vector<16x1xi32>
    %15 = arith.extui %14 : vector<16x1xi1> to vector<16x1xi32>
    %16 = arith.sitofp %15 : vector<16x1xi32> to vector<16x1xf32>
    %c8_i32 = arith.constant 8 : i32
    %17 = vector.broadcast %c8_i32 : i32 to vector<16x1xi32>
    %18 = arith.cmpi slt, %12, %17 : vector<16x1xi32>
    %cst_7 = arith.constant -1.000000e+00 : f32
    %cst_8 = arith.constant 1.000000e+00 : f32
    %19 = vector.broadcast %cst_7 : f32 to vector<16x1xf32>
    %20 = vector.broadcast %cst_8 : f32 to vector<16x1xf32>
    %21 = arith.select %18, %19, %20 : vector<16x1xi1>, vector<16x1xf32>
    %22 = arith.mulf %21, %16 : vector<16x1xf32>
    %23 = arith.mulf %22, %8 : vector<16x1xf32>
    %24 = arith.addf %16, %23 : vector<16x1xf32>
    %cst_9 = arith.constant 0.000000e+00 : f32
    %25 = vector.broadcast %cst_9 : f32 to vector<16x1xf32>
    %26 = arith.maximumf %24, %25 : vector<16x1xf32>
    %c0_10 = arith.constant 0 : index
    %c0_11 = arith.constant 0 : index
    %27 = vector.load %arg4[%c0_10, %c0_11] : memref<1x1xf32, #tpu.memory_space<vmem>>, vector<1x1xf32>
    %28 = vector.shape_cast %26 : vector<16x1xf32> to vector<1x16x1xf32>
    %cst_12 = arith.constant dense<0.000000e+00> : vector<1xf32>
    %29 = vector.multi_reduction <add>, %28, %cst_12 [1, 2] : vector<1x16x1xf32> to vector<1xf32>
    %30 = vector.shape_cast %29 : vector<1xf32> to vector<1x1x1xf32>
    %31 = vector.extract %30[0, 0, 0] : f32 from vector<1x1x1xf32>
    %cst_13 = arith.constant 6.250000e-02 : f32
    %32 = arith.mulf %31, %cst_13 : f32
    %33 = vector.broadcast %32 : f32 to vector<1x1xf32>
    %34 = arith.addf %27, %33 : vector<1x1xf32>
    %c0_14 = arith.constant 0 : index
    %c0_15 = arith.constant 0 : index
    %35 = vector.load %arg4[%c0_14, %c0_15] : memref<1x1xf32, #tpu.memory_space<vmem>>, vector<1x1xf32>
    tpu.vector_store %arg4[%c0_14, %c0_15], %34 {strides = array<i32>} : memref<1x1xf32, #tpu.memory_space<vmem>>, vector<1x1xf32>,
    return
  }
  func.func @transform_0(%arg0: i32) -> (i32, i32) {
    %c0_i32 = arith.constant 0 : i32
    %c0_i32_0 = arith.constant 0 : i32
    return %arg0, %c0_i32 : i32, i32
  }
  func.func @transform_1(%arg0: i32) -> (i32, i32) {
    %c0_i32 = arith.constant 0 : i32
    %c0_i32_0 = arith.constant 0 : i32
    %c0_i32_1 = arith.constant 0 : i32
    return %c0_i32, %c0_i32_0 : i32, i32
  }
  func.func @transform_2(%arg0: i32) -> (i32, i32) {
    %c0_i32 = arith.constant 0 : i32
    %c0_i32_0 = arith.constant 0 : i32
    %c0_i32_1 = arith.constant 0 : i32
    return %c0_i32, %c0_i32_0 : i32, i32
  }
  func.func @transform_3(%arg0: i32) -> (i32, i32) {
    %c0_i32 = arith.constant 0 : i32
    %c0_i32_0 = arith.constant 0 : i32
    %c0_i32_1 = arith.constant 0 : i32
    return %c0_i32, %c0_i32_0 : i32, i32
  }
}

</mosaic_0001>

<bundles_post_ra>
// kernel: d_loss.8
= control target key start
LH: loop header
LB: loop body
LE: loop exit
PB: predicated region body
PF: predicated region fallthrough
CT: control target
= control target key end

     0   :  { %s1774_s12 = smov 0   ;;  %s2151_s0 = inlined_call_operand.vmem [shape: bf16[1024,48], index: 0, kind: input, shape index: {}]   ;;  %s2152_s1 = inlined_call_operand.vmem [shape: bf16[48,16], index: 1, kind: input, shape index: {}]   ;;  %s2153_s2 = inlined_call_operand.vmem [shape: f32[1,16], index: 2, kind: input, shape index: {}]   ;;  %s2154_s3 = inlined_call_operand.vmem [shape: bf16[1024,16], index: 3, kind: output, shape index: {}]  }
   0x1 LB: > { %s1385_s13 = sadd.s32 4294967295, %s1752_s12   ;;  %p1389_p0 = scmp.ge.s32.totalorder %s1752_s12, 1  ;;  %s1752_s12 = sphi %s1774_s12, %s13_s12  }
   0x2   : > { %p138_p1 = scmp.lt.s32.totalorder %s1752_s12, 3 }
   0x4   : > { %p139_p2 = pnand %p1389_p0, %p138_p1 }
   0x5   : > { %v1711_v0 = vld [vmem:[%s2152_s1] sm:$0xff] (!%p139_p2)   ;;  %s1390_s16 = sshll.u32 (!%p139_p2), %s1385_s13, 6  ;;  %v1712_v1 = vld [vmem:[%s2152_s1 + $0x8] sm:$0xff] (!%p139_p2)   ;;  %v1713_v2 = vld [vmem:[%s2152_s1 + $0x10] sm:$0xff] (!%p139_p2)   ;;  %vm430_vm0 = vcmask (!%p139_p2), 392192   ;;  %vm1264_vm1 = vcmask (!%p139_p2), 125952  }
   0x6   : > { %142 = sbr.rel (%p139_p2) target bundleno = 316 (0x13c), region = 32  ;;  %p163_p3 = scmp.lt.s32.totalorder (!%p139_p2), %s1390_s16, 127  ;;  %1627 = vmatprep.subr.bf16.mxu0 (!%p139_p2), %v1711_v0  ;;  %1697 = vmatprep.subr.bf16.mxu1 (!%p139_p2), %v1711_v0  ;;  %v1868_v35 = vld [vmem:[%s2153_s2] ss:$0 sm:$0xff] (!%p139_p2) }
   0x7   : > { %1628 = vmatpush3.bf16.msra.mxu0 (!%p139_p2), %v1711_v0  ;;  %1700 = vmatpush3.bf16.msra.mxu1 (!%p139_p2), %v1711_v0 }
   0x8   : > { %1629 = vmatprep.subr.bf16.mxu0 (!%p139_p2), %v1712_v1  ;;  %1698 = vmatprep.subr.bf16.mxu1 (!%p139_p2), %v1712_v1 }
   0xb   : > { %1630 = vmatpush3.bf16.msra.mxu0 (!%p139_p2), %v1712_v1  ;;  %1701 = vmatpush3.bf16.msra.mxu1 (!%p139_p2), %v1712_v1 }
   0xc   : > { %1631 = vmatprep.subr.bf16.mxu0 (!%p139_p2), %v1713_v2  ;;  %1699 = vmatprep.subr.bf16.mxu1 (!%p139_p2), %v1713_v2 }
   0xd   : > { %s2156_s16 = smov (!%p163_p3, %s1390_s16), 127 }
   0xe   : > { %s1391_s21 = sshll.u32 %s2156_s16, 2 }
   0xf   : > { %s1799_s24 = scalar_lea.vmem %s2151_s0, %s1391_s21  ;;  %1632 = vmatpush3.bf16.msra.mxu0 %v1713_v2  ;;  %1702 = vmatpush3.bf16.msra.mxu1 %v1713_v2  ;;  %s1879_s29 = scalar_lea.vmem %s2154_s3, %s1391_s21 }
  0x10   : > { %v1714_v3 = vld [vmem:[%s1799_s24] sm:$0xff]   ;;  %v1716_v5 = vld [vmem:[%s1799_s24 + $0x8] sm:$0xff]   ;;  %v1718_v7 = vld [vmem:[%s1799_s24 + $0x10] sm:$0xff]  }
  0x11   : > { %v1715_v4 = vld [vmem:[%s1799_s24 + $0x80] sm:$0xff]   ;;  %1633 = vmatprep.mubr.msk.bf16.mxu0 %vm430_vm0, %v1714_v3  ;;  %v1717_v6 = vld [vmem:[%s1799_s24 + $0x88] sm:$0xff]   ;;  %v1719_v8 = vld [vmem:[%s1799_s24 + $0x90] sm:$0xff]  }
  0x12   : > { %1665 = vmatprep.mubr.msk.bf16.mxu1 %vm430_vm0, %v1715_v4  ;;  %1634 = vmatmul.mubr.msk.bf16.vlgmr.msra.gmra.mrb[0].mxu0 %vm430_vm0, %v1716_v5  ;;  %v1720_v9 = vld [vmem:[%s1799_s24 + $0x18] sm:$0xff]   ;;  %v1722_v11 = vld [vmem:[%s1799_s24 + $0x20] sm:$0xff]   ;;  %v1724_v13 = vld [vmem:[%s1799_s24 + $0x28] sm:$0xff]  }
  0x13   : > { %1666 = vmatmul.mubr.msk.bf16.vlgmr.msra.gmra.mrb[0].mxu1 %vm430_vm0, %v1717_v6  ;;  %1637 = vmatprep.mubr.msk.bf16.mxu0 %vm430_vm0, %v1718_v7  ;;  %v1721_v10 = vld [vmem:[%s1799_s24 + $0x98] sm:$0xff]   ;;  %v1723_v12 = vld [vmem:[%s1799_s24 + $0xa0] sm:$0xff]   ;;  %v1725_v14 = vld [vmem:[%s1799_s24 + $0xa8] sm:$0xff]  }
  0x14   : > { %1669 = vmatprep.mubr.msk.bf16.mxu1 %vm430_vm0, %v1719_v8  ;;  %v1726_v15 = vld [vmem:[%s1799_s24 + $0x30] sm:$0xff]   ;;  %v1728_v17 = vld [vmem:[%s1799_s24 + $0x38] sm:$0xff]   ;;  %v1730_v19 = vld [vmem:[%s1799_s24 + $0x40] sm:$0xff]  }
  0x15   : > { %v1727_v16 = vld [vmem:[%s1799_s24 + $0xb0] sm:$0xff]   ;;  %v1729_v18 = vld [vmem:[%s1799_s24 + $0xb8] sm:$0xff]   ;;  %v1731_v20 = vld [vmem:[%s1799_s24 + $0xc0] sm:$0xff]  }
  0x16   : > { %v1732_v21 = vld [vmem:[%s1799_s24 + $0x48] sm:$0xff]   ;;  %v1734_v23 = vld [vmem:[%s1799_s24 + $0x50] sm:$0xff]   ;;  %v1736_v25 = vld [vmem:[%s1799_s24 + $0x58] sm:$0xff]  }
  0x17   : > { %v1733_v22 = vld [vmem:[%s1799_s24 + $0xc8] sm:$0xff]   ;;  %v1735_v24 = vld [vmem:[%s1799_s24 + $0xd0] sm:$0xff]   ;;  %v1737_v26 = vld [vmem:[%s1799_s24 + $0xd8] sm:$0xff]  }
  0x18   : > { %v1738_v27 = vld [vmem:[%s1799_s24 + $0x60] sm:$0xff]   ;;  %v1740_v29 = vld [vmem:[%s1799_s24 + $0x68] sm:$0xff]   ;;  %v1742_v31 = vld [vmem:[%s1799_s24 + $0x70] sm:$0xff]  }
  0x19   : > { %v1739_v28 = vld [vmem:[%s1799_s24 + $0xe0] sm:$0xff]   ;;  %v1741_v30 = vld [vmem:[%s1799_s24 + $0xe8] sm:$0xff]   ;;  %v1743_v32 = vld [vmem:[%s1799_s24 + $0xf0] sm:$0xff]  }
  0x1a   : > { %1638 = vmatmul.mubr.msk.bf16.gmra.mrb[4].mxu0 %vm430_vm0, %v1720_v9  ;;  %v1744_v33 = vld [vmem:[%s1799_s24 + $0x78] sm:$0xff]  }
  0x1b   : > { %1670 = vmatmul.mubr.msk.bf16.gmra.mrb[4].mxu1 %vm430_vm0, %v1721_v10  ;;  %1641 = vmatprep.mubr.msk.bf16.mxu0 %vm430_vm0, %v1722_v11  ;;  %v1745_v34 = vld [vmem:[%s1799_s24 + $0xf8] sm:$0xff]  }
  0x1c   : > { %1673 = vmatprep.mubr.msk.bf16.mxu1 %vm430_vm0, %v1723_v12 }
  0x22   : > { %1642 = vmatmul.mubr.msk.bf16.gmra.mrb[8].mxu0 %vm430_vm0, %v1724_v13 }
  0x23   : > { %1674 = vmatmul.mubr.msk.bf16.gmra.mrb[8].mxu1 %vm430_vm0, %v1725_v14  ;;  %1645 = vmatprep.mubr.msk.bf16.mxu0 %vm430_vm0, %v1726_v15 }
  0x24   : > { %1677 = vmatprep.mubr.msk.bf16.mxu1 %vm430_vm0, %v1727_v16 }
  0x2a   : > { %1646 = vmatmul.mubr.msk.bf16.gmra.mrb[12].mxu0 %vm430_vm0, %v1728_v17 }
  0x2b   : > { %1678 = vmatmul.mubr.msk.bf16.gmra.mrb[12].mxu1 %vm430_vm0, %v1729_v18  ;;  %1649 = vmatprep.mubr.msk.bf16.mxu0 %vm430_vm0, %v1730_v19 }
  0x2c   : > { %1681 = vmatprep.mubr.msk.bf16.mxu1 %vm430_vm0, %v1731_v20 }
  0x32   : > { %1650 = vmatmul.mubr.msk.bf16.gmra.mrb[16].mxu0 %vm430_vm0, %v1732_v21 }
  0x33   : > { %1682 = vmatmul.mubr.msk.bf16.gmra.mrb[16].mxu1 %vm430_vm0, %v1733_v22  ;;  %1653 = vmatprep.mubr.msk.bf16.mxu0 %vm430_vm0, %v1734_v23 }
  0x34   : > { %1685 = vmatprep.mubr.msk.bf16.mxu1 %vm430_vm0, %v1735_v24 }
  0x3a   : > { %1654 = vmatmul.mubr.msk.bf16.gmra.mrb[20].mxu0 %vm430_vm0, %v1736_v25 }
  0x3b   : > { %1686 = vmatmul.mubr.msk.bf16.gmra.mrb[20].mxu1 %vm430_vm0, %v1737_v26  ;;  %1657 = vmatprep.mubr.msk.bf16.mxu0 %vm430_vm0, %v1738_v27 }
  0x3c   : > { %1689 = vmatprep.mubr.msk.bf16.mxu1 %vm430_vm0, %v1739_v28 }
  0x42   : > { %1658 = vmatmul.mubr.msk.bf16.gmra.mrb[24].mxu0 %vm430_vm0, %v1740_v29 }
  0x43   : > { %1690 = vmatmul.mubr.msk.bf16.gmra.mrb[24].mxu1 %vm430_vm0, %v1741_v30  ;;  %1661 = vmatprep.mubr.msk.bf16.mxu0 %vm430_vm0, %v1742_v31 }
  0x44   : > { %1693 = vmatprep.mubr.msk.bf16.mxu1 %vm430_vm0, %v1743_v32 }
  0x4a   : > { %1662 = vmatmul.mubr.msk.bf16.gmra.mrb[28].mxu0 %vm430_vm0, %v1744_v33 }
  0x4b   : > { %1694 = vmatmul.mubr.msk.bf16.gmra.mrb[28].mxu1 %vm430_vm0, %v1745_v34 }
  0xe5   : > { %v1635_v36 = vpop.f32.mrb[0].mxu0 }
  0xe6   : > { %v1667_v37 = vpop.f32.mrb[0].mxu1  ;;  %v570_v38 = vadd.f32 %v1635_v36, %v1868_v35  ;;  %v561_v40 = vpop.f32.mrb[1].mxu0 }
  0xe7   : > { %v698_v39 = vadd.f32 %v1667_v37, %v1868_v35  ;;  %v689_v41 = vpop.f32.mrb[1].mxu1  ;;  %v562_v42 = vadd.f32 %v1868_v35, %v561_v40  ;;  %v1636_v44 = vpop.f32.mrb[2].mxu0 }
  0xe8   : > { %v690_v43 = vadd.f32 %v1868_v35, %v689_v41  ;;  %v1668_v45 = vpop.f32.mrb[2].mxu1  ;;  %vm818_vm2 = vcmp.ge.f32.partialorder %v570_v38, 0.0  ;;  %v882_v46 = vmul.f32 0.2, %v570_v38  ;;  %v573_v52 = vadd.f32 %v1636_v44, %v1868_v35  ;;  %v564_v54 = vpop.f32.mrb[3].mxu0 }
  0xe9   : > { %vm850_vm3 = vcmp.ge.f32.partialorder %v698_v39, 0.0  ;;  %v914_v47 = vmul.f32 0.2, %v698_v39  ;;  %vm816_vm4 = vcmp.ge.f32.partialorder %v562_v42, 0.0  ;;  %v880_v48 = vmul.f32 0.2, %v562_v42 }
  0xea   : > { %vm848_vm5 = vcmp.ge.f32.partialorder %v690_v43, 0.0  ;;  %v912_v49 = vmul.f32 0.2, %v690_v43  ;;  %v946_v50 = vsel %vm818_vm2, %v570_v38, %v882_v46  ;;  %v701_v53 = vadd.f32 %v1668_v45, %v1868_v35  ;;  %v692_v55 = vpop.f32.mrb[3].mxu1 }
  0xeb   : > { %v978_v51 = vsel %vm850_vm3, %v698_v39, %v914_v47  ;;  %v1530_v56 = vpack.c.bf16 %v946_v50, %v946_v50  ;;  %v944_v58 = vsel %vm816_vm4, %v562_v42, %v880_v48  ;;  %vm819_vm6 = vcmp.ge.f32.partialorder %v573_v52, 0.0 }
  0xec   : > { %v1562_v57 = vpack.c.bf16 %v978_v51, %v978_v51  ;;  %v976_v59 = vsel %vm848_vm5, %v690_v43, %v912_v49  ;;  %v1528_v60 = vpack.c.bf16 %v944_v58, %v944_v58  ;;  %v883_v62 = vmul.f32 0.2, %v573_v52 }
  0xed   : > { %v1560_v61 = vpack.c.bf16 %v976_v59, %v976_v59  ;;  %1267 = vst.msk [vmem:[%s1879_s29 + $0x8] sm:$0xf] %vm1264_vm1, %v1530_v56  ;;  %vm851_vm7 = vcmp.ge.f32.partialorder %v701_v53, 0.0  ;;  %v915_v63 = vmul.f32 0.2, %v701_v53  ;;  %v565_v0 = vadd.f32 %v1868_v35, %v564_v54  ;;  %v1639_v2 = vpop.f32.mrb[4].mxu0 }
  0xee   : > { %1299 = vst.msk [vmem:[%s1879_s29 + $0x88] sm:$0xf] %vm1264_vm1, %v1562_v57  ;;  %v693_v1 = vadd.f32 %v1868_v35, %v692_v55  ;;  %v1671_v3 = vpop.f32.mrb[4].mxu1  ;;  %1265 = vst.msk [vmem:[%s1879_s29] sm:$0xf] %vm1264_vm1, %v1528_v60  ;;  %v947_v4 = vsel %vm819_vm6, %v573_v52, %v883_v62  ;;  %v586_v5 = vadd.f32 %v1639_v2, %v1868_v35  ;;  %v577_v7 = vpop.f32.mrb[5].mxu0 }
  0xef   : > { %1297 = vst.msk [vmem:[%s1879_s29 + $0x80] sm:$0xf] %vm1264_vm1, %v1560_v61  ;;  %v714_v6 = vadd.f32 %v1671_v3, %v1868_v35  ;;  %v705_v8 = vpop.f32.mrb[5].mxu1  ;;  %v1531_v9 = vpack.c.bf16 %v947_v4, %v947_v4  ;;  %v979_v10 = vsel %vm851_vm7, %v701_v53, %v915_v63  ;;  %vm817_vm8 = vcmp.ge.f32.partialorder %v565_v0, 0.0  ;;  %v1640_v12 = vpop.f32.mrb[6].mxu0 }
  0xf0   : > { %v881_v11 = vmul.f32 0.2, %v565_v0  ;;  %v1672_v13 = vpop.f32.mrb[6].mxu1  ;;  %v1563_v14 = vpack.c.bf16 %v979_v10, %v979_v10  ;;  %vm849_vm9 = vcmp.ge.f32.partialorder %v693_v1, 0.0  ;;  %v913_v15 = vmul.f32 0.2, %v693_v1 }
  0xf1   : > { %vm822_vm10 = vcmp.ge.f32.partialorder %v586_v5, 0.0  ;;  %v580_v16 = vpop.f32.mrb[7].mxu0  ;;  %v708_v17 = vpop.f32.mrb[7].mxu1  ;;  %1268 = vst.msk [vmem:[%s1879_s29 + $0xc] sm:$0xf] %vm1264_vm1, %v1531_v9  ;;  %vm854_vm11 = vcmp.ge.f32.partialorder %v714_v6, 0.0  ;;  %v578_v23 = vadd.f32 %v1868_v35, %v577_v7  ;;  %v706_v24 = vadd.f32 %v1868_v35, %v705_v8 }
  0xf2   : > { %v945_v18 = vsel %vm817_vm8, %v565_v0, %v881_v11  ;;  %v886_v19 = vmul.f32 0.2, %v586_v5  ;;  %v918_v20 = vmul.f32 0.2, %v714_v6  ;;  %1300 = vst.msk [vmem:[%s1879_s29 + $0x8c] sm:$0xf] %vm1264_vm1, %v1563_v14  ;;  %v977_v22 = vsel %vm849_vm9, %v693_v1, %v913_v15 }
  0xf3   : > { %v1529_v21 = vpack.c.bf16 %v945_v18, %v945_v18  ;;  %v1561_v25 = vpack.c.bf16 %v977_v22, %v977_v22  ;;  %v589_v28 = vadd.f32 %v1640_v12, %v1868_v35  ;;  %vm820_vm12 = vcmp.ge.f32.partialorder %v578_v23, 0.0 }
  0xf4   : > { %v950_v26 = vsel %vm822_vm10, %v586_v5, %v886_v19  ;;  %v982_v27 = vsel %vm854_vm11, %v714_v6, %v918_v20  ;;  %v884_v31 = vmul.f32 0.2, %v578_v23  ;;  %vm852_vm13 = vcmp.ge.f32.partialorder %v706_v24, 0.0 }
  0xf5   : > { %1266 = vst.msk [vmem:[%s1879_s29 + $0x4] sm:$0xf] %vm1264_vm1, %v1529_v21  ;;  %v1534_v29 = vpack.c.bf16 %v950_v26, %v950_v26  ;;  %v1566_v30 = vpack.c.bf16 %v982_v27, %v982_v27  ;;  %1298 = vst.msk [vmem:[%s1879_s29 + $0x84] sm:$0xf] %vm1264_vm1, %v1561_v25  ;;  %v916_v32 = vmul.f32 0.2, %v706_v24  ;;  %v717_v36 = vadd.f32 %v1672_v13, %v1868_v35 }
  0xf6   : > { %vm823_vm14 = vcmp.ge.f32.partialorder %v589_v28, 0.0  ;;  %v887_v33 = vmul.f32 0.2, %v589_v28  ;;  %v948_v34 = vsel %vm820_vm12, %v578_v23, %v884_v31  ;;  %v581_v37 = vadd.f32 %v1868_v35, %v580_v16  ;;  %v1643_v39 = vpop.f32.mrb[8].mxu0  ;;  %v1675_v40 = vpop.f32.mrb[8].mxu1 }
  0xf7   : > { %1271 = vst.msk [vmem:[%s1879_s29 + $0x18] sm:$0xf] %vm1264_vm1, %v1534_v29  ;;  %1303 = vst.msk [vmem:[%s1879_s29 + $0x98] sm:$0xf] %vm1264_vm1, %v1566_v30  ;;  %v709_v38 = vadd.f32 %v1868_v35, %v708_v17  ;;  %v1532_v41 = vpack.c.bf16 %v948_v34, %v948_v34  ;;  %v980_v42 = vsel %vm852_vm13, %v706_v24, %v916_v32  ;;  %v593_v45 = vpop.f32.mrb[9].mxu0  ;;  %v721_v46 = vpop.f32.mrb[9].mxu1 }
  0xf8   : > { %v951_v43 = vsel %vm823_vm14, %v589_v28, %v887_v33  ;;  %v602_v44 = vadd.f32 %v1643_v39, %v1868_v35  ;;  %v1564_v47 = vpack.c.bf16 %v980_v42, %v980_v42  ;;  %vm855_vm15 = vcmp.ge.f32.partialorder %v717_v36, 0.0  ;;  %v1644_v50 = vpop.f32.mrb[10].mxu0  ;;  %v1676_v51 = vpop.f32.mrb[10].mxu1 }
  0xf9   : > { %v1535_v48 = vpack.c.bf16 %v951_v43, %v951_v43  ;;  %v919_v49 = vmul.f32 0.2, %v717_v36  ;;  %1269 = vst.msk [vmem:[%s1879_s29 + $0x10] sm:$0xf] %vm1264_vm1, %v1532_v41  ;;  %vm821_vm0 = vcmp.ge.f32.partialorder %v581_v37, 0.0  ;;  %vm853_vm2 = vcmp.ge.f32.partialorder %v709_v38, 0.0 }
  0xfa   : > { %v885_v52 = vmul.f32 0.2, %v581_v37  ;;  %v917_v53 = vmul.f32 0.2, %v709_v38  ;;  %1301 = vst.msk [vmem:[%s1879_s29 + $0x90] sm:$0xf] %vm1264_vm1, %v1564_v47  ;;  %v730_v56 = vadd.f32 %v1675_v40, %v1868_v35  ;;  %v594_v62 = vadd.f32 %v1868_v35, %v593_v45 }
  0xfb   : > { %1272 = vst.msk [vmem:[%s1879_s29 + $0x1c] sm:$0xf] %vm1264_vm1, %v1535_v48  ;;  %v983_v54 = vsel %vm855_vm15, %v717_v36, %v919_v49  ;;  %vm826_vm3 = vcmp.ge.f32.partialorder %v602_v44, 0.0  ;;  %v890_v55 = vmul.f32 0.2, %v602_v44  ;;  %v596_v57 = vpop.f32.mrb[11].mxu0  ;;  %v722_v6 = vadd.f32 %v1868_v35, %v721_v46 }
  0xfc   : > { %v724_v58 = vpop.f32.mrb[11].mxu1  ;;  %v1567_v59 = vpack.c.bf16 %v983_v54, %v983_v54  ;;  %v949_v60 = vsel %vm821_vm0, %v581_v37, %v885_v52  ;;  %v981_v61 = vsel %vm853_vm2, %v709_v38, %v917_v53  ;;  %vm858_vm4 = vcmp.ge.f32.partialorder %v730_v56, 0.0 }
  0xfd   : > { %v1533_v63 = vpack.c.bf16 %v949_v60, %v949_v60  ;;  %v1565_v0 = vpack.c.bf16 %v981_v61, %v981_v61  ;;  %v954_v1 = vsel %vm826_vm3, %v602_v44, %v890_v55  ;;  %v922_v3 = vmul.f32 0.2, %v730_v56  ;;  %v1647_v5 = vpop.f32.mrb[12].mxu0 }
  0xfe   : > { %1304 = vst.msk [vmem:[%s1879_s29 + $0x9c] sm:$0xf] %vm1264_vm1, %v1567_v59  ;;  %v1538_v2 = vpack.c.bf16 %v954_v1, %v954_v1  ;;  %vm824_vm5 = vcmp.ge.f32.partialorder %v594_v62, 0.0  ;;  %v888_v4 = vmul.f32 0.2, %v594_v62  ;;  %v605_v7 = vadd.f32 %v1644_v50, %v1868_v35  ;;  %v1679_v10 = vpop.f32.mrb[12].mxu1 }
  0xff   : > { %1270 = vst.msk [vmem:[%s1879_s29 + $0x14] sm:$0xf] %vm1264_vm1, %v1533_v63  ;;  %1302 = vst.msk [vmem:[%s1879_s29 + $0x94] sm:$0xf] %vm1264_vm1, %v1565_v0  ;;  %v733_v8 = vadd.f32 %v1676_v51, %v1868_v35  ;;  %v597_v9 = vadd.f32 %v1868_v35, %v596_v57  ;;  %v609_v11 = vpop.f32.mrb[13].mxu0  ;;  %v986_v12 = vsel %vm858_vm4, %v730_v56, %v922_v3  ;;  %v737_v16 = vpop.f32.mrb[13].mxu1 }
 0x100   : > { %1275 = vst.msk [vmem:[%s1879_s29 + $0x28] sm:$0xf] %vm1264_vm1, %v1538_v2  ;;  %v952_v13 = vsel %vm824_vm5, %v594_v62, %v888_v4  ;;  %v725_v14 = vadd.f32 %v1868_v35, %v724_v58  ;;  %v618_v15 = vadd.f32 %v1647_v5, %v1868_v35  ;;  %v1648_v17 = vpop.f32.mrb[14].mxu0  ;;  %v1570_v18 = vpack.c.bf16 %v986_v12, %v986_v12  ;;  %v1680_v21 = vpop.f32.mrb[14].mxu1 }
 0x101   : > { %v1536_v19 = vpack.c.bf16 %v952_v13, %v952_v13  ;;  %vm856_vm6 = vcmp.ge.f32.partialorder %v722_v6, 0.0  ;;  %v920_v20 = vmul.f32 0.2, %v722_v6  ;;  %v612_v22 = vpop.f32.mrb[15].mxu0  ;;  %vm827_vm7 = vcmp.ge.f32.partialorder %v605_v7, 0.0  ;;  %v740_v27 = vpop.f32.mrb[15].mxu1 }
 0x102   : > { %v891_v23 = vmul.f32 0.2, %v605_v7  ;;  %vm859_vm8 = vcmp.ge.f32.partialorder %v733_v8, 0.0  ;;  %v923_v24 = vmul.f32 0.2, %v733_v8  ;;  %vm825_vm9 = vcmp.ge.f32.partialorder %v597_v9, 0.0 }
 0x103   : > { %1307 = vst.msk [vmem:[%s1879_s29 + $0xa8] sm:$0xf] %vm1264_vm1, %v1570_v18  ;;  %1273 = vst.msk [vmem:[%s1879_s29 + $0x20] sm:$0xf] %vm1264_vm1, %v1536_v19  ;;  %v984_v25 = vsel %vm856_vm6, %v722_v6, %v920_v20  ;;  %v889_v26 = vmul.f32 0.2, %v597_v9  ;;  %v746_v39 = vadd.f32 %v1679_v10, %v1868_v35  ;;  %v610_v43 = vadd.f32 %v1868_v35, %v609_v11 }
 0x104   : > { %vm857_vm10 = vcmp.ge.f32.partialorder %v725_v14, 0.0  ;;  %v1568_v28 = vpack.c.bf16 %v984_v25, %v984_v25  ;;  %v955_v29 = vsel %vm827_vm7, %v605_v7, %v891_v23  ;;  %v987_v30 = vsel %vm859_vm8, %v733_v8, %v923_v24 }
 0x105   : > { %v921_v31 = vmul.f32 0.2, %v725_v14  ;;  %v1539_v32 = vpack.c.bf16 %v955_v29, %v955_v29  ;;  %v1571_v33 = vpack.c.bf16 %v987_v30, %v987_v30  ;;  %v953_v34 = vsel %vm825_vm9, %v597_v9, %v889_v26  ;;  %v1651_v40 = vpop.f32.mrb[16].mxu0 }
 0x106   : > { %vm830_vm11 = vcmp.ge.f32.partialorder %v618_v15, 0.0  ;;  %1305 = vst.msk [vmem:[%s1879_s29 + $0xa0] sm:$0xf] %vm1264_vm1, %v1568_v28  ;;  %v1537_v36 = vpack.c.bf16 %v953_v34, %v953_v34  ;;  %v894_v38 = vmul.f32 0.2, %v618_v15  ;;  %v1683_v41 = vpop.f32.mrb[16].mxu1  ;;  %v738_v44 = vadd.f32 %v1868_v35, %v737_v16 }
 0x107   : > { %v985_v37 = vsel %vm857_vm10, %v725_v14, %v921_v31  ;;  %1276 = vst.msk [vmem:[%s1879_s29 + $0x2c] sm:$0xf] %vm1264_vm1, %v1539_v32  ;;  %1308 = vst.msk [vmem:[%s1879_s29 + $0xac] sm:$0xf] %vm1264_vm1, %v1571_v33  ;;  %v621_v45 = vadd.f32 %v1648_v17, %v1868_v35  ;;  %v625_v46 = vpop.f32.mrb[17].mxu0  ;;  %v753_v47 = vpop.f32.mrb[17].mxu1  ;;  %v749_v50 = vadd.f32 %v1680_v21, %v1868_v35 }
 0x108   : > { %v1569_v42 = vpack.c.bf16 %v985_v37, %v985_v37  ;;  %1274 = vst.msk [vmem:[%s1879_s29 + $0x24] sm:$0xf] %vm1264_vm1, %v1537_v36  ;;  %v958_v48 = vsel %vm830_vm11, %v618_v15, %v894_v38  ;;  %vm862_vm12 = vcmp.ge.f32.partialorder %v746_v39, 0.0  ;;  %v926_v49 = vmul.f32 0.2, %v746_v39  ;;  %v1955_v51 = vpop.f32.mrb[18].mxu0 }
 0x109   : > { %v1957_v52 = vpop.f32.mrb[18].mxu1  ;;  %v1542_v53 = vpack.c.bf16 %v958_v48, %v958_v48  ;;  %vm828_vm13 = vcmp.ge.f32.partialorder %v610_v43, 0.0  ;;  %v892_v54 = vmul.f32 0.2, %v610_v43  ;;  %vm860_vm14 = vcmp.ge.f32.partialorder %v738_v44, 0.0  ;;  %v1961_v55 = vpop.f32.mrb[19].mxu0 }
 0x10a   : > { %1306 = vst.msk [vmem:[%s1879_s29 + $0xa4] sm:$0xf] %vm1264_vm1, %v1569_v42  ;;  %v1963_v56 = vpop.f32.mrb[19].mxu1  ;;  %v990_v57 = vsel %vm862_vm12, %v746_v39, %v926_v49  ;;  %v924_v58 = vmul.f32 0.2, %v738_v44  ;;  %vm831_vm15 = vcmp.ge.f32.partialorder %v621_v45, 0.0  ;;  %v613_v2 = vadd.f32 %v1868_v35, %v612_v22 }
 0x10b   : > { %v895_v59 = vmul.f32 0.2, %v621_v45  ;;  %1279 = vst.msk [vmem:[%s1879_s29 + $0x38] sm:$0xf] %vm1264_vm1, %v1542_v53  ;;  %v1574_v60 = vpack.c.bf16 %v990_v57, %v990_v57  ;;  %v956_v61 = vsel %vm828_vm13, %v610_v43, %v892_v54  ;;  %vm863_vm0 = vcmp.ge.f32.partialorder %v749_v50, 0.0 }
 0x10c   : > { %v927_v62 = vmul.f32 0.2, %v749_v50  ;;  %v1540_v63 = vpack.c.bf16 %v956_v61, %v956_v61  ;;  %v988_v0 = vsel %vm860_vm14, %v738_v44, %v924_v58  ;;  %v741_v6 = vadd.f32 %v1868_v35, %v740_v27 }
 0x10d   : > { %v959_v1 = vsel %vm831_vm15, %v621_v45, %v895_v59  ;;  %1311 = vst.msk [vmem:[%s1879_s29 + $0xb8] sm:$0xf] %vm1264_vm1, %v1574_v60  ;;  %v1572_v3 = vpack.c.bf16 %v988_v0, %v988_v0  ;;  %vm829_vm2 = vcmp.ge.f32.partialorder %v613_v2, 0.0  ;;  %v893_v8 = vmul.f32 0.2, %v613_v2  ;;  %v1655_v10 = vpop.f32.mrb[20].mxu0 }
 0x10e   : > { %v1543_v4 = vpack.c.bf16 %v959_v1, %v959_v1  ;;  %v991_v5 = vsel %vm863_vm0, %v749_v50, %v927_v62  ;;  %1277 = vst.msk [vmem:[%s1879_s29 + $0x30] sm:$0xf] %vm1264_vm1, %v1540_v63  ;;  %v634_v9 = vadd.f32 %v1651_v40, %v1868_v35  ;;  %v1687_v11 = vpop.f32.mrb[20].mxu1  ;;  %vm861_vm3 = vcmp.ge.f32.partialorder %v741_v6, 0.0  ;;  %v641_v15 = vpop.f32.mrb[21].mxu0 }
 0x10f   : > { %v1575_v7 = vpack.c.bf16 %v991_v5, %v991_v5  ;;  %1309 = vst.msk [vmem:[%s1879_s29 + $0xb0] sm:$0xf] %vm1264_vm1, %v1572_v3  ;;  %v925_v12 = vmul.f32 0.2, %v741_v6  ;;  %v762_v13 = vadd.f32 %v1683_v41, %v1868_v35  ;;  %v626_v14 = vadd.f32 %v1868_v35, %v625_v46  ;;  %v1980_v16 = vpop.f32.mrb[21].mxu1  ;;  %v1985_v20 = vpop.f32.mrb[22].mxu0 }
 0x110   : > { %1280 = vst.msk [vmem:[%s1879_s29 + $0x3c] sm:$0xf] %vm1264_vm1, %v1543_v4  ;;  %v957_v17 = vsel %vm829_vm2, %v613_v2, %v893_v8  ;;  %vm834_vm4 = vcmp.ge.f32.partialorder %v634_v9, 0.0  ;;  %v898_v18 = vmul.f32 0.2, %v634_v9  ;;  %v754_v19 = vadd.f32 %v1868_v35, %v753_v47  ;;  %v1987_v21 = vpop.f32.mrb[22].mxu1 }
 0x111   : > { %1312 = vst.msk [vmem:[%s1879_s29 + $0xbc] sm:$0xf] %vm1264_vm1, %v1575_v7  ;;  %v1541_v22 = vpack.c.bf16 %v957_v17, %v957_v17  ;;  %v989_v23 = vsel %vm861_vm3, %v741_v6, %v925_v12  ;;  %vm866_vm5 = vcmp.ge.f32.partialorder %v762_v13, 0.0  ;;  %v930_v24 = vmul.f32 0.2, %v762_v13  ;;  %v1989_v25 = vpop.f32.mrb[23].mxu0 }
 0x112   : > { %v1991_v26 = vpop.f32.mrb[23].mxu1  ;;  %v1573_v27 = vpack.c.bf16 %v989_v23, %v989_v23  ;;  %v962_v28 = vsel %vm834_vm4, %v634_v9, %v898_v18  ;;  %vm832_vm6 = vcmp.ge.f32.partialorder %v626_v14, 0.0  ;;  %v896_v29 = vmul.f32 0.2, %v626_v14 }
 0x113   : > { %1278 = vst.msk [vmem:[%s1879_s29 + $0x34] sm:$0xf] %vm1264_vm1, %v1541_v22  ;;  %v1546_v30 = vpack.c.bf16 %v962_v28, %v962_v28  ;;  %v994_v31 = vsel %vm866_vm5, %v762_v13, %v930_v24  ;;  %vm864_vm7 = vcmp.ge.f32.partialorder %v754_v19, 0.0  ;;  %v928_v32 = vmul.f32 0.2, %v754_v19 }
 0x114   : > { %1310 = vst.msk [vmem:[%s1879_s29 + $0xb4] sm:$0xf] %vm1264_vm1, %v1573_v27  ;;  %v1578_v33 = vpack.c.bf16 %v994_v31, %v994_v31  ;;  %v960_v34 = vsel %vm832_vm6, %v626_v14, %v896_v29  ;;  %v637_v36 = vadd.f32 %v1955_v51, %v1868_v35  ;;  %v765_v37 = vadd.f32 %v1957_v52, %v1868_v35 }
 0x115   : > { %1283 = vst.msk [vmem:[%s1879_s29 + $0x48] sm:$0xf] %vm1264_vm1, %v1546_v30  ;;  %v1544_v38 = vpack.c.bf16 %v960_v34, %v960_v34  ;;  %v992_v39 = vsel %vm864_vm7, %v754_v19, %v928_v32  ;;  %v629_v40 = vadd.f32 %v1868_v35, %v1961_v55  ;;  %v757_v41 = vadd.f32 %v1868_v35, %v1963_v56  ;;  %v2009_v44 = vpop.f32.mrb[24].mxu0 }
 0x116   : > { %1315 = vst.msk [vmem:[%s1879_s29 + $0xc8] sm:$0xf] %vm1264_vm1, %v1578_v33  ;;  %v1576_v42 = vpack.c.bf16 %v992_v39, %v992_v39  ;;  %vm835_vm8 = vcmp.ge.f32.partialorder %v637_v36, 0.0  ;;  %v899_v43 = vmul.f32 0.2, %v637_v36  ;;  %vm867_vm9 = vcmp.ge.f32.partialorder %v765_v37, 0.0 }
 0x117   : > { %v2011_v45 = vpop.f32.mrb[24].mxu1  ;;  %1281 = vst.msk [vmem:[%s1879_s29 + $0x40] sm:$0xf] %vm1264_vm1, %v1544_v38  ;;  %v931_v46 = vmul.f32 0.2, %v765_v37  ;;  %vm833_vm10 = vcmp.ge.f32.partialorder %v629_v40, 0.0  ;;  %v650_v50 = vadd.f32 %v1655_v10, %v1868_v35  ;;  %v778_v51 = vadd.f32 %v1687_v11, %v1868_v35 }
 0x118   : > { %v897_v47 = vmul.f32 0.2, %v629_v40  ;;  %vm865_vm11 = vcmp.ge.f32.partialorder %v757_v41, 0.0  ;;  %1313 = vst.msk [vmem:[%s1879_s29 + $0xc0] sm:$0xf] %vm1264_vm1, %v1576_v42  ;;  %v963_v48 = vsel %vm835_vm8, %v637_v36, %v899_v43  ;;  %v2019_v52 = vpop.f32.mrb[25].mxu0  ;;  %v642_v57 = vadd.f32 %v1868_v35, %v641_v15 }
 0x119   : > { %v929_v49 = vmul.f32 0.2, %v757_v41  ;;  %v2021_v53 = vpop.f32.mrb[25].mxu1  ;;  %v1547_v54 = vpack.c.bf16 %v963_v48, %v963_v48  ;;  %v995_v55 = vsel %vm867_vm9, %v765_v37, %v931_v46  ;;  %v2025_v58 = vpop.f32.mrb[26].mxu0  ;;  %vm838_vm12 = vcmp.ge.f32.partialorder %v650_v50, 0.0 }
 0x11a   : > { %v961_v56 = vsel %vm833_vm10, %v629_v40, %v897_v47  ;;  %v2027_v59 = vpop.f32.mrb[26].mxu1  ;;  %v1579_v60 = vpack.c.bf16 %v995_v55, %v995_v55  ;;  %v2030_v63 = vpop.f32.mrb[27].mxu0  ;;  %v902_v2 = vmul.f32 0.2, %v650_v50  ;;  %vm870_vm13 = vcmp.ge.f32.partialorder %v778_v51, 0.0 }
 0x11b   : > { %v1545_v61 = vpack.c.bf16 %v961_v56, %v961_v56  ;;  %v993_v62 = vsel %vm865_vm11, %v757_v41, %v929_v49  ;;  %v2032_v0 = vpop.f32.mrb[27].mxu1  ;;  %1284 = vst.msk [vmem:[%s1879_s29 + $0x4c] sm:$0xf] %vm1264_vm1, %v1547_v54  ;;  %v934_v3 = vmul.f32 0.2, %v778_v51  ;;  %vm836_vm14 = vcmp.ge.f32.partialorder %v642_v57, 0.0 }
 0x11c   : > { %v1577_v1 = vpack.c.bf16 %v993_v62, %v993_v62  ;;  %1316 = vst.msk [vmem:[%s1879_s29 + $0xcc] sm:$0xf] %vm1264_vm1, %v1579_v60  ;;  %v900_v4 = vmul.f32 0.2, %v642_v57  ;;  %v770_v5 = vadd.f32 %v1868_v35, %v1980_v16  ;;  %v653_v6 = vadd.f32 %v1985_v20, %v1868_v35 }
 0x11d   : > { %1282 = vst.msk [vmem:[%s1879_s29 + $0x44] sm:$0xf] %vm1264_vm1, %v1545_v61  ;;  %v966_v7 = vsel %vm838_vm12, %v650_v50, %v902_v2  ;;  %v998_v8 = vsel %vm870_vm13, %v778_v51, %v934_v3  ;;  %v781_v9 = vadd.f32 %v1987_v21, %v1868_v35  ;;  %v645_v10 = vadd.f32 %v1868_v35, %v1989_v25  ;;  %v2050_v14 = vpop.f32.mrb[28].mxu0 }
 0x11e   : > { %1314 = vst.msk [vmem:[%s1879_s29 + $0xc4] sm:$0xf] %vm1264_vm1, %v1577_v1  ;;  %v1550_v11 = vpack.c.bf16 %v966_v7, %v966_v7  ;;  %v1582_v12 = vpack.c.bf16 %v998_v8, %v998_v8  ;;  %v964_v13 = vsel %vm836_vm14, %v642_v57, %v900_v4  ;;  %vm868_vm15 = vcmp.ge.f32.partialorder %v770_v5, 0.0  ;;  %v2052_v15 = vpop.f32.mrb[28].mxu1  ;;  %v2054_v19 = vpop.f32.mrb[29].mxu0 }
 0x11f   : > { %v1548_v16 = vpack.c.bf16 %v964_v13, %v964_v13  ;;  %v932_v17 = vmul.f32 0.2, %v770_v5  ;;  %vm839_vm0 = vcmp.ge.f32.partialorder %v653_v6, 0.0  ;;  %v903_v18 = vmul.f32 0.2, %v653_v6  ;;  %v2066_v27 = vpop.f32.mrb[29].mxu1 }
 0x120   : > { %1287 = vst.msk [vmem:[%s1879_s29 + $0x58] sm:$0xf] %vm1264_vm1, %v1550_v11  ;;  %1319 = vst.msk [vmem:[%s1879_s29 + $0xd8] sm:$0xf] %vm1264_vm1, %v1582_v12  ;;  %vm871_vm2 = vcmp.ge.f32.partialorder %v781_v9, 0.0  ;;  %vm837_vm3 = vcmp.ge.f32.partialorder %v645_v10, 0.0  ;;  %v773_v24 = vadd.f32 %v1868_v35, %v1991_v26  ;;  %v666_v25 = vadd.f32 %v2009_v44, %v1868_v35 }
 0x121   : > { %v935_v20 = vmul.f32 0.2, %v781_v9  ;;  %v901_v21 = vmul.f32 0.2, %v645_v10  ;;  %1285 = vst.msk [vmem:[%s1879_s29 + $0x50] sm:$0xf] %vm1264_vm1, %v1548_v16  ;;  %v996_v22 = vsel %vm868_vm15, %v770_v5, %v932_v17  ;;  %v967_v23 = vsel %vm839_vm0, %v653_v6, %v903_v18 }
 0x122   : > { %v2068_v28 = vpop.f32.mrb[30].mxu0  ;;  %v1580_v29 = vpack.c.bf16 %v996_v22, %v996_v22  ;;  %v1551_v30 = vpack.c.bf16 %v967_v23, %v967_v23  ;;  %v2070_v33 = vpop.f32.mrb[30].mxu1  ;;  %vm869_vm4 = vcmp.ge.f32.partialorder %v773_v24, 0.0  ;;  %v933_v37 = vmul.f32 0.2, %v773_v24 }
 0x123   : > { %v999_v31 = vsel %vm871_vm2, %v781_v9, %v935_v20  ;;  %v965_v32 = vsel %vm837_vm3, %v645_v10, %v901_v21  ;;  %v2072_v34 = vpop.f32.mrb[31].mxu0  ;;  %v2074_v38 = vpop.f32.mrb[31].mxu1  ;;  %vm842_vm5 = vcmp.ge.f32.partialorder %v666_v25, 0.0  ;;  %v906_v39 = vmul.f32 0.2, %v666_v25 }
 0x124   : > { %v1583_v36 = vpack.c.bf16 %v999_v31, %v999_v31  ;;  %v1549_v26 = vpack.c.bf16 %v965_v32, %v965_v32  ;;  %1317 = vst.msk [vmem:[%s1879_s29 + $0xd0] sm:$0xf] %vm1264_vm1, %v1580_v29  ;;  %1288 = vst.msk [vmem:[%s1879_s29 + $0x5c] sm:$0xf] %vm1264_vm1, %v1551_v30  ;;  %v794_v40 = vadd.f32 %v2011_v45, %v1868_v35 }
 0x125   : > { %v658_v41 = vadd.f32 %v1868_v35, %v2019_v52  ;;  %v997_v42 = vsel %vm869_vm4, %v773_v24, %v933_v37  ;;  %v786_v43 = vadd.f32 %v1868_v35, %v2021_v53  ;;  %v669_v44 = vadd.f32 %v2025_v58, %v1868_v35 }
 0x126   : > { %1320 = vst.msk [vmem:[%s1879_s29 + $0xdc] sm:$0xf] %vm1264_vm1, %v1583_v36  ;;  %1286 = vst.msk [vmem:[%s1879_s29 + $0x54] sm:$0xf] %vm1264_vm1, %v1549_v26  ;;  %v797_v46 = vadd.f32 %v2027_v59, %v1868_v35  ;;  %v1581_v45 = vpack.c.bf16 %v997_v42, %v997_v42  ;;  %v970_v47 = vsel %vm842_vm5, %v666_v25, %v906_v39  ;;  %vm874_vm6 = vcmp.ge.f32.partialorder %v794_v40, 0.0 }
 0x127   : > { %v938_v48 = vmul.f32 0.2, %v794_v40  ;;  %v1554_v49 = vpack.c.bf16 %v970_v47, %v970_v47  ;;  %vm840_vm7 = vcmp.ge.f32.partialorder %v658_v41, 0.0  ;;  %v904_v50 = vmul.f32 0.2, %v658_v41 }
 0x128   : > { %vm872_vm8 = vcmp.ge.f32.partialorder %v786_v43, 0.0  ;;  %1318 = vst.msk [vmem:[%s1879_s29 + $0xd4] sm:$0xf] %vm1264_vm1, %v1581_v45  ;;  %v936_v52 = vmul.f32 0.2, %v786_v43  ;;  %vm843_vm9 = vcmp.ge.f32.partialorder %v669_v44, 0.0  ;;  %v661_v60 = vadd.f32 %v1868_v35, %v2030_v63 }
 0x129   : > { %v1002_v51 = vsel %vm874_vm6, %v794_v40, %v938_v48  ;;  %v907_v53 = vmul.f32 0.2, %v669_v44  ;;  %1291 = vst.msk [vmem:[%s1879_s29 + $0x68] sm:$0xf] %vm1264_vm1, %v1554_v49  ;;  %v968_v55 = vsel %vm840_vm7, %v658_v41, %v904_v50  ;;  %vm875_vm10 = vcmp.ge.f32.partialorder %v797_v46, 0.0 }
 0x12a   : > { %v1586_v54 = vpack.c.bf16 %v1002_v51, %v1002_v51  ;;  %v939_v56 = vmul.f32 0.2, %v797_v46  ;;  %v1552_v57 = vpack.c.bf16 %v968_v55, %v968_v55  ;;  %v1000_v58 = vsel %vm872_vm8, %v786_v43, %v936_v52 }
 0x12b   : > { %v971_v59 = vsel %vm843_vm9, %v669_v44, %v907_v53  ;;  %v1584_v61 = vpack.c.bf16 %v1000_v58, %v1000_v58  ;;  %v789_v2 = vadd.f32 %v1868_v35, %v2032_v0  ;;  %vm841_vm11 = vcmp.ge.f32.partialorder %v661_v60, 0.0 }
 0x12c   : > { %1323 = vst.msk [vmem:[%s1879_s29 + $0xe8] sm:$0xf] %vm1264_vm1, %v1586_v54  ;;  %v1555_v62 = vpack.c.bf16 %v971_v59, %v971_v59  ;;  %v1003_v1 = vsel %vm875_vm10, %v797_v46, %v939_v56  ;;  %1289 = vst.msk [vmem:[%s1879_s29 + $0x60] sm:$0xf] %vm1264_vm1, %v1552_v57  ;;  %v905_v4 = vmul.f32 0.2, %v661_v60  ;;  %v682_v5 = vadd.f32 %v2050_v14, %v1868_v35 }
 0x12d   : > { %v1587_v3 = vpack.c.bf16 %v1003_v1, %v1003_v1  ;;  %1321 = vst.msk [vmem:[%s1879_s29 + $0xe0] sm:$0xf] %vm1264_vm1, %v1584_v61  ;;  %vm873_vm12 = vcmp.ge.f32.partialorder %v789_v2, 0.0  ;;  %v937_v63 = vmul.f32 0.2, %v789_v2  ;;  %v810_v6 = vadd.f32 %v2052_v15, %v1868_v35 }
 0x12e   : > { %1292 = vst.msk [vmem:[%s1879_s29 + $0x6c] sm:$0xf] %vm1264_vm1, %v1555_v62  ;;  %v674_v0 = vadd.f32 %v1868_v35, %v2054_v19  ;;  %v969_v7 = vsel %vm841_vm11, %v661_v60, %v905_v4  ;;  %vm846_vm13 = vcmp.ge.f32.partialorder %v682_v5, 0.0  ;;  %v910_v8 = vmul.f32 0.2, %v682_v5 }
 0x12f   : > { %1324 = vst.msk [vmem:[%s1879_s29 + $0xec] sm:$0xf] %vm1264_vm1, %v1587_v3  ;;  %v802_v9 = vadd.f32 %v1868_v35, %v2066_v27  ;;  %v1553_v10 = vpack.c.bf16 %v969_v7, %v969_v7  ;;  %v1001_v11 = vsel %vm873_vm12, %v789_v2, %v937_v63  ;;  %vm878_vm14 = vcmp.ge.f32.partialorder %v810_v6, 0.0 }
 0x130   : > { %v942_v12 = vmul.f32 0.2, %v810_v6  ;;  %v1585_v13 = vpack.c.bf16 %v1001_v11, %v1001_v11  ;;  %v974_v14 = vsel %vm846_vm13, %v682_v5, %v910_v8  ;;  %vm844_vm15 = vcmp.ge.f32.partialorder %v674_v0, 0.0 }
 0x131   : > { %v908_v15 = vmul.f32 0.2, %v674_v0  ;;  %1290 = vst.msk [vmem:[%s1879_s29 + $0x64] sm:$0xf] %vm1264_vm1, %v1553_v10  ;;  %v1558_v16 = vpack.c.bf16 %v974_v14, %v974_v14  ;;  %vm876_vm0 = vcmp.ge.f32.partialorder %v802_v9, 0.0  ;;  %v685_v21 = vadd.f32 %v2068_v28, %v1868_v35 }
 0x132   : > { %v1006_v17 = vsel %vm878_vm14, %v810_v6, %v942_v12  ;;  %v940_v18 = vmul.f32 0.2, %v802_v9  ;;  %1322 = vst.msk [vmem:[%s1879_s29 + $0xe4] sm:$0xf] %vm1264_vm1, %v1585_v13  ;;  %v813_v22 = vadd.f32 %v2070_v33, %v1868_v35  ;;  %v677_v25 = vadd.f32 %v1868_v35, %v2072_v34 }
 0x133   : > { %v1590_v19 = vpack.c.bf16 %v1006_v17, %v1006_v17  ;;  %v972_v20 = vsel %vm844_vm15, %v674_v0, %v908_v15  ;;  %1295 = vst.msk [vmem:[%s1879_s29 + $0x78] sm:$0xf] %vm1264_vm1, %v1558_v16  ;;  %v805_v27 = vadd.f32 %v1868_v35, %v2074_v38  ;;  %vm847_vm2 = vcmp.ge.f32.partialorder %v685_v21, 0.0 }
 0x134   : > { %v1556_v23 = vpack.c.bf16 %v972_v20, %v972_v20  ;;  %v1004_v24 = vsel %vm876_vm0, %v802_v9, %v940_v18  ;;  %v911_v30 = vmul.f32 0.2, %v685_v21  ;;  %vm879_vm3 = vcmp.ge.f32.partialorder %v813_v22, 0.0 }
 0x135   : > { %1327 = vst.msk [vmem:[%s1879_s29 + $0xf8] sm:$0xf] %vm1264_vm1, %v1590_v19  ;;  %v1588_v29 = vpack.c.bf16 %v1004_v24, %v1004_v24  ;;  %v943_v28 = vmul.f32 0.2, %v813_v22  ;;  %vm845_vm4 = vcmp.ge.f32.partialorder %v677_v25, 0.0  ;;  %vm877_vm5 = vcmp.ge.f32.partialorder %v805_v27, 0.0 }
 0x136   : > { %1293 = vst.msk [vmem:[%s1879_s29 + $0x70] sm:$0xf] %vm1264_vm1, %v1556_v23  ;;  %v909_v31 = vmul.f32 0.2, %v677_v25  ;;  %v975_v32 = vsel %vm847_vm2, %v685_v21, %v911_v30  ;;  %v941_v35 = vmul.f32 0.2, %v805_v27 }
 0x137   : > { %1325 = vst.msk [vmem:[%s1879_s29 + $0xf0] sm:$0xf] %vm1264_vm1, %v1588_v29  ;;  %v1559_v33 = vpack.c.bf16 %v975_v32, %v975_v32  ;;  %v1007_v34 = vsel %vm879_vm3, %v813_v22, %v943_v28 }
 0x138   : > { %v973_v36 = vsel %vm845_vm4, %v677_v25, %v909_v31  ;;  %v1591_v26 = vpack.c.bf16 %v1007_v34, %v1007_v34  ;;  %v1005_v38 = vsel %vm877_vm5, %v805_v27, %v941_v35 }
 0x139   : > { %v1557_v37 = vpack.c.bf16 %v973_v36, %v973_v36  ;;  %1296 = vst.msk [vmem:[%s1879_s29 + $0x7c] sm:$0xf] %vm1264_vm1, %v1559_v33  ;;  %v1589_v39 = vpack.c.bf16 %v1005_v38, %v1005_v38 }
 0x13a   : > { %1328 = vst.msk [vmem:[%s1879_s29 + $0xfc] sm:$0xf] %vm1264_vm1, %v1591_v26 }
 0x13b   : > { %1294 = vst.msk [vmem:[%s1879_s29 + $0x74] sm:$0xf] %vm1264_vm1, %v1557_v37  ;;  %1326 = vst.msk [vmem:[%s1879_s29 + $0xf4] sm:$0xf] %vm1264_vm1, %v1589_v39 }
 0x13c PF: > { %s13_s12 = sadd.s32 1, %s1752_s12  }
 0x13d   : > { %p10_p4 = scmp.ge.s32.totalorder %s13_s12, 4  }
 0x13f   :  { %12 = sbr.rel (!%p10_p4) target bundleno = 1 (0x1), region = 62 }

// kernel: d_loss.9
= control target key start
LH: loop header
LB: loop body
LE: loop exit
PB: predicated region body
PF: predicated region fallthrough
CT: control target
= control target key end

     0   :  { %vm18_vm0 = vcmask 257024   ;;  %v1520_v48 = vmov 0.0   ;;  %vm501_vm1 = vcmask 261120   ;;  %vm1262_vm2 = vcmask 1040384   ;;  %s2172_s1 = inlined_call_operand.vmem [shape: bf16[256,32], index: 1, kind: input, shape index: {}]   ;;  %s2173_s0 = inlined_call_operand.vmem [shape: bf16[256,256], index: 0, kind: input, shape index: {}]   ;;  %s2174_s3 = inlined_call_operand.vmem [shape: f32[4,32], index: 3, kind: output, shape index: {1}]   ;;  %s2175_s2 = inlined_call_operand.vmem [shape: f32[256,32], index: 2, kind: output, shape index: {0}]  }
   0x1   :  { %v1456_v0 = vld [vmem:[%s2172_s1 + $0x40] sm:$0xff]   ;;  %v1458_v2 = vld [vmem:[%s2172_s1 + $0x48] sm:$0xff]   ;;  %v1460_v4 = vld [vmem:[%s2172_s1 + $0x50] sm:$0xff]   ;;  %19 = vst.msk [vmem:[%s2174_s3] sm:$0xf] %vm18_vm0, %v1520_v48  ;;  %vm1264_vm3 = vcmask 1041408  }
   0x2   :  { %v1457_v1 = vld [vmem:[%s2172_s1] sm:$0xff]   ;;  %1327 = vmatprep.subr.bf16.mxu0 %v1456_v0  ;;  %1439 = vmatprep.subr.bf16.mxu1 %v1456_v0  ;;  %v1459_v3 = vld [vmem:[%s2172_s1 + $0x8] sm:$0xff]   ;;  %v1461_v5 = vld [vmem:[%s2172_s1 + $0x10] sm:$0xff]   ;;  %vm1266_vm4 = vcmask 1042432  }
   0x3   :  { %1328 = vmatpush3.bf16.msra.mxu0 %v1457_v1  ;;  %1447 = vmatpush3.bf16.msra.mxu1 %v1457_v1  ;;  %v1462_v6 = vld [vmem:[%s2172_s1 + $0x58] sm:$0xff]   ;;  %v1464_v8 = vld [vmem:[%s2172_s1 + $0x60] sm:$0xff]   ;;  %v1466_v10 = vld [vmem:[%s2172_s1 + $0x68] sm:$0xff]  }
   0x4   :  { %1329 = vmatprep.subr.bf16.mxu0 %v1458_v2  ;;  %1440 = vmatprep.subr.bf16.mxu1 %v1458_v2  ;;  %v1463_v7 = vld [vmem:[%s2172_s1 + $0x18] sm:$0xff]   ;;  %v1465_v9 = vld [vmem:[%s2172_s1 + $0x20] sm:$0xff]   ;;  %v1467_v12 = vld [vmem:[%s2172_s1 + $0x28] sm:$0xff]  }
   0x5   :  { %v1474_v11 = vld [vmem:[%s2173_s0 + $0x4] ss:$8 sps:$4 sm:$0xff]   ;;  %v1468_v13 = vld [vmem:[%s2172_s1 + $0x70] sm:$0xff]   ;;  %v1470_v16 = vld [vmem:[%s2172_s1 + $0x78] sm:$0xff]  }
   0x6   :  { %372 = vmatprep.mubr.bf16.mxu0 %v1474_v11  ;;  %v1486_v14 = vld [vmem:[%s2173_s0 + $0x84] ss:$8 sps:$4 sm:$0xff]   ;;  %v1469_v15 = vld [vmem:[%s2172_s1 + $0x30] sm:$0xff]   ;;  %v1471_v17 = vld [vmem:[%s2172_s1 + $0x38] sm:$0xff]  }
   0x7   :  { %1330 = vmatpush3.bf16.msra.mxu0 %v1459_v3  ;;  %1448 = vmatpush3.bf16.msra.mxu1 %v1459_v3  ;;  %v1472_v18 = vld [vmem:[%s2173_s0] ss:$8 sps:$4 sm:$0xff]   ;;  %v1475_v19 = vld [vmem:[%s2173_s0 + $0x14] ss:$8 sps:$4 sm:$0xff]   ;;  %v1477_v22 = vld [vmem:[%s2173_s0 + $0x10] ss:$8 sps:$4 sm:$0xff]  }
   0x8   :  { %1331 = vmatprep.subr.bf16.mxu0 %v1460_v4  ;;  %1441 = vmatprep.subr.bf16.mxu1 %v1460_v4  ;;  %v1484_v20 = vld [vmem:[%s2173_s0 + $0x80] ss:$8 sps:$4 sm:$0xff]   ;;  %v1490_v21 = vld [vmem:[%s2173_s0 + $0x94] ss:$8 sps:$4 sm:$0xff]   ;;  %v1478_v23 = vld [vmem:[%s2173_s0 + $0x24] ss:$8 sps:$4 sm:$0xff]  }
   0x9   :  { %436 = vmatprep.mubr.bf16.mxu1 %v1486_v14  ;;  %v1492_v24 = vld [vmem:[%s2173_s0 + $0x90] ss:$8 sps:$4 sm:$0xff]   ;;  %v1496_v25 = vld [vmem:[%s2173_s0 + $0xa4] ss:$8 sps:$4 sm:$0xff]   ;;  %v1480_v26 = vld [vmem:[%s2173_s0 + $0x20] ss:$8 sps:$4 sm:$0xff]  }
   0xa   :  { %v1481_v27 = vld [vmem:[%s2173_s0 + $0x34] ss:$8 sps:$4 sm:$0xff]   ;;  %v1498_v28 = vld [vmem:[%s2173_s0 + $0xa0] ss:$8 sps:$4 sm:$0xff]   ;;  %v1483_v30 = vld [vmem:[%s2173_s0 + $0x30] ss:$8 sps:$4 sm:$0xff]  }
   0xb   :  { %1332 = vmatpush3.bf16.msra.mxu0 %v1461_v5  ;;  %1449 = vmatpush3.bf16.msra.mxu1 %v1461_v5  ;;  %v1502_v29 = vld [vmem:[%s2173_s0 + $0xb4] ss:$8 sps:$4 sm:$0xff]   ;;  %v1487_v31 = vld [vmem:[%s2173_s0 + $0x44] ss:$8 sps:$4 sm:$0xff]   ;;  %v1504_v32 = vld [vmem:[%s2173_s0 + $0xb0] ss:$8 sps:$4 sm:$0xff]  }
   0xc   :  { %1333 = vmatprep.subr.bf16.mxu0 %v1462_v6  ;;  %1442 = vmatprep.subr.bf16.mxu1 %v1462_v6  ;;  %v1508_v33 = vld [vmem:[%s2173_s0 + $0xc4] ss:$8 sps:$4 sm:$0xff]   ;;  %v1489_v34 = vld [vmem:[%s2173_s0 + $0x40] ss:$8 sps:$4 sm:$0xff]   ;;  %v1493_v35 = vld [vmem:[%s2173_s0 + $0x54] ss:$8 sps:$4 sm:$0xff]  }
   0xd   :  { %v1510_v36 = vld [vmem:[%s2173_s0 + $0xc0] ss:$8 sps:$4 sm:$0xff]   ;;  %v1511_v37 = vld [vmem:[%s2173_s0 + $0xd4] ss:$8 sps:$4 sm:$0xff]   ;;  %v1495_v38 = vld [vmem:[%s2173_s0 + $0x50] ss:$8 sps:$4 sm:$0xff]  }
   0xe   :  { %v1499_v39 = vld [vmem:[%s2173_s0 + $0x64] ss:$8 sps:$4 sm:$0xff]   ;;  %v1513_v40 = vld [vmem:[%s2173_s0 + $0xd0] ss:$8 sps:$4 sm:$0xff]   ;;  %v1501_v42 = vld [vmem:[%s2173_s0 + $0x60] ss:$8 sps:$4 sm:$0xff]  }
   0xf   :  { %1334 = vmatpush3.bf16.msra.mxu0 %v1463_v7  ;;  %1450 = vmatpush3.bf16.msra.mxu1 %v1463_v7  ;;  %v1514_v41 = vld [vmem:[%s2173_s0 + $0xe4] ss:$8 sps:$4 sm:$0xff]   ;;  %v1505_v43 = vld [vmem:[%s2173_s0 + $0x74] ss:$8 sps:$4 sm:$0xff]   ;;  %v1516_v44 = vld [vmem:[%s2173_s0 + $0xe0] ss:$8 sps:$4 sm:$0xff]  }
  0x10   :  { %1335 = vmatprep.subr.bf16.mxu0 %v1464_v8  ;;  %1443 = vmatprep.subr.bf16.mxu1 %v1464_v8  ;;  %v1517_v45 = vld [vmem:[%s2173_s0 + $0xf4] ss:$8 sps:$4 sm:$0xff]   ;;  %v1507_v46 = vld [vmem:[%s2173_s0 + $0x70] ss:$8 sps:$4 sm:$0xff]  }
  0x11   :  { %v1519_v47 = vld [vmem:[%s2173_s0 + $0xf0] ss:$8 sps:$4 sm:$0xff]  }
  0x13   :  { %1336 = vmatpush3.bf16.msra.mxu0 %v1465_v9  ;;  %1451 = vmatpush3.bf16.msra.mxu1 %v1465_v9 }
  0x14   :  { %1337 = vmatprep.subr.bf16.mxu0 %v1466_v10  ;;  %1444 = vmatprep.subr.bf16.mxu1 %v1466_v10 }
  0x17   :  { %1338 = vmatpush3.bf16.msra.mxu0 %v1467_v12  ;;  %1452 = vmatpush3.bf16.msra.mxu1 %v1467_v12 }
  0x18   :  { %1339 = vmatprep.subr.bf16.mxu0 %v1468_v13  ;;  %1445 = vmatprep.subr.bf16.mxu1 %v1468_v13 }
  0x1b   :  { %1340 = vmatpush3.bf16.msra.mxu0 %v1469_v15  ;;  %1453 = vmatpush3.bf16.msra.mxu1 %v1469_v15 }
  0x1c   :  { %1341 = vmatprep.subr.bf16.mxu0 %v1470_v16  ;;  %1446 = vmatprep.subr.bf16.mxu1 %v1470_v16 }
  0x1f   :  { %1342 = vmatpush3.bf16.msra.mxu0 %v1471_v17  ;;  %1454 = vmatpush3.bf16.msra.mxu1 %v1471_v17 }
  0x22   :  { %373 = vmatmul.mubr.bf16.vlgmr.msra.gmra.mrb[0].mxu0 %v1472_v18  ;;  %437 = vmatmul.mubr.bf16.vlgmr.msra.gmra.mrb[0].mxu1 %v1484_v20 }
  0x23   :  { %380 = vmatprep.mubr.bf16.mxu0 %v1475_v19  ;;  %444 = vmatprep.mubr.bf16.mxu1 %v1490_v21 }
  0x2a   :  { %381 = vmatmul.mubr.bf16.gmra.mrb[4].mxu0 %v1477_v22  ;;  %445 = vmatmul.mubr.bf16.gmra.mrb[4].mxu1 %v1492_v24 }
  0x2b   :  { %388 = vmatprep.mubr.bf16.mxu0 %v1478_v23  ;;  %452 = vmatprep.mubr.bf16.mxu1 %v1496_v25 }
  0x32   :  { %389 = vmatmul.mubr.bf16.gmra.mrb[8].mxu0 %v1480_v26  ;;  %453 = vmatmul.mubr.bf16.gmra.mrb[8].mxu1 %v1498_v28 }
  0x33   :  { %396 = vmatprep.mubr.bf16.mxu0 %v1481_v27  ;;  %460 = vmatprep.mubr.bf16.mxu1 %v1502_v29 }
  0x3a   :  { %397 = vmatmul.mubr.bf16.gmra.mrb[12].mxu0 %v1483_v30  ;;  %461 = vmatmul.mubr.bf16.gmra.mrb[12].mxu1 %v1504_v32 }
  0x3b   :  { %404 = vmatprep.mubr.bf16.mxu0 %v1487_v31  ;;  %468 = vmatprep.mubr.bf16.mxu1 %v1508_v33 }
  0x42   :  { %405 = vmatmul.mubr.bf16.gmra.mrb[16].mxu0 %v1489_v34  ;;  %469 = vmatmul.mubr.bf16.gmra.mrb[16].mxu1 %v1510_v36 }
  0x43   :  { %412 = vmatprep.mubr.bf16.mxu0 %v1493_v35  ;;  %476 = vmatprep.mubr.bf16.mxu1 %v1511_v37 }
  0x4a   :  { %413 = vmatmul.mubr.bf16.gmra.mrb[20].mxu0 %v1495_v38  ;;  %477 = vmatmul.mubr.bf16.gmra.mrb[20].mxu1 %v1513_v40 }
  0x4b   :  { %420 = vmatprep.mubr.bf16.mxu0 %v1499_v39  ;;  %484 = vmatprep.mubr.bf16.mxu1 %v1514_v41 }
  0x52   :  { %421 = vmatmul.mubr.bf16.gmra.mrb[24].mxu0 %v1501_v42  ;;  %485 = vmatmul.mubr.bf16.gmra.mrb[24].mxu1 %v1516_v44 }
  0x53   :  { %428 = vmatprep.mubr.bf16.mxu0 %v1505_v43  ;;  %492 = vmatprep.mubr.bf16.mxu1 %v1517_v45 }
  0x5a   :  { %429 = vmatmul.mubr.bf16.gmra.mrb[28].mxu0 %v1507_v46  ;;  %493 = vmatmul.mubr.bf16.gmra.mrb[28].mxu1 %v1519_v47 }
  0xf5   :  { %v1343_v49 = vpop.f32.mrb[0].mxu0  ;;  %v1391_v51 = vpop.f32.mrb[0].mxu1 }
  0xf6   :  { %v1344_v50 = vpop.f32.mrb[1].mxu0  ;;  %v1392_v54 = vpop.f32.mrb[1].mxu1 }
  0xf7   :  { %v1345_v52 = vadd.f32 %v1344_v50, %v1343_v49  ;;  %v1346_v53 = vpop.f32.mrb[2].mxu0  ;;  %v1393_v56 = vadd.f32 %v1392_v54, %v1391_v51  ;;  %v1394_v57 = vpop.f32.mrb[2].mxu1 }
  0xf8   :  { %v1347_v55 = vpop.f32.mrb[3].mxu0  ;;  %v1395_v60 = vpop.f32.mrb[3].mxu1 }
  0xf9   :  { %502 = vst.msk [vmem:[%s2175_s2] sm:$0xff] %vm501_vm1, %v1345_v52  ;;  %v889_v58 = vmul.f32 0.0, %v1345_v52  ;;  %v1348_v59 = vadd.f32 %v1347_v55, %v1346_v53  ;;  %v991_v61 = vmul.f32 %v1345_v52, %v1345_v52  ;;  %518 = vst.msk [vmem:[%s2175_s2 + $0x80] sm:$0xff] %vm501_vm1, %v1393_v56  ;;  %v1697_v62 = vadd.f32 %v1395_v60, %v1394_v57 }
  0xfa   :  { %v922_v1 = vsel %vm501_vm1, %v1345_v52, 0.0  ;;  %v873_v13 = vmul.f32 0.0, %v1393_v56  ;;  %v1724_v32 = vsel %vm501_vm1, %v1393_v56, 0.0  ;;  %v1177_v33 = vmul.f32 %v1393_v56, %v1393_v56 }
  0xfb   :  { %v1161_v63 = vmul.f32 %v1345_v52, %v889_v58  ;;  %503 = vst.msk [vmem:[%s2175_s2 + $0x8] sm:$0xff] %vm501_vm1, %v1348_v59  ;;  %v890_v0 = vmul.f32 0.0, %v1348_v59  ;;  %v923_v2 = vsel %vm501_vm1, %v1348_v59, 0.0  ;;  %v992_v3 = vmul.f32 %v1348_v59, %v1348_v59  ;;  %519 = vst.msk [vmem:[%s2175_s2 + $0x88] sm:$0xff] %vm501_vm1, %v1697_v62 }
  0xfc   :  { %v1092_v4 = vsel %vm501_vm1, %v889_v58, 0.0  ;;  %v924_v5 = vadd.f32 %v923_v2, %v922_v1  ;;  %v1023_v9 = vsel %vm501_vm1, %v991_v61, 0.0  ;;  %v1007_v31 = vmul.f32 %v1393_v56, %v873_v13 }
  0xfd   :  { %v1093_v6 = vsel %vm501_vm1, %v890_v0, 0.0  ;;  %v1162_v7 = vmul.f32 %v1348_v59, %v890_v0  ;;  %v1349_v8 = vpop.f32.mrb[4].mxu0  ;;  %v1024_v10 = vsel %vm501_vm1, %v992_v3, 0.0  ;;  %v1397_v14 = vpop.f32.mrb[4].mxu1  ;;  %v1193_v15 = vsel %vm501_vm1, %v1161_v63, 0.0 }
  0xfe   :  { %v1094_v11 = vadd.f32 %v1093_v6, %v1092_v4  ;;  %v1350_v12 = vpop.f32.mrb[5].mxu0  ;;  %v1025_v16 = vadd.f32 %v1024_v10, %v1023_v9  ;;  %v1398_v20 = vpop.f32.mrb[5].mxu1  ;;  %v874_v51 = vmul.f32 0.0, %v1697_v62  ;;  %v1744_v57 = vsel %vm501_vm1, %v873_v13, 0.0 }
  0xff   :  { %v1194_v17 = vsel %vm501_vm1, %v1162_v7, 0.0  ;;  %v1351_v18 = vadd.f32 %v1350_v12, %v1349_v8  ;;  %v1352_v19 = vpop.f32.mrb[6].mxu0  ;;  %v1716_v23 = vadd.f32 %v1398_v20, %v1397_v14  ;;  %v1400_v24 = vpop.f32.mrb[6].mxu1  ;;  %v1747_v61 = vsel %vm501_vm1, %v1007_v31, 0.0 }
 0x100   :  { %v1195_v21 = vadd.f32 %v1194_v17, %v1193_v15  ;;  %v1353_v22 = vpop.f32.mrb[7].mxu0  ;;  %v1401_v29 = vpop.f32.mrb[7].mxu1  ;;  %v1750_v63 = vsel %vm501_vm1, %v1177_v33, 0.0  ;;  %v1008_v8 = vmul.f32 %v1697_v62, %v874_v51  ;;  %v1766_v9 = vsel %vm501_vm1, %v1697_v62, 0.0 }
 0x101   :  { %504 = vst.msk [vmem:[%s2175_s2 + $0x10] sm:$0xff] %vm501_vm1, %v1351_v18  ;;  %v891_v25 = vmul.f32 0.0, %v1351_v18  ;;  %v925_v26 = vsel %vm501_vm1, %v1351_v18, 0.0  ;;  %v993_v27 = vmul.f32 %v1351_v18, %v1351_v18  ;;  %v1354_v28 = vadd.f32 %v1353_v22, %v1352_v19  ;;  %520 = vst.msk [vmem:[%s2175_s2 + $0x90] sm:$0xff] %vm501_vm1, %v1716_v23 }
 0x102   :  { %v926_v30 = vadd.f32 %v925_v26, %v924_v5  ;;  %v1752_v0 = vadd.f32 %v1401_v29, %v1400_v24  ;;  %v1178_v10 = vmul.f32 %v1697_v62, %v1697_v62 }
 0x103   :  { %v1026_v34 = vsel %vm501_vm1, %v993_v27, 0.0  ;;  %v1095_v35 = vsel %vm501_vm1, %v891_v25, 0.0  ;;  %v1163_v36 = vmul.f32 %v1351_v18, %v891_v25  ;;  %505 = vst.msk [vmem:[%s2175_s2 + $0x18] sm:$0xff] %vm501_vm1, %v1354_v28  ;;  %v892_v37 = vmul.f32 0.0, %v1354_v28 }
 0x104   :  { %v1027_v38 = vadd.f32 %v1026_v34, %v1025_v16  ;;  %v1096_v39 = vadd.f32 %v1095_v35, %v1094_v11  ;;  %v927_v40 = vsel %vm501_vm1, %v1354_v28, 0.0  ;;  %v994_v41 = vmul.f32 %v1354_v28, %v1354_v28  ;;  %521 = vst.msk [vmem:[%s2175_s2 + $0x98] sm:$0xff] %vm501_vm1, %v1752_v0 }
 0x105   :  { %v1196_v42 = vsel %vm501_vm1, %v1163_v36, 0.0  ;;  %v928_v43 = vadd.f32 %v927_v40, %v926_v30  ;;  %v1097_v44 = vsel %vm501_vm1, %v892_v37, 0.0  ;;  %v1164_v45 = vmul.f32 %v1354_v28, %v892_v37  ;;  %v1355_v46 = vpop.f32.mrb[8].mxu0  ;;  %v1403_v52 = vpop.f32.mrb[8].mxu1 }
 0x106   :  { %v1197_v47 = vadd.f32 %v1196_v42, %v1195_v21  ;;  %v1028_v48 = vsel %vm501_vm1, %v994_v41, 0.0  ;;  %v1098_v49 = vadd.f32 %v1097_v44, %v1096_v39  ;;  %v1356_v50 = vpop.f32.mrb[9].mxu0  ;;  %v1404_v58 = vpop.f32.mrb[9].mxu1  ;;  %v875_v28 = vmul.f32 0.0, %v1716_v23 }
 0x107   :  { %v1029_v53 = vadd.f32 %v1028_v48, %v1027_v38  ;;  %v1198_v54 = vsel %vm501_vm1, %v1164_v45, 0.0  ;;  %v1357_v55 = vadd.f32 %v1356_v50, %v1355_v46  ;;  %v1358_v56 = vpop.f32.mrb[10].mxu0  ;;  %v1754_v1 = vpop.f32.mrb[10].mxu1  ;;  %v1790_v35 = vsel %vm501_vm1, %v874_v51, 0.0 }
 0x108   :  { %v1199_v59 = vadd.f32 %v1198_v54, %v1197_v47  ;;  %v1359_v60 = vpop.f32.mrb[11].mxu0  ;;  %v1761_v6 = vpop.f32.mrb[11].mxu1  ;;  %v1795_v39 = vsel %vm501_vm1, %v1008_v8, 0.0  ;;  %v1798_v40 = vsel %vm501_vm1, %v1178_v10, 0.0  ;;  %v1800_v41 = vadd.f32 %v1404_v58, %v1403_v52 }
 0x109   :  { %506 = vst.msk [vmem:[%s2175_s2 + $0x20] sm:$0xff] %vm501_vm1, %v1357_v55  ;;  %v893_v2 = vmul.f32 0.0, %v1357_v55  ;;  %v929_v3 = vsel %vm501_vm1, %v1357_v55, 0.0  ;;  %v995_v4 = vmul.f32 %v1357_v55, %v1357_v55  ;;  %v1360_v5 = vadd.f32 %v1359_v60, %v1358_v56 }
 0x10a   :  { %v930_v7 = vadd.f32 %v929_v3, %v928_v43  ;;  %v1814_v50 = vsel %vm501_vm1, %v1716_v23, 0.0  ;;  %v1179_v51 = vmul.f32 %v1716_v23, %v1716_v23  ;;  %522 = vst.msk [vmem:[%s2175_s2 + $0xa0] sm:$0xff] %vm501_vm1, %v1800_v41 }
 0x10b   :  { %v1030_v11 = vsel %vm501_vm1, %v995_v4, 0.0  ;;  %v1099_v12 = vsel %vm501_vm1, %v893_v2, 0.0  ;;  %v1165_v13 = vmul.f32 %v1357_v55, %v893_v2  ;;  %507 = vst.msk [vmem:[%s2175_s2 + $0x28] sm:$0xff] %vm501_vm1, %v1360_v5  ;;  %v894_v14 = vmul.f32 0.0, %v1360_v5 }
 0x10c   :  { %v1031_v15 = vadd.f32 %v1030_v11, %v1029_v53  ;;  %v1100_v16 = vadd.f32 %v1099_v12, %v1098_v49  ;;  %v931_v62 = vsel %vm501_vm1, %v1360_v5, 0.0  ;;  %v996_v17 = vmul.f32 %v1360_v5, %v1360_v5 }
 0x10d   :  { %v1200_v18 = vsel %vm501_vm1, %v1165_v13, 0.0  ;;  %v932_v19 = vadd.f32 %v931_v62, %v930_v7  ;;  %v1101_v20 = vsel %vm501_vm1, %v894_v14, 0.0  ;;  %v1166_v21 = vmul.f32 %v1360_v5, %v894_v14  ;;  %v1361_v22 = vpop.f32.mrb[12].mxu0  ;;  %v1786_v29 = vpop.f32.mrb[12].mxu1 }
 0x10e   :  { %v1201_v24 = vadd.f32 %v1200_v18, %v1199_v59  ;;  %v1032_v25 = vsel %vm501_vm1, %v996_v17, 0.0  ;;  %v1102_v26 = vadd.f32 %v1101_v20, %v1100_v16  ;;  %v1362_v27 = vpop.f32.mrb[13].mxu0  ;;  %v1792_v36 = vpop.f32.mrb[13].mxu1  ;;  %v1009_v49 = vmul.f32 %v1716_v23, %v875_v28 }
 0x10f   :  { %v1033_v30 = vadd.f32 %v1032_v25, %v1031_v15  ;;  %v1202_v31 = vsel %vm501_vm1, %v1166_v21, 0.0  ;;  %v1363_v33 = vadd.f32 %v1362_v27, %v1361_v22  ;;  %v1364_v34 = vpop.f32.mrb[14].mxu0  ;;  %v1802_v42 = vpop.f32.mrb[14].mxu1  ;;  %v876_v12 = vmul.f32 0.0, %v1752_v0 }
 0x110   :  { %v1203_v37 = vadd.f32 %v1202_v31, %v1201_v24  ;;  %v1365_v38 = vpop.f32.mrb[15].mxu0  ;;  %v1809_v47 = vpop.f32.mrb[15].mxu1  ;;  %v1838_v17 = vsel %vm501_vm1, %v875_v28, 0.0  ;;  %v1843_v20 = vsel %vm501_vm1, %v1009_v49, 0.0  ;;  %v1846_v21 = vsel %vm501_vm1, %v1179_v51, 0.0 }
 0x111   :  { %508 = vst.msk [vmem:[%s2175_s2 + $0x30] sm:$0xff] %vm501_vm1, %v1363_v33  ;;  %v895_v43 = vmul.f32 0.0, %v1363_v33  ;;  %v933_v44 = vsel %vm501_vm1, %v1363_v33, 0.0  ;;  %v997_v45 = vmul.f32 %v1363_v33, %v1363_v33  ;;  %v1366_v46 = vadd.f32 %v1365_v38, %v1364_v34 }
 0x112   :  { %v934_v48 = vadd.f32 %v933_v44, %v932_v19  ;;  %v1850_v24 = vadd.f32 %v1761_v6, %v1754_v1  ;;  %v1010_v34 = vmul.f32 %v1752_v0, %v876_v12  ;;  %v1864_v1 = vsel %vm501_vm1, %v1752_v0, 0.0 }
 0x113   :  { %v1034_v52 = vsel %vm501_vm1, %v997_v45, 0.0  ;;  %v1103_v53 = vsel %vm501_vm1, %v895_v43, 0.0  ;;  %v1167_v54 = vmul.f32 %v1363_v33, %v895_v43  ;;  %509 = vst.msk [vmem:[%s2175_s2 + $0x38] sm:$0xff] %vm501_vm1, %v1366_v46  ;;  %v896_v55 = vmul.f32 0.0, %v1366_v46 }
 0x114   :  { %v1035_v56 = vadd.f32 %v1034_v52, %v1033_v30  ;;  %v1104_v58 = vadd.f32 %v1103_v53, %v1102_v26  ;;  %v935_v23 = vsel %vm501_vm1, %v1366_v46, 0.0  ;;  %v998_v59 = vmul.f32 %v1366_v46, %v1366_v46  ;;  %523 = vst.msk [vmem:[%s2175_s2 + $0xa8] sm:$0xff] %vm501_vm1, %v1850_v24 }
 0x115   :  { %v1204_v60 = vsel %vm501_vm1, %v1167_v54, 0.0  ;;  %v936_v2 = vadd.f32 %v935_v23, %v934_v48  ;;  %v1105_v3 = vsel %vm501_vm1, %v896_v55, 0.0  ;;  %v1168_v4 = vmul.f32 %v1366_v46, %v896_v55  ;;  %v1367_v5 = vpop.f32.mrb[16].mxu0  ;;  %v1834_v13 = vpop.f32.mrb[16].mxu1 }
 0x116   :  { %v1205_v7 = vadd.f32 %v1204_v60, %v1203_v37  ;;  %v1036_v8 = vsel %vm501_vm1, %v998_v59, 0.0  ;;  %v1106_v10 = vadd.f32 %v1105_v3, %v1104_v58  ;;  %v1368_v11 = vpop.f32.mrb[17].mxu0  ;;  %v1840_v18 = vpop.f32.mrb[17].mxu1  ;;  %v1180_v6 = vmul.f32 %v1752_v0, %v1752_v0 }
 0x117   :  { %v1037_v14 = vadd.f32 %v1036_v8, %v1035_v56  ;;  %v1206_v15 = vsel %vm501_vm1, %v1168_v4, 0.0  ;;  %v1369_v16 = vadd.f32 %v1368_v11, %v1367_v5  ;;  %v1370_v62 = vpop.f32.mrb[18].mxu0  ;;  %v1852_v25 = vpop.f32.mrb[18].mxu1  ;;  %v877_v59 = vmul.f32 0.0, %v1800_v41 }
 0x118   :  { %v1207_v19 = vadd.f32 %v1206_v15, %v1205_v7  ;;  %v1371_v22 = vpop.f32.mrb[19].mxu0  ;;  %v1859_v31 = vpop.f32.mrb[19].mxu1  ;;  %v1888_v4 = vsel %vm501_vm1, %v876_v12, 0.0  ;;  %v1893_v11 = vsel %vm501_vm1, %v1010_v34, 0.0 }
 0x119   :  { %510 = vst.msk [vmem:[%s2175_s2 + $0x40] sm:$0xff] %vm501_vm1, %v1369_v16  ;;  %v897_v26 = vmul.f32 0.0, %v1369_v16  ;;  %v937_v27 = vsel %vm501_vm1, %v1369_v16, 0.0  ;;  %v999_v28 = vmul.f32 %v1369_v16, %v1369_v16  ;;  %v1372_v30 = vadd.f32 %v1371_v22, %v1370_v62 }
 0x11a   :  { %v938_v33 = vadd.f32 %v937_v27, %v936_v2 }
 0x11b   :  { %v1038_v37 = vsel %vm501_vm1, %v999_v28, 0.0  ;;  %v1107_v38 = vsel %vm501_vm1, %v897_v26, 0.0  ;;  %v1169_v43 = vmul.f32 %v1369_v16, %v897_v26  ;;  %511 = vst.msk [vmem:[%s2175_s2 + $0x48] sm:$0xff] %vm501_vm1, %v1372_v30  ;;  %v898_v44 = vmul.f32 0.0, %v1372_v30 }
 0x11c   :  { %v1039_v45 = vadd.f32 %v1038_v37, %v1037_v14  ;;  %v1108_v46 = vadd.f32 %v1107_v38, %v1106_v10  ;;  %v939_v0 = vsel %vm501_vm1, %v1372_v30, 0.0  ;;  %v1000_v48 = vmul.f32 %v1372_v30, %v1372_v30 }
 0x11d   :  { %v1208_v49 = vsel %vm501_vm1, %v1169_v43, 0.0  ;;  %v940_v51 = vadd.f32 %v939_v0, %v938_v33  ;;  %v1109_v52 = vsel %vm501_vm1, %v898_v44, 0.0  ;;  %v1170_v53 = vmul.f32 %v1372_v30, %v898_v44  ;;  %v1373_v54 = vpop.f32.mrb[20].mxu0  ;;  %v1884_v60 = vpop.f32.mrb[20].mxu1 }
 0x11e   :  { %v1209_v55 = vadd.f32 %v1208_v49, %v1207_v19  ;;  %v1040_v56 = vsel %vm501_vm1, %v1000_v48, 0.0  ;;  %v1110_v58 = vadd.f32 %v1109_v52, %v1108_v46  ;;  %v1374_v23 = vpop.f32.mrb[21].mxu0  ;;  %v1890_v8 = vpop.f32.mrb[21].mxu1  ;;  %v1896_v14 = vsel %vm501_vm1, %v1180_v6, 0.0 }
 0x11f   :  { %v1041_v2 = vadd.f32 %v1040_v56, %v1039_v45  ;;  %v1210_v3 = vsel %vm501_vm1, %v1170_v53, 0.0  ;;  %v1375_v5 = vadd.f32 %v1374_v23, %v1373_v54  ;;  %v1376_v7 = vpop.f32.mrb[22].mxu0  ;;  %v1900_v16 = vadd.f32 %v1792_v36, %v1786_v29  ;;  %v1902_v62 = vpop.f32.mrb[22].mxu1 }
 0x120   :  { %v1211_v10 = vadd.f32 %v1210_v3, %v1209_v55  ;;  %v1377_v15 = vpop.f32.mrb[23].mxu0  ;;  %v1909_v27 = vpop.f32.mrb[23].mxu1  ;;  %v1011_v30 = vmul.f32 %v1800_v41, %v877_v59  ;;  %v1914_v29 = vsel %vm501_vm1, %v1800_v41, 0.0  ;;  %v1181_v36 = vmul.f32 %v1800_v41, %v1800_v41 }
 0x121   :  { %512 = vst.msk [vmem:[%s2175_s2 + $0x50] sm:$0xff] %vm501_vm1, %v1375_v5  ;;  %v899_v12 = vmul.f32 0.0, %v1375_v5  ;;  %v941_v19 = vsel %vm501_vm1, %v1375_v5, 0.0  ;;  %v1001_v22 = vmul.f32 %v1375_v5, %v1375_v5  ;;  %v1378_v26 = vadd.f32 %v1377_v15, %v1376_v7  ;;  %524 = vst.msk [vmem:[%s2175_s2 + $0xb0] sm:$0xff] %vm501_vm1, %v1900_v16 }
 0x122   :  { %v942_v28 = vadd.f32 %v941_v19, %v940_v51  ;;  %v1933_v52 = vsel %vm501_vm1, %v877_v59, 0.0  ;;  %v878_v15 = vmul.f32 0.0, %v1850_v24  ;;  %v1950_v19 = vadd.f32 %v1809_v47, %v1802_v42 }
 0x123   :  { %v1042_v33 = vsel %vm501_vm1, %v1001_v22, 0.0  ;;  %v1111_v34 = vsel %vm501_vm1, %v899_v12, 0.0  ;;  %v1171_v6 = vmul.f32 %v1375_v5, %v899_v12  ;;  %513 = vst.msk [vmem:[%s2175_s2 + $0x58] sm:$0xff] %vm501_vm1, %v1378_v26  ;;  %v900_v37 = vmul.f32 0.0, %v1378_v26 }
 0x124   :  { %v1043_v38 = vadd.f32 %v1042_v33, %v1041_v2  ;;  %v1112_v43 = vadd.f32 %v1111_v34, %v1110_v58  ;;  %v943_v41 = vsel %vm501_vm1, %v1378_v26, 0.0  ;;  %v1002_v44 = vmul.f32 %v1378_v26, %v1378_v26  ;;  %525 = vst.msk [vmem:[%s2175_s2 + $0xb8] sm:$0xff] %vm501_vm1, %v1950_v19 }
 0x125   :  { %v1212_v45 = vsel %vm501_vm1, %v1171_v6, 0.0  ;;  %v944_v46 = vadd.f32 %v943_v41, %v942_v28  ;;  %v1113_v0 = vsel %vm501_vm1, %v900_v37, 0.0  ;;  %v1172_v48 = vmul.f32 %v1378_v26, %v900_v37  ;;  %v1379_v49 = vpop.f32.mrb[24].mxu0  ;;  %v1936_v56 = vpop.f32.mrb[24].mxu1 }
 0x126   :  { %v1213_v51 = vadd.f32 %v1212_v45, %v1211_v10  ;;  %v1044_v53 = vsel %vm501_vm1, %v1002_v44, 0.0  ;;  %v1114_v54 = vadd.f32 %v1113_v0, %v1112_v43  ;;  %v1380_v55 = vpop.f32.mrb[25].mxu0  ;;  %v1939_v58 = vsel %vm501_vm1, %v1181_v36, 0.0  ;;  %v1942_v7 = vpop.f32.mrb[25].mxu1 }
 0x127   :  { %v1045_v23 = vadd.f32 %v1044_v53, %v1043_v38  ;;  %v1214_v2 = vsel %vm501_vm1, %v1172_v48, 0.0  ;;  %v1381_v3 = vadd.f32 %v1380_v55, %v1379_v49  ;;  %v1382_v5 = vpop.f32.mrb[26].mxu0  ;;  %v1945_v10 = vsel %vm501_vm1, %v1011_v30, 0.0  ;;  %v1952_v22 = vpop.f32.mrb[26].mxu1 }
 0x128   :  { %v1215_v59 = vadd.f32 %v1214_v2, %v1213_v51  ;;  %v1383_v12 = vpop.f32.mrb[27].mxu0  ;;  %v1182_v26 = vmul.f32 %v1850_v24, %v1850_v24  ;;  %v1961_v33 = vpop.f32.mrb[27].mxu1  ;;  %v1964_v34 = vsel %vm501_vm1, %v878_v15, 0.0  ;;  %v1968_v42 = vsel %vm501_vm1, %v1850_v24, 0.0 }
 0x129   :  { %514 = vst.msk [vmem:[%s2175_s2 + $0x60] sm:$0xff] %vm501_vm1, %v1381_v3  ;;  %v901_v28 = vmul.f32 0.0, %v1381_v3  ;;  %v945_v30 = vsel %vm501_vm1, %v1381_v3, 0.0  ;;  %v1003_v36 = vmul.f32 %v1381_v3, %v1381_v3  ;;  %v1384_v6 = vadd.f32 %v1383_v12, %v1382_v5 }
 0x12a   :  { %v946_v47 = vadd.f32 %v945_v30, %v944_v46  ;;  %v879_v41 = vmul.f32 0.0, %v1900_v16  ;;  %v1012_v44 = vmul.f32 %v1850_v24, %v878_v15  ;;  %v1984_v48 = vsel %vm501_vm1, %v1182_v26, 0.0 }
 0x12b   :  { %v1046_v37 = vsel %vm501_vm1, %v1003_v36, 0.0  ;;  %v1115_v38 = vsel %vm501_vm1, %v901_v28, 0.0  ;;  %v1173_v43 = vmul.f32 %v1381_v3, %v901_v28  ;;  %515 = vst.msk [vmem:[%s2175_s2 + $0x68] sm:$0xff] %vm501_vm1, %v1384_v6  ;;  %v902_v46 = vmul.f32 0.0, %v1384_v6 }
 0x12c   :  { %v1047_v45 = vadd.f32 %v1046_v37, %v1045_v23  ;;  %v1116_v0 = vadd.f32 %v1115_v38, %v1114_v54  ;;  %v947_v51 = vsel %vm501_vm1, %v1384_v6, 0.0  ;;  %v1004_v53 = vmul.f32 %v1384_v6, %v1384_v6 }
 0x12d   :  { %v1216_v49 = vsel %vm501_vm1, %v1173_v43, 0.0  ;;  %v1385_v55 = vpop.f32.mrb[28].mxu0  ;;  %v948_v3 = vadd.f32 %v947_v51, %v946_v47  ;;  %v1117_v24 = vsel %vm501_vm1, %v902_v46, 0.0  ;;  %v1174_v54 = vmul.f32 %v1384_v6, %v902_v46  ;;  %v1989_v5 = vpop.f32.mrb[28].mxu1 }
 0x12e   :  { %v1217_v2 = vadd.f32 %v1216_v49, %v1215_v59  ;;  %v1386_v23 = vpop.f32.mrb[29].mxu0  ;;  %2176 = vst [vmem:[#allocation2_spill] sm:$0xff] %v1989_v5  ;;  %v1013_v15 = vmul.f32 %v1900_v16, %v879_v41  ;;  %v1183_v12 = vmul.f32 %v1900_v16, %v1900_v16  ;;  %v1048_v26 = vsel %vm501_vm1, %v1004_v53, 0.0  ;;  %v1995_v36 = vpop.f32.mrb[29].mxu1 }
 0x12f   :  { %v1118_v28 = vadd.f32 %v1117_v24, %v1116_v0  ;;  %v1388_v30 = vpop.f32.mrb[30].mxu0  ;;  %2177 = vst [vmem:[#allocation3_spill] sm:$0xff] %v1995_v36  ;;  %v1998_v59 = vsel %vm501_vm1, %v1012_v44, 0.0  ;;  %v1049_v47 = vadd.f32 %v1048_v26, %v1047_v45  ;;  %v1218_v6 = vsel %vm501_vm1, %v1174_v54, 0.0  ;;  %v2001_v43 = vpop.f32.mrb[30].mxu1 }
 0x130   :  { %v1387_v37 = vadd.f32 %v1386_v23, %v1385_v55  ;;  %v1389_v38 = vpop.f32.mrb[31].mxu0  ;;  %2178 = vst [vmem:[#allocation4_spill] sm:$0xff] %v2001_v43  ;;  %v1219_v46 = vadd.f32 %v1218_v6, %v1217_v2  ;;  %v880_v49 = vmul.f32 0.0, %v1950_v19  ;;  %v1417_v51 = vadd.f32 %v1840_v18, %v1834_v13  ;;  %v2006_v53 = vpop.f32.mrb[31].mxu1 }
 0x131   :  { %v1390_v0 = vadd.f32 %v1389_v38, %v1388_v30  ;;  %2179 = vst [vmem:[#allocation5_spill] sm:$0xff] %v2006_v53  ;;  %v2010_v44 = vsel %vm501_vm1, %v1900_v16, 0.0  ;;  %v2018_v24 = vsel %vm501_vm1, %v879_v41, 0.0  ;;  %v2021_v13 = vsel %vm501_vm1, %v1013_v15, 0.0 }
 0x132   :  { %516 = vst.msk [vmem:[%s2175_s2 + $0x70] sm:$0xff] %vm501_vm1, %v1387_v37  ;;  %v903_v45 = vmul.f32 0.0, %v1387_v37  ;;  %v949_v55 = vsel %vm501_vm1, %v1387_v37, 0.0  ;;  %v1005_v2 = vmul.f32 %v1387_v37, %v1387_v37  ;;  %v2024_v18 = vsel %vm501_vm1, %v1183_v12, 0.0  ;;  %526 = vst.msk [vmem:[%s2175_s2 + $0xc0] sm:$0xff] %vm501_vm1, %v1417_v51 }
 0x133   :  { %2180 = vst [vmem:[#allocation6_spill] sm:$0xff] %v2024_v18  ;;  %v950_v16 = vadd.f32 %v949_v55, %v948_v3  ;;  %517 = vst.msk [vmem:[%s2175_s2 + $0x78] sm:$0xff] %vm501_vm1, %v1390_v0  ;;  %v904_v15 = vmul.f32 0.0, %v1390_v0  ;;  %v2037_v12 = vsel %vm501_vm1, %v880_v49, 0.0  ;;  %v1014_v3 = vmul.f32 %v1950_v19, %v880_v49 }
 0x134   :  { %v1050_v41 = vsel %vm501_vm1, %v1005_v2, 0.0  ;;  %v1119_v54 = vsel %vm501_vm1, %v903_v45, 0.0  ;;  %v1175_v23 = vmul.f32 %v1387_v37, %v903_v45  ;;  %v1184_v6 = vmul.f32 %v1950_v19, %v1950_v19 }
 0x135   :  { %v1051_v26 = vadd.f32 %v1050_v41, %v1049_v47  ;;  %v1120_v30 = vadd.f32 %v1119_v54, %v1118_v28  ;;  %v951_v55 = vsel %vm501_vm1, %v1390_v0, 0.0  ;;  %v1006_v53 = vmul.f32 %v1390_v0, %v1390_v0 }
 0x136   :  { %v1220_v38 = vsel %vm501_vm1, %v1175_v23, 0.0  ;;  %v881_v43 = vmul.f32 0.0, %v1417_v51  ;;  %v952_v36 = vadd.f32 %v951_v55, %v950_v16  ;;  %v1121_v37 = vsel %vm501_vm1, %v904_v15, 0.0 }
 0x137   :  { %v1221_v2 = vadd.f32 %v1220_v38, %v1219_v46  ;;  %v1052_v45 = vsel %vm501_vm1, %v1006_v53, 0.0  ;;  %v1122_v5 = vadd.f32 %v1121_v37, %v1120_v30  ;;  %v1176_v18 = vmul.f32 %v1390_v0, %v904_v15 }
 0x138   :  { %v1420_v28 = vadd.f32 %v1859_v31, %v1852_v25  ;;  %v954_v47 = vadd.f32 %v1744_v57, %v952_v36  ;;  %v1053_v49 = vadd.f32 %v1052_v45, %v1051_v26  ;;  %v1423_v41 = vadd.f32 %v1890_v8, %v1884_v60 }
 0x139   :  { %v2053_v46 = vadd.f32 %v1909_v27, %v1902_v62  ;;  %v1137_v16 = vsel %vm501_vm1, %v1950_v19, 0.0  ;;  %v1124_v53 = vadd.f32 %v1724_v32, %v1122_v5  ;;  %v1222_v0 = vsel %vm501_vm1, %v1176_v18, 0.0 }
 0x13a   :  { %527 = vst.msk [vmem:[%s2175_s2 + $0xc8] sm:$0xff] %vm501_vm1, %v1420_v28  ;;  %v882_v57 = vmul.f32 0.0, %v1420_v28  ;;  %v1068_v25 = vsel %vm501_vm1, %v1014_v3, 0.0  ;;  %v956_v31 = vadd.f32 %v1790_v35, %v954_v47  ;;  %v1055_v60 = vadd.f32 %v1747_v61, %v1053_v49  ;;  %528 = vst.msk [vmem:[%s2175_s2 + $0xd0] sm:$0xff] %vm501_vm1, %v1423_v41 }
 0x13b   :  { %v1223_v8 = vadd.f32 %v1222_v0, %v1221_v2  ;;  %529 = vst.msk [vmem:[%s2175_s2 + $0xd8] sm:$0xff] %vm501_vm1, %v2053_v46  ;;  %v2076_v32 = vsel %vm501_vm1, %v1184_v6, 0.0  ;;  %v1015_v62 = vmul.f32 %v1417_v51, %v881_v43  ;;  %v1185_v27 = vmul.f32 %v1417_v51, %v1417_v51 }
 0x13c   :  { %v1126_v35 = vadd.f32 %v1766_v9, %v1124_v53  ;;  %v1139_v61 = vsel %vm501_vm1, %v1417_v51, 0.0  ;;  %v958_v19 = vadd.f32 %v1838_v17, %v956_v31  ;;  %v1057_v5 = vadd.f32 %v1795_v39, %v1055_v60 }
 0x13d   :  { %v1225_v36 = vadd.f32 %v1750_v63, %v1223_v8  ;;  %v969_v18 = vsel %vm501_vm1, %v881_v43, 0.0  ;;  %v1016_v23 = vmul.f32 %v1420_v28, %v882_v57  ;;  %v1186_v15 = vmul.f32 %v1420_v28, %v1420_v28 }
 0x13e   :  { %v1128_v54 = vadd.f32 %v1814_v50, %v1126_v35  ;;  %v960_v3 = vadd.f32 %v1888_v4, %v958_v19  ;;  %v1059_v26 = vadd.f32 %v1843_v20, %v1057_v5  ;;  %v883_v30 = vmul.f32 0.0, %v1423_v41 }
 0x13f   :  { %v1227_v9 = vadd.f32 %v1798_v40, %v1225_v36  ;;  %v1070_v51 = vsel %vm501_vm1, %v1015_v62, 0.0  ;;  %v1240_v17 = vsel %vm501_vm1, %v1185_v27, 0.0  ;;  %v1141_v63 = vsel %vm501_vm1, %v1420_v28, 0.0  ;;  %v2183_v36 = vld [vmem:[#allocation3_spill] sm:$0xff] }
 0x140   :  { %v1130_v39 = vadd.f32 %v1864_v1, %v1128_v54  ;;  %v962_v43 = vadd.f32 %v1933_v52, %v960_v3  ;;  %v1061_v50 = vadd.f32 %v1893_v11, %v1059_v26  ;;  %v971_v4 = vsel %vm501_vm1, %v882_v57, 0.0  ;;  %v2181_v57 = vld [vmem:[#allocation6_spill] sm:$0xff]  ;;  %v2185_v54 = vld [vmem:[#allocation5_spill] sm:$0xff] }
 0x141   :  { %v1229_v6 = vadd.f32 %v1846_v21, %v1227_v9  ;;  %v1072_v20 = vsel %vm501_vm1, %v1016_v23, 0.0  ;;  %v1242_v38 = vsel %vm501_vm1, %v1186_v15, 0.0  ;;  %v884_v55 = vmul.f32 0.0, %v2053_v46 }
 0x142   :  { %v1132_v40 = vadd.f32 %v1914_v29, %v1130_v39  ;;  %v964_v2 = vadd.f32 %v1964_v34, %v962_v43  ;;  %v1063_v52 = vadd.f32 %v1945_v10, %v1061_v50  ;;  %v1017_v37 = vmul.f32 %v1423_v41, %v883_v30 }
 0x143   :  { %v1231_v1 = vadd.f32 %v1896_v14, %v1229_v6  ;;  %v1187_v21 = vmul.f32 %v1423_v41, %v1423_v41  ;;  %v1429_v45 = vadd.f32 %v1942_v7, %v1936_v56  ;;  %v1432_v29 = vadd.f32 %v1961_v33, %v1952_v22 }
 0x144   :  { %v1134_v11 = vadd.f32 %v1968_v42, %v1132_v40  ;;  %v966_v28 = vadd.f32 %v2018_v24, %v964_v2  ;;  %v1065_v47 = vadd.f32 %v1998_v59, %v1063_v52  ;;  %v973_v34 = vsel %vm501_vm1, %v883_v30, 0.0 }
 0x145   :  { %v1233_v14 = vadd.f32 %v1939_v58, %v1231_v1  ;;  %v1143_v49 = vsel %vm501_vm1, %v1423_v41, 0.0  ;;  %v1018_v42 = vmul.f32 %v2053_v46, %v884_v55  ;;  %v1188_v56 = vmul.f32 %v2053_v46, %v2053_v46  ;;  %530 = vst.msk [vmem:[%s2175_s2 + $0xe0] sm:$0xff] %vm501_vm1, %v1429_v45  ;;  %531 = vst.msk [vmem:[%s2175_s2 + $0xe8] sm:$0xff] %vm501_vm1, %v1432_v29 }
 0x146   :  { %v1136_v10 = vadd.f32 %v2010_v44, %v1134_v11  ;;  %v968_v58 = vadd.f32 %v2037_v12, %v966_v28  ;;  %v1067_v7 = vadd.f32 %v2021_v13, %v1065_v47  ;;  %v1074_v33 = vsel %vm501_vm1, %v1017_v37, 0.0 }
 0x147   :  { %v1235_v22 = vadd.f32 %v1984_v48, %v1233_v14  ;;  %v1244_v44 = vsel %vm501_vm1, %v1187_v21, 0.0  ;;  %v975_v24 = vsel %vm501_vm1, %v884_v55, 0.0  ;;  %v1145_v41 = vsel %vm501_vm1, %v2053_v46, 0.0  ;;  %v2182_v46 = vld [vmem:[#allocation2_spill] sm:$0xff] }
 0x148   :  { %v1138_v59 = vadd.f32 %v1137_v16, %v1136_v10  ;;  %v970_v53 = vadd.f32 %v969_v18, %v968_v58  ;;  %v1069_v0 = vadd.f32 %v1068_v25, %v1067_v7  ;;  %v885_v60 = vmul.f32 0.0, %v1429_v45  ;;  %v2184_v18 = vld [vmem:[#allocation4_spill] sm:$0xff] }
 0x149   :  { %v1237_v31 = vadd.f32 %v2181_v57, %v1235_v22  ;;  %v1076_v13 = vsel %vm501_vm1, %v1018_v42, 0.0  ;;  %v1246_v48 = vsel %vm501_vm1, %v1188_v56, 0.0  ;;  %v1189_v8 = vmul.f32 %v1429_v45, %v1429_v45 }
 0x14a   :  { %v1140_v12 = vadd.f32 %v1139_v61, %v1138_v59  ;;  %v972_v62 = vadd.f32 %v971_v4, %v970_v53  ;;  %v1071_v16 = vadd.f32 %v1070_v51, %v1069_v0  ;;  %v886_v35 = vmul.f32 0.0, %v1432_v29 }
 0x14b   :  { %v1239_v27 = vadd.f32 %v2076_v32, %v1237_v31  ;;  %v1147_v5 = vsel %vm501_vm1, %v1429_v45, 0.0  ;;  %v1435_v25 = vadd.f32 %v2183_v36, %v2182_v46  ;;  %v1438_v23 = vadd.f32 %v2185_v54, %v2184_v18 }
 0x14c   :  { %v1142_v19 = vadd.f32 %v1141_v63, %v1140_v12  ;;  %v1073_v61 = vadd.f32 %v1072_v20, %v1071_v16  ;;  %v974_v3 = vadd.f32 %v973_v34, %v972_v62  ;;  %v1019_v26 = vmul.f32 %v1429_v45, %v885_v60 }
 0x14d   :  { %v1241_v15 = vadd.f32 %v1240_v17, %v1239_v27  ;;  %v977_v30 = vsel %vm501_vm1, %v885_v60, 0.0  ;;  %v1248_v51 = vsel %vm501_vm1, %v1189_v8, 0.0  ;;  %532 = vst.msk [vmem:[%s2175_s2 + $0xf0] sm:$0xff] %vm501_vm1, %v1435_v25  ;;  %v887_v32 = vmul.f32 0.0, %v1435_v25  ;;  %533 = vst.msk [vmem:[%s2175_s2 + $0xf8] sm:$0xff] %vm501_vm1, %v1438_v23 }
 0x14e   :  { %v1144_v9 = vadd.f32 %v1143_v49, %v1142_v19  ;;  %v1075_v17 = vadd.f32 %v1074_v33, %v1073_v61  ;;  %v976_v63 = vadd.f32 %v975_v24, %v974_v3  ;;  %v1020_v43 = vmul.f32 %v1432_v29, %v886_v35 }
 0x14f   :  { %v1243_v39 = vadd.f32 %v1242_v38, %v1241_v15  ;;  %v979_v6 = vsel %vm501_vm1, %v886_v35, 0.0  ;;  %v1190_v4 = vmul.f32 %v1432_v29, %v1432_v29  ;;  %v888_v20 = vmul.f32 0.0, %v1438_v23 }
 0x150   :  { %v1146_v50 = vadd.f32 %v1145_v41, %v1144_v9  ;;  %v1077_v55 = vadd.f32 %v1076_v13, %v1075_v17  ;;  %v978_v1 = vadd.f32 %v977_v30, %v976_v63  ;;  %v1078_v2 = vsel %vm501_vm1, %v1019_v26, 0.0  ;;  %v921_v63 = vld [vmem:[%s2174_s3] sm:$0xf] }
 0x151   :  { %v1245_v40 = vadd.f32 %v1244_v44, %v1243_v39  ;;  %v1149_v37 = vsel %vm501_vm1, %v1432_v29, 0.0  ;;  %v981_v11 = vsel %vm501_vm1, %v887_v32, 0.0  ;;  %v1021_v21 = vmul.f32 %v1435_v25, %v887_v32 }
 0x152   :  { %v1148_v52 = vadd.f32 %v1147_v5, %v1146_v50  ;;  %v1079_v45 = vadd.f32 %v1078_v2, %v1077_v55  ;;  %v980_v28 = vadd.f32 %v979_v6, %v978_v1  ;;  %v1080_v47 = vsel %vm501_vm1, %v1020_v43, 0.0 }
 0x153   :  { %v1247_v38 = vadd.f32 %v1246_v48, %v1245_v40  ;;  %v1250_v34 = vsel %vm501_vm1, %v1190_v4, 0.0  ;;  %v1191_v10 = vmul.f32 %v1435_v25, %v1435_v25  ;;  %v1022_v49 = vmul.f32 %v1438_v23, %v888_v20 }
 0x154   :  { %v1150_v14 = vadd.f32 %v1149_v37, %v1148_v52  ;;  %v1081_v56 = vadd.f32 %v1080_v47, %v1079_v45  ;;  %v982_v58 = vadd.f32 %v981_v11, %v980_v28  ;;  %v1151_v7 = vsel %vm501_vm1, %v1435_v25, 0.0 }
 0x155   :  { %v1249_v42 = vadd.f32 %v1248_v51, %v1247_v38  ;;  %v1082_v29 = vsel %vm501_vm1, %v1021_v21, 0.0  ;;  %v983_v33 = vsel %vm501_vm1, %v888_v20, 0.0  ;;  %v1192_v59 = vmul.f32 %v1438_v23, %v1438_v23 }
 0x156   :  { %v1152_v22 = vadd.f32 %v1151_v7, %v1150_v14  ;;  %v1083_v24 = vadd.f32 %v1082_v29, %v1081_v56  ;;  %v984_v41 = vadd.f32 %v983_v33, %v982_v58  ;;  %v1153_v53 = vsel %vm501_vm1, %v1438_v23, 0.0 }
 0x157   :  { %v1251_v44 = vadd.f32 %v1250_v34, %v1249_v42  ;;  %v1252_v0 = vsel %vm501_vm1, %v1191_v10, 0.0  ;;  %v1084_v57 = vsel %vm501_vm1, %v1022_v49, 0.0  ;;  %v1254_v8 = vsel %vm501_vm1, %v1192_v59, 0.0 }
 0x158   :  { %v1154_v31 = vadd.f32 %v1153_v53, %v1152_v22  ;;  %v985_v12 = vrot.slane %v984_v41, 4  ;;  %v1085_v13 = vadd.f32 %v1084_v57, %v1083_v24 }
 0x159   :  { %v1253_v60 = vadd.f32 %v1252_v0, %v1251_v44 }
 0x15a   :  { %v1155_v48 = vrot.slane %v1154_v31, 4  ;;  %v986_v62 = vadd.f32 %v985_v12, %v984_v41  ;;  %v1086_v16 = vrot.slane %v1085_v13, 4 }
 0x15b   :  { %v1255_v27 = vadd.f32 %v1254_v8, %v1253_v60 }
 0x15c   :  { %v1156_v35 = vadd.f32 %v1155_v48, %v1154_v31  ;;  %v987_v19 = vrot.slane %v986_v62, 2  ;;  %v1087_v5 = vadd.f32 %v1086_v16, %v1085_v13 }
 0x15d   :  { %v1256_v46 = vrot.slane %v1255_v27, 4 }
 0x15e   :  { %v1157_v36 = vrot.slane %v1156_v35, 2  ;;  %v988_v25 = vadd.f32 %v987_v19, %v986_v62  ;;  %v1088_v18 = vrot.slane %v1087_v5, 2 }
 0x15f   :  { %v1257_v54 = vadd.f32 %v1256_v46, %v1255_v27 }
 0x160   :  { %v1158_v23 = vadd.f32 %v1157_v36, %v1156_v35  ;;  %v989_v61 = vrot.slane %v988_v25, 1  ;;  %v1089_v15 = vadd.f32 %v1088_v18, %v1087_v5 }
 0x161   :  { %v1258_v3 = vrot.slane %v1257_v54, 2 }
 0x162   :  { %v1159_v26 = vrot.slane %v1158_v23, 1  ;;  %v1090_v9 = vrot.slane %v1089_v15, 1  ;;  %v990_v32 = vadd.f32 %v989_v61, %v988_v25 }
 0x163   :  { %v1259_v30 = vadd.f32 %v1258_v3, %v1257_v54 }
 0x164   :  { %v1160_v51 = vadd.f32 %v1159_v26, %v1158_v23  ;;  %v1091_v39 = vadd.f32 %v1090_v9, %v1089_v15 }
 0x165   :  { %v1260_v17 = vrot.slane %v1259_v30, 1 }
 0x166   :  { %v1263_v50 = vsel %vm1262_vm2, %v990_v32, %v1091_v39 }
 0x167   :  { %v1261_v43 = vadd.f32 %v1260_v17, %v1259_v30  ;;  %v1265_v6 = vsel %vm1264_vm3, %v1263_v50, %v1160_v51 }
 0x169   :  { %v1267_v4 = vsel %vm1266_vm4, %v1265_v6, %v1261_v43 }
 0x16a   :  { %v1268_v20 = vadd.f32 %v1267_v4, %v921_v63 }
 0x16c   :  { %1270 = vst.msk [vmem:[%s2174_s3] sm:$0xf] %vm18_vm0, %v1268_v20 }

// kernel: d_loss.10
= control target key start
LH: loop header
LB: loop body
LE: loop exit
PB: predicated region body
PF: predicated region fallthrough
CT: control target
= control target key end

     0   :  { %v205_v14 = vlaneseq  ;;  %vm772_vm0 = vcmask 257024   ;;  %s1238_s1 = inlined_call_operand.vmem [shape: f32[4,32], index: 1, kind: input, shape index: {}]   ;;  %s1239_s2 = inlined_call_operand.vmem [shape: f32[1,32], index: 2, kind: input, shape index: {}]   ;;  %s1240_s3 = inlined_call_operand.vmem [shape: f32[1,32], index: 3, kind: input, shape index: {}]   ;;  %s1241_s0 = inlined_call_operand.vmem [shape: f32[256,32], index: 0, kind: input, shape index: {}]   ;;  %s1242_s4 = inlined_call_operand.vmem [shape: bf16[256,32], index: 4, kind: output, shape index: {}]  }
   0x1   :  { %v17_v0 = vld [vmem:[%s1238_s1] sm:$0x1]  ;;  %v19_v1 = vld [vmem:[%s1238_s1 + $0x1] sm:$0x1]  ;;  %v21_v2 = vld [vmem:[%s1238_s1 + $0x2] sm:$0x1] }
   0x2   :  { %v18_v3 = vmul.f32 0.0078125, %v17_v0  ;;  %v20_v4 = vmul.f32 0.0078125, %v19_v1  ;;  %v22_v5 = vmul.f32 0.0078125, %v21_v2  ;;  %v23_v6 = vld [vmem:[%s1238_s1 + $0x3] sm:$0x1]  ;;  %v206_v15 = vshrl.u32 %v205_v14, 7 }
   0x3   :  { %v24_v7 = vmul.f32 0.0078125, %v23_v6  ;;  %v25_v16 = vld [vmem:[%s1239_s2] sm:$0x1]  ;;  %v453_v29 = vld [vmem:[%s1241_s0 + $0x8] sm:$0xff]  ;;  %v470_v35 = vld [vmem:[%s1241_s0 + $0x90] sm:$0xff] }
   0x4   :  { %v27_v8 = vmul.f32 %v18_v3, %v18_v3  ;;  %v32_v9 = vmul.f32 %v22_v5, %v22_v5  ;;  %v207_v17 = vsub.s32 0, %v206_v15  ;;  %v26_v21 = vld [vmem:[%s1240_s3] sm:$0x1]  ;;  %v469_v34 = vld [vmem:[%s1241_s0 + $0x88] sm:$0xff]  ;;  %v454_v37 = vld [vmem:[%s1241_s0 + $0x10] sm:$0xff] }
   0x5   :  { %v452_v28 = vld [vmem:[%s1241_s0] sm:$0xff]  ;;  %v455_v38 = vld [vmem:[%s1241_s0 + $0x18] sm:$0xff]  ;;  %v457_v43 = vld [vmem:[%s1241_s0 + $0x28] sm:$0xff] }
   0x6   :  { %v28_v10 = vsub.f32 %v20_v4, %v27_v8  ;;  %v33_v11 = vsub.f32 %v24_v7, %v32_v9  ;;  %v468_v33 = vld [vmem:[%s1241_s0 + $0x80] sm:$0xff]  ;;  %v458_v44 = vld [vmem:[%s1241_s0 + $0x30] sm:$0xff]  ;;  %v459_v45 = vld [vmem:[%s1241_s0 + $0x38] sm:$0xff] }
   0x7   :  { %v456_v39 = vld [vmem:[%s1241_s0 + $0x20] sm:$0xff]  ;;  %v461_v47 = vld [vmem:[%s1241_s0 + $0x48] sm:$0xff]  ;;  %v462_v48 = vld [vmem:[%s1241_s0 + $0x50] sm:$0xff] }
   0x8   :  { %v29_v12 = vadd.f32 1e-05, %v28_v10  ;;  %v34_v13 = vadd.f32 1e-05, %v33_v11  ;;  %v460_v46 = vld [vmem:[%s1241_s0 + $0x40] sm:$0xff]  ;;  %v463_v57 = vld [vmem:[%s1241_s0 + $0x58] sm:$0xff] }
   0x9   :  { %v464_v58 = vld [vmem:[%s1241_s0 + $0x60] sm:$0xff]  ;;  %v465_v59 = vld [vmem:[%s1241_s0 + $0x68] sm:$0xff] }
   0xa   :  { %873 = vrsqrt.f32 %v29_v12 }
   0xb   :  { %875 = vrsqrt.f32 %v34_v13 }
  0x14   :  { %v874_v18 = vpop.eup %873 }
  0x15   :  { %v876_v19 = vpop.eup %875  ;;  %v31_v20 = vmul.f32 %v874_v18, %v25_v16 }
  0x16   :  { %v36_v22 = vmul.f32 %v876_v19, %v25_v16 }
  0x17   :  { %v37_v23 = vmul.f32 %v31_v20, %v18_v3  ;;  %v208_v24 = vrot.slane %v31_v20, %v207_v17 }
  0x18   :  { %v39_v25 = vmul.f32 %v36_v22, %v22_v5  ;;  %v278_v26 = vrot.slane %v36_v22, %v207_v17 }
  0x19   :  { %v38_v27 = vsub.f32 %v26_v21, %v37_v23  ;;  %v226_v30 = vmul.f32 0.0, %v208_v24 }
  0x1a   :  { %v40_v31 = vsub.f32 %v26_v21, %v39_v25  ;;  %v280_v32 = vmul.f32 0.0, %v278_v26 }
  0x1b   :  { %v348_v36 = vrot.slane %v38_v27, %v207_v17  ;;  %v944_v40 = vadd.f32 %v278_v26, %v226_v30 }
  0x1c   :  { %v946_v41 = vadd.f32 %v280_v32, %v208_v24  ;;  %v948_v42 = vrot.slane %v40_v31, %v207_v17 }
  0x1d   :  { %v968_v49 = vmul.f32 0.0, %v348_v36  ;;  %v971_v50 = vmul.f32 %v468_v33, %v944_v40  ;;  %v974_v51 = vmul.f32 %v469_v34, %v944_v40  ;;  %v977_v52 = vmul.f32 %v470_v35, %v944_v40 }
  0x1e   :  { %v388_v53 = vmul.f32 0.0, %v948_v42  ;;  %v484_v54 = vmul.f32 %v452_v28, %v946_v41  ;;  %v485_v55 = vmul.f32 %v453_v29, %v946_v41  ;;  %v486_v56 = vmul.f32 %v454_v37, %v946_v41 }
  0x1f   :  { %v487_v60 = vmul.f32 %v455_v38, %v946_v41  ;;  %v488_v61 = vmul.f32 %v456_v39, %v946_v41  ;;  %v489_v62 = vmul.f32 %v457_v43, %v946_v41  ;;  %v490_v63 = vmul.f32 %v458_v44, %v946_v41 }
  0x20   :  { %v996_v0 = vadd.f32 %v388_v53, %v348_v36  ;;  %v491_v1 = vmul.f32 %v459_v45, %v946_v41  ;;  %v492_v2 = vmul.f32 %v460_v46, %v946_v41  ;;  %v493_v3 = vmul.f32 %v461_v47, %v946_v41 }
  0x21   :  { %v494_v4 = vmul.f32 %v462_v48, %v946_v41  ;;  %v495_v5 = vmul.f32 %v463_v57, %v946_v41  ;;  %v1004_v6 = vmul.f32 %v464_v58, %v946_v41  ;;  %v1007_v7 = vmul.f32 %v465_v59, %v946_v41  ;;  %v466_v59 = vld [vmem:[%s1241_s0 + $0x70] sm:$0xff] }
  0x22   :  { %v516_v8 = vadd.f32 %v484_v54, %v996_v0  ;;  %v517_v9 = vadd.f32 %v485_v55, %v996_v0  ;;  %v518_v10 = vadd.f32 %v486_v56, %v996_v0  ;;  %v519_v11 = vadd.f32 %v487_v60, %v996_v0  ;;  %v467_v60 = vld [vmem:[%s1241_s0 + $0x78] sm:$0xff] }
  0x23   :  { %v520_v12 = vadd.f32 %v488_v61, %v996_v0  ;;  %v521_v13 = vadd.f32 %v489_v62, %v996_v0  ;;  %v522_v14 = vadd.f32 %v490_v63, %v996_v0  ;;  %v523_v15 = vadd.f32 %v491_v1, %v996_v0 }
  0x24   :  { %vm548_vm1 = vcmp.ge.f32.partialorder %v516_v8, 0.0  ;;  %v580_v16 = vmul.f32 0.2, %v516_v8  ;;  %vm549_vm2 = vcmp.ge.f32.partialorder %v517_v9, 0.0  ;;  %v581_v17 = vmul.f32 0.2, %v517_v9 }
  0x25   :  { %vm550_vm3 = vcmp.ge.f32.partialorder %v518_v10, 0.0  ;;  %v582_v18 = vmul.f32 0.2, %v518_v10  ;;  %vm551_vm4 = vcmp.ge.f32.partialorder %v519_v11, 0.0  ;;  %v583_v19 = vmul.f32 0.2, %v519_v11 }
  0x26   :  { %v612_v20 = vsel %vm548_vm1, %v516_v8, %v580_v16  ;;  %v613_v21 = vsel %vm549_vm2, %v517_v9, %v581_v17  ;;  %vm552_vm5 = vcmp.ge.f32.partialorder %v520_v12, 0.0  ;;  %v584_v22 = vmul.f32 0.2, %v520_v12 }
  0x27   :  { %v841_v23 = vpack.c.bf16 %v612_v20, %v612_v20  ;;  %v842_v24 = vpack.c.bf16 %v613_v21, %v613_v21  ;;  %v614_v25 = vsel %vm550_vm3, %v518_v10, %v582_v18  ;;  %v615_v26 = vsel %vm551_vm4, %v519_v11, %v583_v19 }
  0x28   :  { %v843_v27 = vpack.c.bf16 %v614_v25, %v614_v25  ;;  %v844_v28 = vpack.c.bf16 %v615_v26, %v615_v26  ;;  %v616_v29 = vsel %vm552_vm5, %v520_v12, %v584_v22  ;;  %vm553_vm6 = vcmp.ge.f32.partialorder %v521_v13, 0.0  ;;  %v473_v22 = vld [vmem:[%s1241_s0 + $0xa8] sm:$0xff] }
  0x29   :  { %773 = vst.msk [vmem:[%s1242_s4] sm:$0xf] %vm772_vm0, %v841_v23  ;;  %774 = vst.msk [vmem:[%s1242_s4 + $0x4] sm:$0xf] %vm772_vm0, %v842_v24  ;;  %v845_v30 = vpack.c.bf16 %v616_v29, %v616_v29  ;;  %v585_v31 = vmul.f32 0.2, %v521_v13  ;;  %v524_v34 = vadd.f32 %v492_v2, %v996_v0  ;;  %v525_v35 = vadd.f32 %v493_v3, %v996_v0 }
  0x2a   :  { %vm554_vm7 = vcmp.ge.f32.partialorder %v522_v14, 0.0  ;;  %v586_v32 = vmul.f32 0.2, %v522_v14  ;;  %775 = vst.msk [vmem:[%s1242_s4 + $0x8] sm:$0xf] %vm772_vm0, %v843_v27  ;;  %vm555_vm8 = vcmp.ge.f32.partialorder %v523_v15, 0.0  ;;  %v526_v38 = vadd.f32 %v494_v4, %v996_v0 }
  0x2b   :  { %776 = vst.msk [vmem:[%s1242_s4 + $0xc] sm:$0xf] %vm772_vm0, %v844_v28  ;;  %v587_v33 = vmul.f32 0.2, %v523_v15  ;;  %777 = vst.msk [vmem:[%s1242_s4 + $0x10] sm:$0xf] %vm772_vm0, %v845_v30  ;;  %v617_v36 = vsel %vm553_vm6, %v521_v13, %v585_v31  ;;  %v527_v39 = vadd.f32 %v495_v5, %v996_v0  ;;  %v528_v57 = vadd.f32 %v1004_v6, %v996_v0 }
  0x2c   :  { %v618_v37 = vsel %vm554_vm7, %v522_v14, %v586_v32  ;;  %v846_v43 = vpack.c.bf16 %v617_v36, %v617_v36  ;;  %vm556_vm9 = vcmp.ge.f32.partialorder %v524_v34, 0.0  ;;  %v588_v47 = vmul.f32 0.2, %v524_v34  ;;  %v471_v2 = vld [vmem:[%s1241_s0 + $0x98] sm:$0xff]  ;;  %v472_v3 = vld [vmem:[%s1241_s0 + $0xa0] sm:$0xff]  ;;  %v474_v23 = vld [vmem:[%s1241_s0 + $0xb0] sm:$0xff] }
  0x2d   :  { %v847_v44 = vpack.c.bf16 %v618_v37, %v618_v37  ;;  %v619_v45 = vsel %vm555_vm8, %v523_v15, %v587_v33  ;;  %vm557_vm10 = vcmp.ge.f32.partialorder %v525_v35, 0.0  ;;  %v589_v48 = vmul.f32 0.2, %v525_v35  ;;  %v475_v28 = vld [vmem:[%s1241_s0 + $0xb8] sm:$0xff]  ;;  %v476_v29 = vld [vmem:[%s1241_s0 + $0xc0] sm:$0xff] }
  0x2e   :  { %v848_v46 = vpack.c.bf16 %v619_v45, %v619_v45  ;;  %778 = vst.msk [vmem:[%s1242_s4 + $0x14] sm:$0xf] %vm772_vm0, %v846_v43  ;;  %vm558_vm11 = vcmp.ge.f32.partialorder %v526_v38, 0.0  ;;  %v590_v53 = vmul.f32 0.2, %v526_v38  ;;  %vm559_vm12 = vcmp.ge.f32.partialorder %v527_v39, 0.0 }
  0x2f   :  { %779 = vst.msk [vmem:[%s1242_s4 + $0x18] sm:$0xf] %vm772_vm0, %v847_v44  ;;  %v591_v54 = vmul.f32 0.2, %v527_v39  ;;  %v620_v55 = vsel %vm556_vm9, %v524_v34, %v588_v47  ;;  %v621_v56 = vsel %vm557_vm10, %v525_v35, %v589_v48  ;;  %v529_v58 = vadd.f32 %v1007_v7, %v996_v0 }
  0x30   :  { %780 = vst.msk [vmem:[%s1242_s4 + $0x1c] sm:$0xf] %vm772_vm0, %v848_v46  ;;  %v849_v61 = vpack.c.bf16 %v620_v55, %v620_v55  ;;  %v850_v62 = vpack.c.bf16 %v621_v56, %v621_v56  ;;  %v622_v63 = vsel %vm558_vm11, %v526_v38, %v590_v53  ;;  %vm560_vm13 = vcmp.ge.f32.partialorder %v528_v57, 0.0  ;;  %v477_v38 = vld [vmem:[%s1241_s0 + $0xc8] sm:$0xff] }
  0x31   :  { %v623_v1 = vsel %vm559_vm12, %v527_v39, %v591_v54  ;;  %v851_v4 = vpack.c.bf16 %v622_v63, %v622_v63  ;;  %v592_v6 = vmul.f32 0.2, %v528_v57  ;;  %vm561_vm14 = vcmp.ge.f32.partialorder %v529_v58, 0.0 }
  0x32   :  { %v852_v5 = vpack.c.bf16 %v623_v1, %v623_v1  ;;  %781 = vst.msk [vmem:[%s1242_s4 + $0x20] sm:$0xf] %vm772_vm0, %v849_v61  ;;  %782 = vst.msk [vmem:[%s1242_s4 + $0x24] sm:$0xf] %vm772_vm0, %v850_v62  ;;  %v593_v7 = vmul.f32 0.2, %v529_v58  ;;  %v498_v8 = vmul.f32 %v466_v59, %v946_v41  ;;  %v499_v9 = vmul.f32 %v467_v60, %v946_v41 }
  0x33   :  { %783 = vst.msk [vmem:[%s1242_s4 + $0x28] sm:$0xf] %vm772_vm0, %v851_v4  ;;  %v624_v10 = vsel %vm560_vm13, %v528_v57, %v592_v6  ;;  %v1089_v11 = vadd.f32 %v948_v42, %v968_v49  ;;  %v503_v12 = vmul.f32 %v471_v2, %v944_v40  ;;  %v504_v13 = vmul.f32 %v472_v3, %v944_v40  ;;  %v478_v59 = vld [vmem:[%s1241_s0 + $0xd0] sm:$0xff]  ;;  %v479_v62 = vld [vmem:[%s1241_s0 + $0xd8] sm:$0xff] }
  0x34   :  { %784 = vst.msk [vmem:[%s1242_s4 + $0x2c] sm:$0xf] %vm772_vm0, %v852_v5  ;;  %v853_v41 = vpack.c.bf16 %v624_v10, %v624_v10  ;;  %v625_v14 = vsel %vm561_vm14, %v529_v58, %v593_v7  ;;  %v530_v15 = vadd.f32 %v498_v8, %v996_v0  ;;  %v531_v16 = vadd.f32 %v499_v9, %v996_v0  ;;  %v480_v7 = vld [vmem:[%s1241_s0 + $0xe0] sm:$0xff]  ;;  %v481_v8 = vld [vmem:[%s1241_s0 + $0xe8] sm:$0xff] }
  0x35   :  { %v854_v17 = vpack.c.bf16 %v625_v14, %v625_v14  ;;  %v532_v18 = vadd.f32 %v971_v50, %v1089_v11  ;;  %v533_v19 = vadd.f32 %v974_v51, %v1089_v11  ;;  %v534_v42 = vadd.f32 %v977_v52, %v1089_v11  ;;  %v483_v14 = vld [vmem:[%s1241_s0 + $0xf8] sm:$0xff] }
  0x36   :  { %785 = vst.msk [vmem:[%s1242_s4 + $0x30] sm:$0xf] %vm772_vm0, %v853_v41  ;;  %vm562_vm15 = vcmp.ge.f32.partialorder %v530_v15, 0.0  ;;  %v594_v49 = vmul.f32 0.2, %v530_v15  ;;  %vm563_vm1 = vcmp.ge.f32.partialorder %v531_v16, 0.0  ;;  %v535_v33 = vadd.f32 %v503_v12, %v1089_v11 }
  0x37   :  { %v595_v20 = vmul.f32 0.2, %v531_v16  ;;  %786 = vst.msk [vmem:[%s1242_s4 + $0x34] sm:$0xf] %vm772_vm0, %v854_v17  ;;  %vm564_vm2 = vcmp.ge.f32.partialorder %v532_v18, 0.0  ;;  %vm565_vm3 = vcmp.ge.f32.partialorder %v533_v19, 0.0  ;;  %v536_v35 = vadd.f32 %v504_v13, %v1089_v11 }
  0x38   :  { %v596_v50 = vmul.f32 0.2, %v532_v18  ;;  %v597_v51 = vmul.f32 0.2, %v533_v19  ;;  %v626_v0 = vsel %vm562_vm15, %v530_v15, %v594_v49  ;;  %vm566_vm4 = vcmp.ge.f32.partialorder %v534_v42, 0.0  ;;  %v482_v41 = vld [vmem:[%s1241_s0 + $0xf0] sm:$0xff] }
  0x39   :  { %v627_v52 = vsel %vm563_vm1, %v531_v16, %v595_v20  ;;  %v598_v21 = vmul.f32 0.2, %v534_v42  ;;  %v855_v24 = vpack.c.bf16 %v626_v0, %v626_v0  ;;  %v505_v36 = vmul.f32 %v473_v22, %v944_v40 }
  0x3a   :  { %v856_v25 = vpack.c.bf16 %v627_v52, %v627_v52  ;;  %v628_v26 = vsel %vm564_vm2, %v532_v18, %v596_v50  ;;  %v629_v27 = vsel %vm565_vm3, %v533_v19, %v597_v51  ;;  %v506_v37 = vmul.f32 %v474_v23, %v944_v40 }
  0x3b   :  { %v857_v30 = vpack.c.bf16 %v628_v26, %v628_v26  ;;  %v858_v31 = vpack.c.bf16 %v629_v27, %v629_v27  ;;  %v630_v32 = vsel %vm566_vm4, %v534_v42, %v598_v21  ;;  %787 = vst.msk [vmem:[%s1242_s4 + $0x38] sm:$0xf] %vm772_vm0, %v855_v24  ;;  %vm567_vm5 = vcmp.ge.f32.partialorder %v535_v33, 0.0 }
  0x3c   :  { %788 = vst.msk [vmem:[%s1242_s4 + $0x3c] sm:$0xf] %vm772_vm0, %v856_v25  ;;  %v859_v34 = vpack.c.bf16 %v630_v32, %v630_v32  ;;  %v599_v39 = vmul.f32 0.2, %v535_v33  ;;  %v507_v43 = vmul.f32 %v475_v28, %v944_v40  ;;  %v508_v44 = vmul.f32 %v476_v29, %v944_v40 }
  0x3d   :  { %789 = vst.msk [vmem:[%s1242_s4 + $0x40] sm:$0xf] %vm772_vm0, %v857_v30  ;;  %790 = vst.msk [vmem:[%s1242_s4 + $0x44] sm:$0xf] %vm772_vm0, %v858_v31  ;;  %vm568_vm6 = vcmp.ge.f32.partialorder %v536_v35, 0.0  ;;  %v537_v46 = vadd.f32 %v505_v36, %v1089_v11  ;;  %v538_v47 = vadd.f32 %v506_v37, %v1089_v11  ;;  %v509_v55 = vmul.f32 %v477_v38, %v944_v40 }
  0x3e   :  { %791 = vst.msk [vmem:[%s1242_s4 + $0x48] sm:$0xf] %vm772_vm0, %v859_v34  ;;  %v600_v45 = vmul.f32 0.2, %v536_v35  ;;  %v631_v48 = vsel %vm567_vm5, %v535_v33, %v599_v39  ;;  %v539_v53 = vadd.f32 %v507_v43, %v1089_v11  ;;  %v540_v54 = vadd.f32 %v508_v44, %v1089_v11 }
  0x3f   :  { %v860_v56 = vpack.c.bf16 %v631_v48, %v631_v48  ;;  %vm569_vm7 = vcmp.ge.f32.partialorder %v537_v46, 0.0  ;;  %v601_v58 = vmul.f32 0.2, %v537_v46  ;;  %vm570_vm8 = vcmp.ge.f32.partialorder %v538_v47, 0.0 }
  0x40   :  { %v632_v57 = vsel %vm568_vm6, %v536_v35, %v600_v45  ;;  %v602_v61 = vmul.f32 0.2, %v538_v47  ;;  %vm571_vm9 = vcmp.ge.f32.partialorder %v539_v53, 0.0  ;;  %v603_v1 = vmul.f32 0.2, %v539_v53 }
  0x41   :  { %v861_v60 = vpack.c.bf16 %v632_v57, %v632_v57  ;;  %792 = vst.msk [vmem:[%s1242_s4 + $0x4c] sm:$0xf] %vm772_vm0, %v860_v56  ;;  %v633_v63 = vsel %vm569_vm7, %v537_v46, %v601_v58  ;;  %vm572_vm10 = vcmp.ge.f32.partialorder %v540_v54, 0.0  ;;  %v604_v2 = vmul.f32 0.2, %v540_v54 }
  0x42   :  { %v862_v3 = vpack.c.bf16 %v633_v63, %v633_v63  ;;  %v634_v4 = vsel %vm570_vm8, %v538_v47, %v602_v61  ;;  %v541_v5 = vadd.f32 %v509_v55, %v1089_v11  ;;  %v510_v6 = vmul.f32 %v478_v59, %v944_v40 }
  0x43   :  { %793 = vst.msk [vmem:[%s1242_s4 + $0x50] sm:$0xf] %vm772_vm0, %v861_v60  ;;  %v863_v9 = vpack.c.bf16 %v634_v4, %v634_v4  ;;  %v635_v10 = vsel %vm571_vm9, %v539_v53, %v603_v1  ;;  %v636_v12 = vsel %vm572_vm10, %v540_v54, %v604_v2  ;;  %v511_v13 = vmul.f32 %v479_v62, %v944_v40 }
  0x44   :  { %794 = vst.msk [vmem:[%s1242_s4 + $0x54] sm:$0xf] %vm772_vm0, %v862_v3  ;;  %v864_v15 = vpack.c.bf16 %v635_v10, %v635_v10  ;;  %v865_v16 = vpack.c.bf16 %v636_v12, %v636_v12  ;;  %vm573_vm11 = vcmp.ge.f32.partialorder %v541_v5, 0.0  ;;  %v605_v17 = vmul.f32 0.2, %v541_v5 }
  0x45   :  { %795 = vst.msk [vmem:[%s1242_s4 + $0x58] sm:$0xf] %vm772_vm0, %v863_v9  ;;  %v542_v18 = vadd.f32 %v510_v6, %v1089_v11  ;;  %v543_v19 = vadd.f32 %v511_v13, %v1089_v11  ;;  %v512_v42 = vmul.f32 %v480_v7, %v944_v40  ;;  %v513_v49 = vmul.f32 %v481_v8, %v944_v40 }
  0x46   :  { %796 = vst.msk [vmem:[%s1242_s4 + $0x5c] sm:$0xf] %vm772_vm0, %v864_v15  ;;  %797 = vst.msk [vmem:[%s1242_s4 + $0x60] sm:$0xf] %vm772_vm0, %v865_v16  ;;  %v637_v20 = vsel %vm573_vm11, %v541_v5, %v605_v17  ;;  %v514_v50 = vmul.f32 %v482_v41, %v944_v40  ;;  %v515_v51 = vmul.f32 %v483_v14, %v944_v40 }
  0x47   :  { %v866_v0 = vpack.c.bf16 %v637_v20, %v637_v20  ;;  %vm574_vm12 = vcmp.ge.f32.partialorder %v542_v18, 0.0  ;;  %v606_v52 = vmul.f32 0.2, %v542_v18  ;;  %vm575_vm13 = vcmp.ge.f32.partialorder %v543_v19, 0.0 }
  0x48   :  { %v607_v21 = vmul.f32 0.2, %v543_v19  ;;  %v544_v22 = vadd.f32 %v512_v42, %v1089_v11  ;;  %v545_v23 = vadd.f32 %v513_v49, %v1089_v11  ;;  %v546_v24 = vadd.f32 %v514_v50, %v1089_v11 }
  0x49   :  { %798 = vst.msk [vmem:[%s1242_s4 + $0x64] sm:$0xf] %vm772_vm0, %v866_v0  ;;  %v638_v25 = vsel %vm574_vm12, %v542_v18, %v606_v52  ;;  %v547_v26 = vadd.f32 %v515_v51, %v1089_v11 }
  0x4a   :  { %v867_v40 = vpack.c.bf16 %v638_v25, %v638_v25  ;;  %v639_v27 = vsel %vm575_vm13, %v543_v19, %v607_v21  ;;  %vm576_vm14 = vcmp.ge.f32.partialorder %v544_v22, 0.0  ;;  %v608_v28 = vmul.f32 0.2, %v544_v22 }
  0x4b   :  { %v868_v29 = vpack.c.bf16 %v639_v27, %v639_v27  ;;  %vm577_vm15 = vcmp.ge.f32.partialorder %v545_v23, 0.0  ;;  %v609_v30 = vmul.f32 0.2, %v545_v23  ;;  %vm578_vm1 = vcmp.ge.f32.partialorder %v546_v24, 0.0 }
  0x4c   :  { %799 = vst.msk [vmem:[%s1242_s4 + $0x68] sm:$0xf] %vm772_vm0, %v867_v40  ;;  %v640_v31 = vsel %vm576_vm14, %v544_v22, %v608_v28  ;;  %v610_v32 = vmul.f32 0.2, %v546_v24  ;;  %vm579_vm2 = vcmp.ge.f32.partialorder %v547_v26, 0.0 }
  0x4d   :  { %v611_v33 = vmul.f32 0.2, %v547_v26  ;;  %800 = vst.msk [vmem:[%s1242_s4 + $0x6c] sm:$0xf] %vm772_vm0, %v868_v29  ;;  %v869_v11 = vpack.c.bf16 %v640_v31, %v640_v31  ;;  %v641_v34 = vsel %vm577_vm15, %v545_v23, %v609_v30 }
  0x4e   :  { %v870_v35 = vpack.c.bf16 %v641_v34, %v641_v34  ;;  %v642_v36 = vsel %vm578_vm1, %v546_v24, %v610_v32 }
  0x4f   :  { %v643_v37 = vsel %vm579_vm2, %v547_v26, %v611_v33  ;;  %801 = vst.msk [vmem:[%s1242_s4 + $0x70] sm:$0xf] %vm772_vm0, %v869_v11  ;;  %v871_v38 = vpack.c.bf16 %v642_v36, %v642_v36 }
  0x50   :  { %v872_v39 = vpack.c.bf16 %v643_v37, %v643_v37  ;;  %802 = vst.msk [vmem:[%s1242_s4 + $0x74] sm:$0xf] %vm772_vm0, %v870_v35 }
  0x51   :  { %803 = vst.msk [vmem:[%s1242_s4 + $0x78] sm:$0xf] %vm772_vm0, %v871_v38 }
  0x52   :  { %804 = vst.msk [vmem:[%s1242_s4 + $0x7c] sm:$0xf] %vm772_vm0, %v872_v39 }

// kernel: d_loss.11
= control target key start
LH: loop header
LB: loop body
LE: loop exit
PB: predicated region body
PF: predicated region fallthrough
CT: control target
= control target key end

     0   :  { %vm18_vm0 = vcmask 519168   ;;  %v913_v48 = vmov 0.0   ;;  %vm502_vm1 = vcmask 523264   ;;  %vm711_vm2 = vcmask 1040384   ;;  %s1153_s1 = inlined_call_operand.vmem [shape: bf16[512,64], index: 1, kind: input, shape index: {}]   ;;  %s1154_s0 = inlined_call_operand.vmem [shape: bf16[64,512], index: 0, kind: input, shape index: {}]   ;;  %s1155_s3 = inlined_call_operand.vmem [shape: f32[4,64], index: 3, kind: output, shape index: {1}]   ;;  %s1156_s2 = inlined_call_operand.vmem [shape: f32[64,64], index: 2, kind: output, shape index: {0}]  }
   0x1   :  { %v857_v0 = vld [vmem:[%s1153_s1 + $0x40] sm:$0xff]   ;;  %v861_v4 = vld [vmem:[%s1153_s1 + $0x48] sm:$0xff]   ;;  %v865_v8 = vld [vmem:[%s1153_s1 + $0x50] sm:$0xff]   ;;  %19 = vst.msk [vmem:[%s1155_s3] sm:$0xf] %vm18_vm0, %v913_v48  ;;  %vm713_vm3 = vcmask 1041408  }
   0x2   :  { %v858_v1 = vld [vmem:[%s1153_s1 + $0xc0] sm:$0xff]   ;;  %776 = vmatprep.subr.bf16.mxu0 %v857_v0  ;;  %v862_v5 = vld [vmem:[%s1153_s1 + $0xc8] sm:$0xff]   ;;  %v866_v9 = vld [vmem:[%s1153_s1 + $0xd0] sm:$0xff]   ;;  %vm715_vm4 = vcmask 1042432  }
   0x3   :  { %v859_v2 = vld [vmem:[%s1153_s1] sm:$0xff]   ;;  %816 = vmatprep.subr.bf16.mxu1 %v858_v1  ;;  %v863_v6 = vld [vmem:[%s1153_s1 + $0x8] sm:$0xff]   ;;  %v867_v10 = vld [vmem:[%s1153_s1 + $0x10] sm:$0xff]  }
   0x4   :  { %v860_v3 = vld [vmem:[%s1153_s1 + $0x80] sm:$0xff]   ;;  %777 = vmatpush3.bf16.msra.mxu0 %v859_v2  ;;  %v864_v7 = vld [vmem:[%s1153_s1 + $0x88] sm:$0xff]   ;;  %v868_v11 = vld [vmem:[%s1153_s1 + $0x90] sm:$0xff]  }
   0x5   :  { %817 = vmatpush3.bf16.msra.mxu1 %v860_v3  ;;  %778 = vmatprep.subr.bf16.mxu0 %v861_v4  ;;  %v869_v12 = vld [vmem:[%s1153_s1 + $0x58] sm:$0xff]   ;;  %v873_v16 = vld [vmem:[%s1153_s1 + $0x60] sm:$0xff]   ;;  %v877_v20 = vld [vmem:[%s1153_s1 + $0x68] sm:$0xff]  }
   0x6   :  { %818 = vmatprep.subr.bf16.mxu1 %v862_v5  ;;  %v870_v13 = vld [vmem:[%s1153_s1 + $0xd8] sm:$0xff]   ;;  %v874_v17 = vld [vmem:[%s1153_s1 + $0xe0] sm:$0xff]   ;;  %v878_v21 = vld [vmem:[%s1153_s1 + $0xe8] sm:$0xff]  }
   0x7   :  { %v871_v14 = vld [vmem:[%s1153_s1 + $0x18] sm:$0xff]   ;;  %v875_v18 = vld [vmem:[%s1153_s1 + $0x20] sm:$0xff]   ;;  %v879_v22 = vld [vmem:[%s1153_s1 + $0x28] sm:$0xff]  }
   0x8   :  { %779 = vmatpush3.bf16.msra.mxu0 %v863_v6  ;;  %v872_v15 = vld [vmem:[%s1153_s1 + $0x98] sm:$0xff]   ;;  %v876_v19 = vld [vmem:[%s1153_s1 + $0xa0] sm:$0xff]   ;;  %v880_v23 = vld [vmem:[%s1153_s1 + $0xa8] sm:$0xff]  }
   0x9   :  { %819 = vmatpush3.bf16.msra.mxu1 %v864_v7  ;;  %780 = vmatprep.subr.bf16.mxu0 %v865_v8  ;;  %v881_v24 = vld [vmem:[%s1153_s1 + $0x70] sm:$0xff]   ;;  %v885_v28 = vld [vmem:[%s1153_s1 + $0x78] sm:$0xff]  }
   0xa   :  { %820 = vmatprep.subr.bf16.mxu1 %v866_v9  ;;  %v882_v25 = vld [vmem:[%s1153_s1 + $0xf0] sm:$0xff]   ;;  %v886_v29 = vld [vmem:[%s1153_s1 + $0xf8] sm:$0xff]  }
   0xb   :  { %v883_v26 = vld [vmem:[%s1153_s1 + $0x30] sm:$0xff]   ;;  %v887_v30 = vld [vmem:[%s1153_s1 + $0x38] sm:$0xff]  }
   0xc   :  { %781 = vmatpush3.bf16.msra.mxu0 %v867_v10  ;;  %v884_v27 = vld [vmem:[%s1153_s1 + $0xb0] sm:$0xff]   ;;  %v888_v31 = vld [vmem:[%s1153_s1 + $0xb8] sm:$0xff]  }
   0xd   :  { %821 = vmatpush3.bf16.msra.mxu1 %v868_v11  ;;  %782 = vmatprep.subr.bf16.mxu0 %v869_v12  ;;  %v889_v32 = vld [vmem:[%s1154_s0] ss:$16 sps:$4 sm:$0xff]   ;;  %v891_v33 = vld [vmem:[%s1154_s0 + $0x4] ss:$16 sps:$4 sm:$0xff]   ;;  %v892_v34 = vld [vmem:[%s1154_s0 + $0x8] ss:$16 sps:$4 sm:$0xff]  }
   0xe   :  { %822 = vmatprep.subr.bf16.mxu1 %v870_v13  ;;  %v894_v35 = vld [vmem:[%s1154_s0 + $0xc] ss:$16 sps:$4 sm:$0xff]   ;;  %404 = vmatprep.mubr.bf16.mxu0 %v891_v33  ;;  %v895_v36 = vld [vmem:[%s1154_s0 + $0x24] ss:$16 sps:$4 sm:$0xff]   ;;  %v899_v38 = vld [vmem:[%s1154_s0 + $0x20] ss:$16 sps:$4 sm:$0xff]  }
   0xf   :  { %469 = vmatprep.mubr.bf16.mxu1 %v894_v35  ;;  %v897_v37 = vld [vmem:[%s1154_s0 + $0x2c] ss:$16 sps:$4 sm:$0xff]   ;;  %v900_v39 = vld [vmem:[%s1154_s0 + $0x28] ss:$16 sps:$4 sm:$0xff]   ;;  %v901_v40 = vld [vmem:[%s1154_s0 + $0x44] ss:$16 sps:$4 sm:$0xff]  }
  0x10   :  { %783 = vmatpush3.bf16.msra.mxu0 %v871_v14  ;;  %v903_v41 = vld [vmem:[%s1154_s0 + $0x4c] ss:$16 sps:$4 sm:$0xff]   ;;  %v905_v42 = vld [vmem:[%s1154_s0 + $0x40] ss:$16 sps:$4 sm:$0xff]   ;;  %v906_v43 = vld [vmem:[%s1154_s0 + $0x48] ss:$16 sps:$4 sm:$0xff]  }
  0x11   :  { %823 = vmatpush3.bf16.msra.mxu1 %v872_v15  ;;  %784 = vmatprep.subr.bf16.mxu0 %v873_v16  ;;  %v907_v44 = vld [vmem:[%s1154_s0 + $0x64] ss:$16 sps:$4 sm:$0xff]   ;;  %v909_v45 = vld [vmem:[%s1154_s0 + $0x6c] ss:$16 sps:$4 sm:$0xff]   ;;  %v911_v46 = vld [vmem:[%s1154_s0 + $0x60] ss:$16 sps:$4 sm:$0xff]  }
  0x12   :  { %824 = vmatprep.subr.bf16.mxu1 %v874_v17  ;;  %v912_v47 = vld [vmem:[%s1154_s0 + $0x68] ss:$16 sps:$4 sm:$0xff]  }
  0x14   :  { %785 = vmatpush3.bf16.msra.mxu0 %v875_v18 }
  0x15   :  { %825 = vmatpush3.bf16.msra.mxu1 %v876_v19  ;;  %786 = vmatprep.subr.bf16.mxu0 %v877_v20 }
  0x16   :  { %826 = vmatprep.subr.bf16.mxu1 %v878_v21 }
  0x18   :  { %787 = vmatpush3.bf16.msra.mxu0 %v879_v22 }
  0x19   :  { %827 = vmatpush3.bf16.msra.mxu1 %v880_v23  ;;  %788 = vmatprep.subr.bf16.mxu0 %v881_v24 }
  0x1a   :  { %828 = vmatprep.subr.bf16.mxu1 %v882_v25 }
  0x1c   :  { %789 = vmatpush3.bf16.msra.mxu0 %v883_v26 }
  0x1d   :  { %829 = vmatpush3.bf16.msra.mxu1 %v884_v27  ;;  %790 = vmatprep.subr.bf16.mxu0 %v885_v28 }
  0x1e   :  { %830 = vmatprep.subr.bf16.mxu1 %v886_v29 }
  0x20   :  { %791 = vmatpush3.bf16.msra.mxu0 %v887_v30 }
  0x21   :  { %831 = vmatpush3.bf16.msra.mxu1 %v888_v31 }
  0x23   :  { %405 = vmatmul.mubr.bf16.vlgmr.msra.gmra.mrb[0].mxu0 %v889_v32 }
  0x24   :  { %470 = vmatmul.mubr.bf16.vlgmr.msra.gmra.mrb[0].mxu1 %v892_v34  ;;  %412 = vmatprep.mubr.bf16.mxu0 %v895_v36 }
  0x25   :  { %477 = vmatprep.mubr.bf16.mxu1 %v897_v37 }
  0x2b   :  { %413 = vmatmul.mubr.bf16.gmra.mrb[4].mxu0 %v899_v38 }
  0x2c   :  { %478 = vmatmul.mubr.bf16.gmra.mrb[4].mxu1 %v900_v39  ;;  %420 = vmatprep.mubr.bf16.mxu0 %v901_v40 }
  0x2d   :  { %485 = vmatprep.mubr.bf16.mxu1 %v903_v41 }
  0x33   :  { %421 = vmatmul.mubr.bf16.gmra.mrb[8].mxu0 %v905_v42 }
  0x34   :  { %486 = vmatmul.mubr.bf16.gmra.mrb[8].mxu1 %v906_v43  ;;  %428 = vmatprep.mubr.bf16.mxu0 %v907_v44 }
  0x35   :  { %493 = vmatprep.mubr.bf16.mxu1 %v909_v45 }
  0x3b   :  { %429 = vmatmul.mubr.bf16.gmra.mrb[12].mxu0 %v911_v46 }
  0x3c   :  { %494 = vmatmul.mubr.bf16.gmra.mrb[12].mxu1 %v912_v47 }
  0xf6   :  { %v792_v49 = vpop.f32.mrb[0].mxu0 }
  0xf7   :  { %v832_v50 = vpop.f32.mrb[0].mxu1  ;;  %v793_v51 = vpop.f32.mrb[1].mxu0 }
  0xf8   :  { %v794_v52 = vadd.f32 %v793_v51, %v792_v49  ;;  %v833_v53 = vpop.f32.mrb[1].mxu1  ;;  %v795_v54 = vpop.f32.mrb[2].mxu0 }
  0xf9   :  { %v834_v55 = vadd.f32 %v833_v53, %v832_v50  ;;  %v835_v56 = vpop.f32.mrb[2].mxu1  ;;  %v796_v57 = vpop.f32.mrb[3].mxu0 }
  0xfa   :  { %v797_v58 = vadd.f32 %v796_v57, %v795_v54  ;;  %v836_v59 = vpop.f32.mrb[3].mxu1 }
  0xfb   :  { %v472_v60 = vadd.f32 %v834_v55, %v794_v52  ;;  %v837_v61 = vadd.f32 %v836_v59, %v835_v56 }
  0xfd   :  { %503 = vst.msk [vmem:[%s1156_s2] sm:$0xff] %vm502_vm1, %v472_v60  ;;  %v602_v62 = vmul.f32 0.0, %v472_v60  ;;  %v632_v63 = vmul.f32 %v472_v60, %v472_v60  ;;  %v475_v0 = vadd.f32 %v837_v61, %v797_v58  ;;  %v611_v2 = vsel %vm502_vm1, %v472_v60, 0.0 }
  0xfe   :  { %v798_v1 = vpop.f32.mrb[4].mxu0 }
  0xff   :  { %v682_v3 = vmul.f32 %v602_v62, %v472_v60  ;;  %504 = vst.msk [vmem:[%s1156_s2 + $0x8] sm:$0xff] %vm502_vm1, %v475_v0  ;;  %v603_v4 = vmul.f32 0.0, %v475_v0  ;;  %v838_v5 = vpop.f32.mrb[4].mxu1  ;;  %v799_v6 = vpop.f32.mrb[5].mxu0  ;;  %v640_v7 = vsel %vm502_vm1, %v632_v63, 0.0  ;;  %v612_v8 = vsel %vm502_vm1, %v475_v0, 0.0 }
 0x100   :  { %v633_v9 = vmul.f32 %v475_v0, %v475_v0  ;;  %v800_v10 = vadd.f32 %v799_v6, %v798_v1  ;;  %v839_v11 = vpop.f32.mrb[5].mxu1  ;;  %v801_v12 = vpop.f32.mrb[6].mxu0  ;;  %v661_v13 = vsel %vm502_vm1, %v602_v62, 0.0  ;;  %v613_v14 = vadd.f32 %v612_v8, %v611_v2 }
 0x101   :  { %v662_v15 = vsel %vm502_vm1, %v603_v4, 0.0  ;;  %v683_v16 = vmul.f32 %v603_v4, %v475_v0  ;;  %v841_v17 = vpop.f32.mrb[6].mxu1  ;;  %v802_v18 = vpop.f32.mrb[7].mxu0  ;;  %v840_v21 = vadd.f32 %v839_v11, %v838_v5  ;;  %v690_v24 = vsel %vm502_vm1, %v682_v3, 0.0 }
 0x102   :  { %v641_v19 = vsel %vm502_vm1, %v633_v9, 0.0  ;;  %v663_v20 = vadd.f32 %v662_v15, %v661_v13  ;;  %v803_v22 = vadd.f32 %v802_v18, %v801_v12  ;;  %v842_v23 = vpop.f32.mrb[7].mxu1 }
 0x103   :  { %v642_v25 = vadd.f32 %v641_v19, %v640_v7  ;;  %v691_v26 = vsel %vm502_vm1, %v683_v16, 0.0  ;;  %v843_v27 = vadd.f32 %v842_v23, %v841_v17  ;;  %v480_v29 = vadd.f32 %v840_v21, %v800_v10 }
 0x104   :  { %v692_v28 = vadd.f32 %v691_v26, %v690_v24 }
 0x105   :  { %v483_v30 = vadd.f32 %v843_v27, %v803_v22  ;;  %505 = vst.msk [vmem:[%s1156_s2 + $0x10] sm:$0xff] %vm502_vm1, %v480_v29  ;;  %v604_v31 = vmul.f32 0.0, %v480_v29  ;;  %v614_v32 = vsel %vm502_vm1, %v480_v29, 0.0  ;;  %v634_v33 = vmul.f32 %v480_v29, %v480_v29 }
 0x106   :  { %v804_v34 = vpop.f32.mrb[8].mxu0  ;;  %v615_v35 = vadd.f32 %v614_v32, %v613_v14 }
 0x107   :  { %506 = vst.msk [vmem:[%s1156_s2 + $0x18] sm:$0xff] %vm502_vm1, %v483_v30  ;;  %v605_v36 = vmul.f32 0.0, %v483_v30  ;;  %v616_v37 = vsel %vm502_vm1, %v483_v30, 0.0  ;;  %v635_v38 = vmul.f32 %v483_v30, %v483_v30  ;;  %v844_v39 = vpop.f32.mrb[8].mxu1  ;;  %v805_v40 = vpop.f32.mrb[9].mxu0  ;;  %v643_v41 = vsel %vm502_vm1, %v634_v33, 0.0 }
 0x108   :  { %v664_v42 = vsel %vm502_vm1, %v604_v31, 0.0  ;;  %v684_v43 = vmul.f32 %v604_v31, %v480_v29  ;;  %v806_v44 = vadd.f32 %v805_v40, %v804_v34  ;;  %v845_v45 = vpop.f32.mrb[9].mxu1  ;;  %v807_v46 = vpop.f32.mrb[10].mxu0  ;;  %v644_v47 = vadd.f32 %v643_v41, %v642_v25 }
 0x109   :  { %v665_v48 = vadd.f32 %v664_v42, %v663_v20  ;;  %v617_v49 = vadd.f32 %v616_v37, %v615_v35  ;;  %v645_v50 = vsel %vm502_vm1, %v635_v38, 0.0  ;;  %v847_v51 = vpop.f32.mrb[10].mxu1  ;;  %v808_v52 = vpop.f32.mrb[11].mxu0  ;;  %v666_v54 = vsel %vm502_vm1, %v605_v36, 0.0 }
 0x10a   :  { %v693_v53 = vsel %vm502_vm1, %v684_v43, 0.0  ;;  %v685_v55 = vmul.f32 %v605_v36, %v483_v30  ;;  %v846_v56 = vadd.f32 %v845_v45, %v844_v39  ;;  %v848_v57 = vpop.f32.mrb[11].mxu1  ;;  %v646_v59 = vadd.f32 %v645_v50, %v644_v47 }
 0x10b   :  { %v694_v58 = vadd.f32 %v693_v53, %v692_v28  ;;  %v667_v60 = vadd.f32 %v666_v54, %v665_v48  ;;  %v809_v61 = vadd.f32 %v808_v52, %v807_v46  ;;  %v849_v0 = vadd.f32 %v848_v57, %v847_v51 }
 0x10c   :  { %v695_v62 = vsel %vm502_vm1, %v685_v55, 0.0  ;;  %v488_v63 = vadd.f32 %v846_v56, %v806_v44 }
 0x10d   :  { %v696_v1 = vadd.f32 %v695_v62, %v694_v58  ;;  %v491_v5 = vadd.f32 %v849_v0, %v809_v61 }
 0x10e   :  { %507 = vst.msk [vmem:[%s1156_s2 + $0x20] sm:$0xff] %vm502_vm1, %v488_v63  ;;  %v598_v2 = vmul.f32 0.0, %v488_v63  ;;  %v668_v3 = vsel %vm502_vm1, %v488_v63, 0.0  ;;  %v686_v4 = vmul.f32 %v488_v63, %v488_v63  ;;  %v810_v6 = vpop.f32.mrb[12].mxu0 }
 0x10f   :  { %v669_v7 = vadd.f32 %v668_v3, %v667_v60  ;;  %v850_v8 = vpop.f32.mrb[12].mxu1  ;;  %v811_v9 = vpop.f32.mrb[13].mxu0  ;;  %508 = vst.msk [vmem:[%s1156_s2 + $0x28] sm:$0xff] %vm502_vm1, %v491_v5  ;;  %v599_v13 = vmul.f32 0.0, %v491_v5  ;;  %v670_v18 = vsel %vm502_vm1, %v491_v5, 0.0  ;;  %v687_v19 = vmul.f32 %v491_v5, %v491_v5 }
 0x110   :  { %v618_v10 = vsel %vm502_vm1, %v598_v2, 0.0  ;;  %v636_v11 = vmul.f32 %v598_v2, %v488_v63  ;;  %v697_v12 = vsel %vm502_vm1, %v686_v4, 0.0  ;;  %v851_v14 = vpop.f32.mrb[13].mxu1  ;;  %v813_v15 = vpop.f32.mrb[14].mxu0  ;;  %v812_v30 = vadd.f32 %v811_v9, %v810_v6 }
 0x111   :  { %v619_v16 = vadd.f32 %v618_v10, %v617_v49  ;;  %v698_v17 = vadd.f32 %v697_v12, %v696_v1  ;;  %v853_v20 = vpop.f32.mrb[14].mxu1  ;;  %v814_v21 = vpop.f32.mrb[15].mxu0  ;;  %v620_v23 = vsel %vm502_vm1, %v599_v13, 0.0  ;;  %v637_v24 = vmul.f32 %v599_v13, %v491_v5 }
 0x112   :  { %v647_v22 = vsel %vm502_vm1, %v636_v11, 0.0  ;;  %v671_v25 = vadd.f32 %v670_v18, %v669_v7  ;;  %v854_v26 = vpop.f32.mrb[15].mxu1  ;;  %v699_v29 = vsel %vm502_vm1, %v687_v19, 0.0  ;;  %v852_v33 = vadd.f32 %v851_v14, %v850_v8 }
 0x113   :  { %v648_v27 = vadd.f32 %v647_v22, %v646_v59  ;;  %v621_v28 = vadd.f32 %v620_v23, %v619_v16  ;;  %v649_v31 = vsel %vm502_vm1, %v637_v24, 0.0  ;;  %v700_v32 = vadd.f32 %v699_v29, %v698_v17 }
 0x114   :  { %v815_v34 = vadd.f32 %v814_v21, %v813_v15  ;;  %v855_v36 = vadd.f32 %v854_v26, %v853_v20  ;;  %v496_v37 = vadd.f32 %v852_v33, %v812_v30  ;;  %v610_v20 = vld [vmem:[%s1155_s3] sm:$0xf] }
 0x115   :  { %v650_v35 = vadd.f32 %v649_v31, %v648_v27 }
 0x116   :  { %v499_v38 = vadd.f32 %v855_v36, %v815_v34  ;;  %509 = vst.msk [vmem:[%s1156_s2 + $0x30] sm:$0xff] %vm502_vm1, %v496_v37  ;;  %v600_v39 = vmul.f32 0.0, %v496_v37  ;;  %v672_v40 = vsel %vm502_vm1, %v496_v37, 0.0  ;;  %v688_v41 = vmul.f32 %v496_v37, %v496_v37 }
 0x117   :  { %v673_v42 = vadd.f32 %v672_v40, %v671_v25 }
 0x118   :  { %510 = vst.msk [vmem:[%s1156_s2 + $0x38] sm:$0xff] %vm502_vm1, %v499_v38  ;;  %v601_v43 = vmul.f32 0.0, %v499_v38  ;;  %v674_v44 = vsel %vm502_vm1, %v499_v38, 0.0  ;;  %v689_v45 = vmul.f32 %v499_v38, %v499_v38  ;;  %v622_v46 = vsel %vm502_vm1, %v600_v39, 0.0 }
 0x119   :  { %v638_v47 = vmul.f32 %v600_v39, %v496_v37  ;;  %v701_v48 = vsel %vm502_vm1, %v688_v41, 0.0  ;;  %v623_v49 = vadd.f32 %v622_v46, %v621_v28  ;;  %v675_v54 = vadd.f32 %v674_v44, %v673_v42 }
 0x11a   :  { %v702_v50 = vadd.f32 %v701_v48, %v700_v32  ;;  %v624_v51 = vsel %vm502_vm1, %v601_v43, 0.0  ;;  %v639_v52 = vmul.f32 %v601_v43, %v499_v38  ;;  %v703_v55 = vsel %vm502_vm1, %v689_v45, 0.0 }
 0x11b   :  { %v651_v53 = vsel %vm502_vm1, %v638_v47, 0.0  ;;  %v625_v57 = vadd.f32 %v624_v51, %v623_v49  ;;  %v676_v60 = vrot.slane %v675_v54, 4 }
 0x11c   :  { %v652_v56 = vadd.f32 %v651_v53, %v650_v35  ;;  %v653_v58 = vsel %vm502_vm1, %v639_v52, 0.0  ;;  %v704_v59 = vadd.f32 %v703_v55, %v702_v50 }
 0x11d   :  { %v626_v61 = vrot.slane %v625_v57, 4  ;;  %v677_v0 = vadd.f32 %v676_v60, %v675_v54 }
 0x11e   :  { %v654_v62 = vadd.f32 %v653_v58, %v652_v56  ;;  %v705_v63 = vrot.slane %v704_v59, 4 }
 0x11f   :  { %v627_v1 = vadd.f32 %v626_v61, %v625_v57  ;;  %v678_v4 = vrot.slane %v677_v0, 2 }
 0x120   :  { %v655_v2 = vrot.slane %v654_v62, 4  ;;  %v706_v3 = vadd.f32 %v705_v63, %v704_v59 }
 0x121   :  { %v628_v5 = vrot.slane %v627_v1, 2  ;;  %v679_v8 = vadd.f32 %v678_v4, %v677_v0 }
 0x122   :  { %v656_v6 = vadd.f32 %v655_v2, %v654_v62  ;;  %v707_v7 = vrot.slane %v706_v3, 2 }
 0x123   :  { %v629_v9 = vadd.f32 %v628_v5, %v627_v1  ;;  %v680_v14 = vrot.slane %v679_v8, 1 }
 0x124   :  { %v657_v10 = vrot.slane %v656_v6, 2  ;;  %v708_v11 = vadd.f32 %v707_v7, %v706_v3 }
 0x125   :  { %v630_v12 = vrot.slane %v629_v9, 1  ;;  %v681_v19 = vadd.f32 %v680_v14, %v679_v8 }
 0x126   :  { %v658_v13 = vadd.f32 %v657_v10, %v656_v6  ;;  %v709_v16 = vrot.slane %v708_v11, 1 }
 0x127   :  { %v631_v17 = vadd.f32 %v630_v12, %v629_v9 }
 0x128   :  { %v659_v15 = vrot.slane %v658_v13, 1  ;;  %v710_v21 = vadd.f32 %v709_v16, %v708_v11 }
 0x12a   :  { %v660_v18 = vadd.f32 %v659_v15, %v658_v13 }
 0x12c   :  { %v712_v22 = vsel %vm711_vm2, %v631_v17, %v660_v18 }
 0x12d   :  { %v714_v23 = vsel %vm713_vm3, %v712_v22, %v681_v19 }
 0x12e   :  { %v716_v24 = vsel %vm715_vm4, %v714_v23, %v710_v21 }
 0x12f   :  { %v717_v25 = vadd.f32 %v716_v24, %v610_v20 }
 0x131   :  { %719 = vst.msk [vmem:[%s1155_s3] sm:$0xf] %vm18_vm0, %v717_v25 }

// kernel: d_loss.12
= control target key start
LH: loop header
LB: loop body
LE: loop exit
PB: predicated region body
PF: predicated region fallthrough
CT: control target
= control target key end

     0   :  { %v85_v14 = vlaneseq  ;;  %vm244_vm0 = vcmask 519168   ;;  %s376_s1 = inlined_call_operand.vmem [shape: f32[4,64], index: 1, kind: input, shape index: {}]   ;;  %s377_s2 = inlined_call_operand.vmem [shape: f32[1,64], index: 2, kind: input, shape index: {}]   ;;  %s378_s3 = inlined_call_operand.vmem [shape: f32[1,64], index: 3, kind: input, shape index: {}]   ;;  %s379_s0 = inlined_call_operand.vmem [shape: f32[64,64], index: 0, kind: input, shape index: {}]   ;;  %s380_s4 = inlined_call_operand.vmem [shape: bf16[64,64], index: 4, kind: output, shape index: {}]  }
   0x1   :  { %v17_v0 = vld [vmem:[%s376_s1] sm:$0x1]  ;;  %v19_v1 = vld [vmem:[%s376_s1 + $0x1] sm:$0x1]  ;;  %v21_v2 = vld [vmem:[%s376_s1 + $0x2] sm:$0x1] }
   0x2   :  { %v18_v3 = vmul.f32 0.03125, %v17_v0  ;;  %v20_v4 = vmul.f32 0.03125, %v19_v1  ;;  %v22_v5 = vmul.f32 0.03125, %v21_v2  ;;  %v23_v6 = vld [vmem:[%s376_s1 + $0x3] sm:$0x1]  ;;  %v86_v15 = vshrl.u32 %v85_v14, 7 }
   0x3   :  { %v24_v7 = vmul.f32 0.03125, %v23_v6  ;;  %v25_v16 = vld [vmem:[%s377_s2] sm:$0x1]  ;;  %v169_v32 = vld [vmem:[%s379_s0 + $0x28] sm:$0xff]  ;;  %v170_v33 = vld [vmem:[%s379_s0 + $0x30] sm:$0xff] }
   0x4   :  { %v27_v8 = vmul.f32 %v18_v3, %v18_v3  ;;  %v32_v9 = vmul.f32 %v22_v5, %v22_v5  ;;  %v87_v17 = vsub.s32 0, %v86_v15  ;;  %v26_v21 = vld [vmem:[%s378_s3] sm:$0x1]  ;;  %v165_v36 = vld [vmem:[%s379_s0 + $0x8] sm:$0xff]  ;;  %v166_v37 = vld [vmem:[%s379_s0 + $0x10] sm:$0xff] }
   0x5   :  { %v168_v31 = vld [vmem:[%s379_s0 + $0x20] sm:$0xff]  ;;  %v167_v41 = vld [vmem:[%s379_s0 + $0x18] sm:$0xff] }
   0x6   :  { %v28_v10 = vsub.f32 %v20_v4, %v27_v8  ;;  %v33_v11 = vsub.f32 %v24_v7, %v32_v9  ;;  %v164_v35 = vld [vmem:[%s379_s0] sm:$0xff]  ;;  %v171_v42 = vld [vmem:[%s379_s0 + $0x38] sm:$0xff] }
   0x8   :  { %v29_v12 = vadd.f32 1e-05, %v28_v10  ;;  %v34_v13 = vadd.f32 1e-05, %v33_v11 }
   0xa   :  { %273 = vrsqrt.f32 %v29_v12 }
   0xb   :  { %275 = vrsqrt.f32 %v34_v13 }
  0x14   :  { %v274_v18 = vpop.eup %273 }
  0x15   :  { %v276_v19 = vpop.eup %275  ;;  %v31_v20 = vmul.f32 %v274_v18, %v25_v16 }
  0x16   :  { %v36_v22 = vmul.f32 %v276_v19, %v25_v16 }
  0x17   :  { %v37_v23 = vmul.f32 %v31_v20, %v18_v3  ;;  %v88_v24 = vrot.slane %v31_v20, %v87_v17 }
  0x18   :  { %v39_v25 = vmul.f32 %v36_v22, %v22_v5  ;;  %v110_v26 = vrot.slane %v36_v22, %v87_v17 }
  0x19   :  { %v38_v27 = vsub.f32 %v26_v21, %v37_v23  ;;  %v94_v28 = vmul.f32 0.0, %v88_v24 }
  0x1a   :  { %v40_v29 = vsub.f32 %v26_v21, %v39_v25  ;;  %v112_v30 = vmul.f32 0.0, %v110_v26 }
  0x1b   :  { %v132_v34 = vrot.slane %v38_v27, %v87_v17  ;;  %v124_v38 = vadd.f32 %v110_v26, %v94_v28 }
  0x1c   :  { %v120_v39 = vadd.f32 %v112_v30, %v88_v24  ;;  %v146_v40 = vrot.slane %v40_v29, %v87_v17 }
  0x1d   :  { %v138_v43 = vmul.f32 0.0, %v132_v34  ;;  %v176_v44 = vmul.f32 %v168_v31, %v124_v38  ;;  %v177_v45 = vmul.f32 %v169_v32, %v124_v38  ;;  %v178_v46 = vmul.f32 %v170_v33, %v124_v38 }
  0x1e   :  { %v148_v47 = vmul.f32 0.0, %v146_v40  ;;  %v172_v48 = vmul.f32 %v164_v35, %v120_v39  ;;  %v173_v49 = vmul.f32 %v165_v36, %v120_v39  ;;  %v174_v50 = vmul.f32 %v166_v37, %v120_v39 }
  0x1f   :  { %v175_v51 = vmul.f32 %v167_v41, %v120_v39  ;;  %v160_v52 = vadd.f32 %v146_v40, %v138_v43  ;;  %v179_v53 = vmul.f32 %v171_v42, %v124_v38 }
  0x20   :  { %v156_v54 = vadd.f32 %v148_v47, %v132_v34 }
  0x21   :  { %v184_v55 = vadd.f32 %v176_v44, %v160_v52  ;;  %v185_v56 = vadd.f32 %v177_v45, %v160_v52  ;;  %v186_v57 = vadd.f32 %v178_v46, %v160_v52  ;;  %v187_v58 = vadd.f32 %v179_v53, %v160_v52 }
  0x22   :  { %v180_v59 = vadd.f32 %v172_v48, %v156_v54  ;;  %v181_v60 = vadd.f32 %v173_v49, %v156_v54  ;;  %v182_v61 = vadd.f32 %v174_v50, %v156_v54  ;;  %v183_v62 = vadd.f32 %v175_v51, %v156_v54 }
  0x23   :  { %vm192_vm1 = vcmp.ge.f32.partialorder %v184_v55, 0.0  ;;  %v200_v63 = vmul.f32 0.2, %v184_v55  ;;  %vm193_vm2 = vcmp.ge.f32.partialorder %v185_v56, 0.0  ;;  %v201_v0 = vmul.f32 0.2, %v185_v56 }
  0x24   :  { %vm188_vm3 = vcmp.ge.f32.partialorder %v180_v59, 0.0  ;;  %v196_v1 = vmul.f32 0.2, %v180_v59  ;;  %vm189_vm4 = vcmp.ge.f32.partialorder %v181_v60, 0.0  ;;  %v197_v2 = vmul.f32 0.2, %v181_v60 }
  0x25   :  { %vm190_vm5 = vcmp.ge.f32.partialorder %v182_v61, 0.0  ;;  %v198_v3 = vmul.f32 0.2, %v182_v61  ;;  %vm191_vm6 = vcmp.ge.f32.partialorder %v183_v62, 0.0  ;;  %v199_v4 = vmul.f32 0.2, %v183_v62 }
  0x26   :  { %v204_v5 = vsel %vm188_vm3, %v180_v59, %v196_v1  ;;  %v205_v6 = vsel %vm189_vm4, %v181_v60, %v197_v2  ;;  %v208_v7 = vsel %vm192_vm1, %v184_v55, %v200_v63  ;;  %v209_v8 = vsel %vm193_vm2, %v185_v56, %v201_v0 }
  0x27   :  { %v265_v9 = vpack.c.bf16 %v204_v5, %v204_v5  ;;  %v266_v10 = vpack.c.bf16 %v205_v6, %v205_v6  ;;  %v206_v11 = vsel %vm190_vm5, %v182_v61, %v198_v3  ;;  %v207_v12 = vsel %vm191_vm6, %v183_v62, %v199_v4 }
  0x28   :  { %v267_v13 = vpack.c.bf16 %v206_v11, %v206_v11  ;;  %v268_v14 = vpack.c.bf16 %v207_v12, %v207_v12  ;;  %v269_v15 = vpack.c.bf16 %v208_v7, %v208_v7  ;;  %v270_v16 = vpack.c.bf16 %v209_v8, %v209_v8 }
  0x29   :  { %245 = vst.msk [vmem:[%s380_s4] sm:$0xf] %vm244_vm0, %v265_v9  ;;  %246 = vst.msk [vmem:[%s380_s4 + $0x4] sm:$0xf] %vm244_vm0, %v266_v10  ;;  %vm194_vm7 = vcmp.ge.f32.partialorder %v186_v57, 0.0  ;;  %vm195_vm8 = vcmp.ge.f32.partialorder %v187_v58, 0.0 }
  0x2a   :  { %v202_v17 = vmul.f32 0.2, %v186_v57  ;;  %v203_v18 = vmul.f32 0.2, %v187_v58  ;;  %247 = vst.msk [vmem:[%s380_s4 + $0x8] sm:$0xf] %vm244_vm0, %v267_v13 }
  0x2b   :  { %248 = vst.msk [vmem:[%s380_s4 + $0xc] sm:$0xf] %vm244_vm0, %v268_v14  ;;  %249 = vst.msk [vmem:[%s380_s4 + $0x10] sm:$0xf] %vm244_vm0, %v269_v15 }
  0x2c   :  { %250 = vst.msk [vmem:[%s380_s4 + $0x14] sm:$0xf] %vm244_vm0, %v270_v16  ;;  %v210_v19 = vsel %vm194_vm7, %v186_v57, %v202_v17  ;;  %v211_v20 = vsel %vm195_vm8, %v187_v58, %v203_v18 }
  0x2d   :  { %v271_v21 = vpack.c.bf16 %v210_v19, %v210_v19  ;;  %v272_v22 = vpack.c.bf16 %v211_v20, %v211_v20 }
  0x2f   :  { %251 = vst.msk [vmem:[%s380_s4 + $0x18] sm:$0xf] %vm244_vm0, %v271_v21  ;;  %252 = vst.msk [vmem:[%s380_s4 + $0x1c] sm:$0xf] %vm244_vm0, %v272_v22 }

// kernel: d_loss.14
= control target key start
LH: loop header
LB: loop body
LE: loop exit
PB: predicated region body
PF: predicated region fallthrough
CT: control target
= control target key end

     0   :  { %v42_v10 = vlaneseq  ;;  %v215_v19 = vmov 0.0   ;;  %s283_s1 = inlined_call_operand.vmem [shape: f32[4,128], index: 1, kind: input, shape index: {}]   ;;  %s284_s2 = inlined_call_operand.vmem [shape: f32[1,128], index: 2, kind: input, shape index: {}]   ;;  %s285_s3 = inlined_call_operand.vmem [shape: f32[1,128], index: 3, kind: input, shape index: {}]   ;;  %s286_s0 = inlined_call_operand.vmem [shape: f32[36,128], index: 0, kind: input, shape index: {}]   ;;  %s287_s4 = inlined_call_operand.vmem [shape: bf16[36,128], index: 4, kind: output, shape index: {}]  }
   0x1   :  { %v17_v0 = vld [vmem:[%s283_s1] sm:$0x1]  ;;  %v19_v1 = vld [vmem:[%s283_s1 + $0x1] sm:$0x1]  ;;  %v21_v2 = vld [vmem:[%s283_s1 + $0x2] sm:$0x1] }
   0x2   :  { %v18_v3 = vmul.f32 0.055555556, %v17_v0  ;;  %v20_v4 = vmul.f32 0.055555556, %v19_v1  ;;  %v22_v5 = vmul.f32 0.055555556, %v21_v2 }
   0x3   :  { %v23_v6 = vld [vmem:[%s283_s1 + $0x3] sm:$0x1]  ;;  %v43_v15 = vshrl.u32 %v42_v10, 7  ;;  %v25_v17 = vld [vmem:[%s284_s2] sm:$0x1]  ;;  %v131_v37 = vld [vmem:[%s286_s0 + $0x18] sm:$0xff] }
   0x4   :  { %v24_v7 = vmul.f32 0.055555556, %v23_v6  ;;  %v27_v8 = vmul.f32 %v18_v3, %v18_v3  ;;  %v32_v9 = vmul.f32 %v22_v5, %v22_v5  ;;  %v26_v24 = vld [vmem:[%s285_s3] sm:$0x1]  ;;  %v129_v41 = vld [vmem:[%s286_s0 + $0x8] sm:$0xff]  ;;  %v130_v46 = vld [vmem:[%s286_s0 + $0x10] sm:$0xff] }
   0x5   :  { %v45_v16 = vadd.s32 16, %v43_v15  ;;  %v72_v18 = vsub.s32 0, %v43_v15  ;;  %v132_v38 = vld [vmem:[%s286_s0 + $0x20] sm:$0xf] }
   0x6   :  { %v28_v11 = vsub.f32 %v20_v4, %v27_v8  ;;  %v33_v12 = vsub.f32 %v24_v7, %v32_v9  ;;  %v128_v40 = vld [vmem:[%s286_s0] sm:$0xff] }
   0x7   :  { %vm56_vm0 = vcmp.lt.s32.totalorder %v45_v16, 18 }
   0x8   :  { %v29_v13 = vadd.f32 1e-05, %v28_v11  ;;  %v34_v14 = vadd.f32 1e-05, %v33_v12  ;;  %v188_v20 = vsel %vm56_vm0, 1.0, %v215_v19 }
   0x9   :  { %v82_v26 = vsub.f32 1.0, %v188_v20 }
   0xa   :  { %211 = vrsqrt.f32 %v29_v13 }
   0xb   :  { %213 = vrsqrt.f32 %v34_v14 }
  0x14   :  { %v212_v21 = vpop.eup %211 }
  0x15   :  { %v214_v22 = vpop.eup %213  ;;  %v31_v23 = vmul.f32 %v212_v21, %v25_v17 }
  0x16   :  { %v36_v25 = vmul.f32 %v214_v22, %v25_v17 }
  0x17   :  { %v37_v27 = vmul.f32 %v31_v23, %v18_v3  ;;  %v73_v28 = vrot.slane %v31_v23, %v72_v18 }
  0x18   :  { %v39_v29 = vmul.f32 %v36_v25, %v22_v5  ;;  %v89_v30 = vrot.slane %v36_v25, %v72_v18 }
  0x19   :  { %v38_v31 = vsub.f32 %v26_v24, %v37_v27  ;;  %v77_v32 = vmul.f32 %v188_v20, %v73_v28  ;;  %v78_v33 = vmul.f32 0.0, %v73_v28 }
  0x1a   :  { %v40_v34 = vsub.f32 %v26_v24, %v39_v29  ;;  %v91_v35 = vmul.f32 0.0, %v89_v30  ;;  %v93_v36 = vmul.f32 %v89_v30, %v82_v26 }
  0x1b   :  { %v105_v39 = vrot.slane %v38_v31, %v72_v18  ;;  %v99_v42 = vadd.f32 %v89_v30, %v78_v33 }
  0x1c   :  { %v96_v43 = vadd.f32 %v91_v35, %v73_v28  ;;  %v116_v44 = vrot.slane %v40_v34, %v72_v18  ;;  %v98_v45 = vadd.f32 %v93_v36, %v77_v32 }
  0x1d   :  { %v109_v47 = vmul.f32 %v188_v20, %v105_v39  ;;  %v110_v48 = vmul.f32 0.0, %v105_v39  ;;  %v136_v49 = vmul.f32 %v131_v37, %v99_v42  ;;  %v137_v50 = vmul.f32 %v132_v38, %v99_v42 }
  0x1e   :  { %v118_v51 = vmul.f32 0.0, %v116_v44  ;;  %v133_v52 = vmul.f32 %v128_v40, %v96_v43  ;;  %v134_v53 = vmul.f32 %v129_v41, %v96_v43  ;;  %v120_v54 = vmul.f32 %v116_v44, %v82_v26 }
  0x1f   :  { %v126_v55 = vadd.f32 %v116_v44, %v110_v48  ;;  %v135_v56 = vmul.f32 %v130_v46, %v98_v45 }
  0x20   :  { %v123_v57 = vadd.f32 %v118_v51, %v105_v39  ;;  %v125_v58 = vadd.f32 %v120_v54, %v109_v47 }
  0x21   :  { %v141_v59 = vadd.f32 %v136_v49, %v126_v55  ;;  %v142_v60 = vadd.f32 %v137_v50, %v126_v55 }
  0x22   :  { %v138_v61 = vadd.f32 %v133_v52, %v123_v57  ;;  %v139_v62 = vadd.f32 %v134_v53, %v123_v57  ;;  %v140_v63 = vadd.f32 %v135_v56, %v125_v58 }
  0x23   :  { %vm146_vm1 = vcmp.ge.f32.partialorder %v141_v59, 0.0  ;;  %v151_v0 = vmul.f32 0.2, %v141_v59  ;;  %vm147_vm2 = vcmp.ge.f32.partialorder %v142_v60, 0.0  ;;  %v152_v1 = vmul.f32 0.2, %v142_v60 }
  0x24   :  { %vm143_vm3 = vcmp.ge.f32.partialorder %v138_v61, 0.0  ;;  %vm144_vm4 = vcmp.ge.f32.partialorder %v139_v62, 0.0  ;;  %v148_v2 = vmul.f32 0.2, %v138_v61  ;;  %v149_v3 = vmul.f32 0.2, %v139_v62 }
  0x25   :  { %vm145_vm5 = vcmp.ge.f32.partialorder %v140_v63, 0.0  ;;  %v150_v4 = vmul.f32 0.2, %v140_v63  ;;  %v156_v5 = vsel %vm146_vm1, %v141_v59, %v151_v0  ;;  %v157_v6 = vsel %vm147_vm2, %v142_v60, %v152_v1 }
  0x26   :  { %v153_v7 = vsel %vm143_vm3, %v138_v61, %v148_v2  ;;  %v154_v8 = vsel %vm144_vm4, %v139_v62, %v149_v3  ;;  %v198_v9 = vpack.c.bf16 %v157_v6, %v157_v6 }
  0x27   :  { %v202_v10 = vpack.c.bf16 %v154_v8, %v153_v7  ;;  %v155_v11 = vsel %vm145_vm5, %v140_v63, %v150_v4 }
  0x28   :  { %v207_v12 = vpack.c.bf16 %v156_v5, %v155_v11  ;;  %183 = vst [vmem:[%s287_s4 + $0x10] sm:$0x3] %v198_v9 }
  0x29   :  { %203 = vst [vmem:[%s287_s4] sm:$0xff] %v202_v10  }
  0x2a   :  { %209 = vst [vmem:[%s287_s4 + $0x8] sm:$0xff] %v207_v12  }

// kernel: d_loss.13
= control target key start
LH: loop header
LB: loop body
LE: loop exit
PB: predicated region body
PF: predicated region fallthrough
CT: control target
= control target key end

     0   :  { %vm955_vm3 = vcmask 1043456   ;;  %vm1007_vm4 = vcmask 1040384   ;;  %vm1009_vm5 = vcmask 1041408   ;;  %vm1011_vm6 = vcmask 1042432   ;;  %s1629_s1 = inlined_call_operand.vmem [shape: bf16[1024,128], index: 1, kind: input, shape index: {}]   ;;  %s1630_s0 = inlined_call_operand.vmem [shape: bf16[36,1024], index: 0, kind: input, shape index: {}]   ;;  %s1631_s3 = inlined_call_operand.vmem [shape: f32[4,128], index: 3, kind: output, shape index: {1}]   ;;  %s1632_s2 = inlined_call_operand.vmem [shape: f32[36,128], index: 2, kind: output, shape index: {0}]  }
   0x1   :  { %v1251_v0 = vld [vmem:[%s1629_s1 + $0x40] sm:$0xff]   ;;  %v1255_v4 = vld [vmem:[%s1629_s1 + $0x48] sm:$0xff]   ;;  %v1259_v8 = vld [vmem:[%s1629_s1 + $0x50] sm:$0xff]  }
   0x2   :  { %v1252_v1 = vld [vmem:[%s1629_s1 + $0xc0] sm:$0xff]   ;;  %1114 = vmatprep.subr.bf16.mxu0 %v1251_v0  ;;  %v1256_v5 = vld [vmem:[%s1629_s1 + $0xc8] sm:$0xff]   ;;  %v1260_v9 = vld [vmem:[%s1629_s1 + $0xd0] sm:$0xff]  }
   0x3   :  { %v1253_v2 = vld [vmem:[%s1629_s1] sm:$0xff]   ;;  %1148 = vmatprep.subr.bf16.mxu1 %v1252_v1  ;;  %v1257_v6 = vld [vmem:[%s1629_s1 + $0x8] sm:$0xff]   ;;  %v1261_v10 = vld [vmem:[%s1629_s1 + $0x10] sm:$0xff]  }
   0x4   :  { %v1254_v3 = vld [vmem:[%s1629_s1 + $0x80] sm:$0xff]   ;;  %1115 = vmatpush3.bf16.msra.mxu0 %v1253_v2  ;;  %v1258_v7 = vld [vmem:[%s1629_s1 + $0x88] sm:$0xff]   ;;  %v1262_v11 = vld [vmem:[%s1629_s1 + $0x90] sm:$0xff]  }
   0x5   :  { %1149 = vmatpush3.bf16.msra.mxu1 %v1254_v3  ;;  %1116 = vmatprep.subr.bf16.mxu0 %v1255_v4  ;;  %v1263_v12 = vld [vmem:[%s1629_s1 + $0x58] sm:$0xff]   ;;  %v1267_v16 = vld [vmem:[%s1629_s1 + $0x60] sm:$0xff]   ;;  %v1271_v20 = vld [vmem:[%s1629_s1 + $0x68] sm:$0xff]  }
   0x6   :  { %1150 = vmatprep.subr.bf16.mxu1 %v1256_v5  ;;  %v1264_v13 = vld [vmem:[%s1629_s1 + $0xd8] sm:$0xff]   ;;  %v1268_v17 = vld [vmem:[%s1629_s1 + $0xe0] sm:$0xff]   ;;  %v1272_v21 = vld [vmem:[%s1629_s1 + $0xe8] sm:$0xff]  }
   0x7   :  { %v1265_v14 = vld [vmem:[%s1629_s1 + $0x18] sm:$0xff]   ;;  %v1269_v18 = vld [vmem:[%s1629_s1 + $0x20] sm:$0xff]   ;;  %v1273_v22 = vld [vmem:[%s1629_s1 + $0x28] sm:$0xff]  }
   0x8   :  { %1117 = vmatpush3.bf16.msra.mxu0 %v1257_v6  ;;  %v1266_v15 = vld [vmem:[%s1629_s1 + $0x98] sm:$0xff]   ;;  %v1270_v19 = vld [vmem:[%s1629_s1 + $0xa0] sm:$0xff]   ;;  %v1274_v23 = vld [vmem:[%s1629_s1 + $0xa8] sm:$0xff]  }
   0x9   :  { %1151 = vmatpush3.bf16.msra.mxu1 %v1258_v7  ;;  %1118 = vmatprep.subr.bf16.mxu0 %v1259_v8  ;;  %v1275_v24 = vld [vmem:[%s1629_s1 + $0x70] sm:$0xff]   ;;  %v1279_v28 = vld [vmem:[%s1629_s1 + $0x78] sm:$0xff]   ;;  %v19_v32 = vld [vmem:[%s1630_s0] sm:$0xff] }
   0xa   :  { %1152 = vmatprep.subr.bf16.mxu1 %v1260_v9  ;;  %v1276_v25 = vld [vmem:[%s1629_s1 + $0xf0] sm:$0xff]   ;;  %v1280_v29 = vld [vmem:[%s1629_s1 + $0xf8] sm:$0xff]   ;;  %v23_v33 = vld [vmem:[%s1630_s0 + $0x20] sm:$0xff] }
   0xb   :  { %v1277_v26 = vld [vmem:[%s1629_s1 + $0x30] sm:$0xff]   ;;  %v1281_v30 = vld [vmem:[%s1629_s1 + $0x38] sm:$0xff]   ;;  %v20_v34 = vld [vmem:[%s1630_s0 + $0x8] sm:$0xff]  ;;  %v1023_v35 = vcombine.low %v19_v32, %v23_v33  ;;  %v1024_v36 = vcombine.high %v19_v32, %v23_v33 }
   0xc   :  { %1119 = vmatpush3.bf16.msra.mxu0 %v1261_v10  ;;  %v1278_v27 = vld [vmem:[%s1629_s1 + $0xb0] sm:$0xff]   ;;  %v1282_v31 = vld [vmem:[%s1629_s1 + $0xb8] sm:$0xff]   ;;  %v24_v37 = vld [vmem:[%s1630_s0 + $0x28] sm:$0xff] }
   0xd   :  { %1153 = vmatpush3.bf16.msra.mxu1 %v1262_v11  ;;  %1120 = vmatprep.subr.bf16.mxu0 %v1263_v12  ;;  %v1025_v38 = vcombine.low %v20_v34, %v24_v37  ;;  %v1026_v39 = vcombine.high %v20_v34, %v24_v37  ;;  %v1283_v40 = vld [vmem:[%s1629_s1 + $0x140] sm:$0xff]   ;;  %v1287_v44 = vld [vmem:[%s1629_s1 + $0x148] sm:$0xff]   ;;  %v1291_v48 = vld [vmem:[%s1629_s1 + $0x150] sm:$0xff]  }
   0xe   :  { %1154 = vmatprep.subr.bf16.mxu1 %v1264_v13  ;;  %691 = vmatprep.mubr.bf16.mxu0 %v1024_v36  ;;  %v1284_v41 = vld [vmem:[%s1629_s1 + $0x1c0] sm:$0xff]   ;;  %v1288_v45 = vld [vmem:[%s1629_s1 + $0x1c8] sm:$0xff]   ;;  %v1292_v49 = vld [vmem:[%s1629_s1 + $0x1d0] sm:$0xff]  }
   0xf   :  { %747 = vmatprep.mubr.bf16.mxu1 %v1026_v39  ;;  %v1285_v42 = vld [vmem:[%s1629_s1 + $0x100] sm:$0xff]   ;;  %v1289_v46 = vld [vmem:[%s1629_s1 + $0x108] sm:$0xff]   ;;  %v1293_v50 = vld [vmem:[%s1629_s1 + $0x110] sm:$0xff]  }
  0x10   :  { %1121 = vmatpush3.bf16.msra.mxu0 %v1265_v14  ;;  %v1286_v43 = vld [vmem:[%s1629_s1 + $0x180] sm:$0xff]   ;;  %v1290_v47 = vld [vmem:[%s1629_s1 + $0x188] sm:$0xff]   ;;  %v1294_v51 = vld [vmem:[%s1629_s1 + $0x190] sm:$0xff]  }
  0x11   :  { %1155 = vmatpush3.bf16.msra.mxu1 %v1266_v15  ;;  %1122 = vmatprep.subr.bf16.mxu0 %v1267_v16  ;;  %v27_v52 = vld [vmem:[%s1630_s0 + $0x40] sm:$0xff]  ;;  %v28_v55 = vld [vmem:[%s1630_s0 + $0x48] sm:$0xff]  ;;  %v1295_v59 = vld [vmem:[%s1629_s1 + $0x158] sm:$0xff]  }
  0x12   :  { %1156 = vmatprep.subr.bf16.mxu1 %v1268_v17  ;;  %v31_v53 = vld [vmem:[%s1630_s0 + $0x60] sm:$0xff]  ;;  %v32_v56 = vld [vmem:[%s1630_s0 + $0x68] sm:$0xff]  ;;  %v1296_v61 = vld [vmem:[%s1629_s1 + $0x1d8] sm:$0xff]  }
  0x13   :  { %v1032_v54 = vcombine.high %v27_v52, %v31_v53  ;;  %v1031_v57 = vcombine.low %v27_v52, %v31_v53  ;;  %v1034_v58 = vcombine.high %v28_v55, %v32_v56  ;;  %v1033_v60 = vcombine.low %v28_v55, %v32_v56  ;;  %v1297_v62 = vld [vmem:[%s1629_s1 + $0x118] sm:$0xff]   ;;  %v1299_v0 = vld [vmem:[%s1629_s1 + $0x160] sm:$0xff]   ;;  %v1304_v6 = vld [vmem:[%s1629_s1 + $0x168] sm:$0xff]  }
  0x14   :  { %1123 = vmatpush3.bf16.msra.mxu0 %v1269_v18  ;;  %v1298_v63 = vld [vmem:[%s1629_s1 + $0x198] sm:$0xff]   ;;  %v1300_v1 = vld [vmem:[%s1629_s1 + $0x1e0] sm:$0xff]   ;;  %v1305_v8 = vld [vmem:[%s1629_s1 + $0x1e8] sm:$0xff]  }
  0x15   :  { %1157 = vmatpush3.bf16.msra.mxu1 %v1270_v19  ;;  %1124 = vmatprep.subr.bf16.mxu0 %v1271_v20  ;;  %v1301_v2 = vld [vmem:[%s1629_s1 + $0x120] sm:$0xff]   ;;  %v1307_v9 = vld [vmem:[%s1629_s1 + $0x128] sm:$0xff]   ;;  %v1311_v14 = vld [vmem:[%s1629_s1 + $0x170] sm:$0xff]  }
  0x16   :  { %1158 = vmatprep.subr.bf16.mxu1 %v1272_v21  ;;  %v1302_v3 = vld [vmem:[%s1629_s1 + $0x1a0] sm:$0xff]   ;;  %v1308_v10 = vld [vmem:[%s1629_s1 + $0x1a8] sm:$0xff]   ;;  %v1312_v15 = vld [vmem:[%s1629_s1 + $0x1f0] sm:$0xff]  }
  0x17   :  { %v35_v4 = vld [vmem:[%s1630_s0 + $0x80] sm:$0x33]  ;;  %v36_v11 = vld [vmem:[%s1630_s0 + $0x88] sm:$0x33]  ;;  %v1313_v16 = vld [vmem:[%s1629_s1 + $0x130] sm:$0xff]  }
  0x18   :  { %1125 = vmatpush3.bf16.msra.mxu0 %v1273_v22  ;;  %v1040_v5 = vcombine.high %v35_v4, %v35_v4  ;;  %v1039_v7 = vcombine.low %v35_v4, %v35_v4  ;;  %v1042_v12 = vcombine.high %v36_v11, %v36_v11  ;;  %v1041_v13 = vcombine.low %v36_v11, %v36_v11  ;;  %v1314_v17 = vld [vmem:[%s1629_s1 + $0x1b0] sm:$0xff]   ;;  %v1315_v18 = vld [vmem:[%s1629_s1 + $0x178] sm:$0xff]  }
  0x19   :  { %1159 = vmatpush3.bf16.msra.mxu1 %v1274_v23  ;;  %1126 = vmatprep.subr.bf16.mxu0 %v1275_v24  ;;  %v1316_v19 = vld [vmem:[%s1629_s1 + $0x1f8] sm:$0xff]   ;;  %v21_v22 = vld [vmem:[%s1630_s0 + $0x10] sm:$0xff] }
  0x1a   :  { %1160 = vmatprep.subr.bf16.mxu1 %v1276_v25  ;;  %v1317_v20 = vld [vmem:[%s1629_s1 + $0x138] sm:$0xff]   ;;  %v25_v23 = vld [vmem:[%s1630_s0 + $0x30] sm:$0xff] }
  0x1b   :  { %v1318_v21 = vld [vmem:[%s1629_s1 + $0x1b8] sm:$0xff]   ;;  %v1027_v24 = vcombine.low %v21_v22, %v25_v23  ;;  %v1028_v25 = vcombine.high %v21_v22, %v25_v23  ;;  %v37_v36 = vld [vmem:[%s1630_s0 + $0x90] sm:$0x33] }
  0x1c   :  { %1127 = vmatpush3.bf16.msra.mxu0 %v1277_v26  ;;  %v22_v26 = vld [vmem:[%s1630_s0 + $0x18] sm:$0xff] }
  0x1d   :  { %1161 = vmatpush3.bf16.msra.mxu1 %v1278_v27  ;;  %1128 = vmatprep.subr.bf16.mxu0 %v1279_v28  ;;  %v26_v27 = vld [vmem:[%s1630_s0 + $0x38] sm:$0xff]  ;;  %v29_v28 = vld [vmem:[%s1630_s0 + $0x50] sm:$0xff] }
  0x1e   :  { %1162 = vmatprep.subr.bf16.mxu1 %v1280_v29  ;;  %v1029_v29 = vcombine.low %v22_v26, %v26_v27  ;;  %v30_v32 = vld [vmem:[%s1630_s0 + $0x58] sm:$0xff] }
  0x1f   :  { %v34_v33 = vld [vmem:[%s1630_s0 + $0x78] sm:$0xff] }
  0x20   :  { %1129 = vmatpush3.bf16.msra.mxu0 %v1281_v30  ;;  %v1030_v30 = vcombine.high %v22_v26, %v26_v27  ;;  %v38_v37 = vld [vmem:[%s1630_s0 + $0x98] sm:$0x33]  ;;  %v1037_v39 = vcombine.low %v30_v32, %v34_v33 }
  0x21   :  { %1163 = vmatpush3.bf16.msra.mxu1 %v1282_v31  ;;  %1182 = vmatprep.subr.bf16.mxu0 %v1283_v40  ;;  %v33_v31 = vld [vmem:[%s1630_s0 + $0x70] sm:$0xff]  ;;  %v1044_v40 = vcombine.high %v37_v36, %v37_v36 }
  0x22   :  { %1216 = vmatprep.subr.bf16.mxu1 %v1284_v41  ;;  %v1036_v34 = vcombine.high %v29_v28, %v33_v31  ;;  %v1046_v41 = vcombine.high %v38_v37, %v38_v37 }
  0x23   :  { %692 = vmatmul.mubr.bf16.vlgmr.msra.gmra.mrb[0].mxu0 %v1023_v35  ;;  %v1038_v35 = vcombine.high %v30_v32, %v34_v33 }
  0x24   :  { %748 = vmatmul.mubr.bf16.vlgmr.msra.gmra.mrb[0].mxu1 %v1025_v38  ;;  %1183 = vmatpush3.bf16.msra.mxu0 %v1285_v42  ;;  %v1035_v38 = vcombine.low %v29_v28, %v33_v31  ;;  %v1043_v42 = vcombine.low %v37_v36, %v37_v36 }
  0x25   :  { %1217 = vmatpush3.bf16.msra.mxu1 %v1286_v43  ;;  %1184 = vmatprep.subr.bf16.mxu0 %v1287_v44  ;;  %v1045_v43 = vcombine.low %v38_v37, %v38_v37  ;;  %v1323_v44 = vmov 0.0  }
  0x26   :  { %1218 = vmatprep.subr.bf16.mxu1 %v1288_v45  ;;  %699 = vmatprep.mubr.bf16.mxu0 %v1032_v54  ;;  %18 = vst [vmem:[%s1631_s3] sm:$0xf] %v1323_v44 }
  0x27   :  { %755 = vmatprep.mubr.bf16.mxu1 %v1034_v58 }
  0x28   :  { %1185 = vmatpush3.bf16.msra.mxu0 %v1289_v46 }
  0x29   :  { %1219 = vmatpush3.bf16.msra.mxu1 %v1290_v47  ;;  %1186 = vmatprep.subr.bf16.mxu0 %v1291_v48 }
  0x2a   :  { %1220 = vmatprep.subr.bf16.mxu1 %v1292_v49 }
  0x2b   :  { %700 = vmatmul.mubr.bf16.gmra.mrb[4].mxu0 %v1031_v57 }
  0x2c   :  { %1187 = vmatpush3.bf16.msra.mxu0 %v1293_v50  ;;  %756 = vmatmul.mubr.bf16.gmra.mrb[4].mxu1 %v1033_v60 }
  0x2d   :  { %1221 = vmatpush3.bf16.msra.mxu1 %v1294_v51  ;;  %1188 = vmatprep.subr.bf16.mxu0 %v1295_v59 }
  0x2e   :  { %1222 = vmatprep.subr.bf16.mxu1 %v1296_v61  ;;  %707 = vmatprep.mubr.bf16.mxu0 %v1040_v5 }
  0x2f   :  { %763 = vmatprep.mubr.bf16.mxu1 %v1042_v12 }
  0x30   :  { %1189 = vmatpush3.bf16.msra.mxu0 %v1297_v62 }
  0x31   :  { %1223 = vmatpush3.bf16.msra.mxu1 %v1298_v63  ;;  %1190 = vmatprep.subr.bf16.mxu0 %v1299_v0 }
  0x32   :  { %1224 = vmatprep.subr.bf16.mxu1 %v1300_v1 }
  0x33   :  { %708 = vmatmul.mubr.bf16.gmra.mrb[8].mxu0 %v1039_v7 }
  0x34   :  { %1191 = vmatpush3.bf16.msra.mxu0 %v1301_v2  ;;  %764 = vmatmul.mubr.bf16.gmra.mrb[8].mxu1 %v1041_v13 }
  0x35   :  { %1225 = vmatpush3.bf16.msra.mxu1 %v1302_v3  ;;  %1192 = vmatprep.subr.bf16.mxu0 %v1304_v6 }
  0x36   :  { %1226 = vmatprep.subr.bf16.mxu1 %v1305_v8  ;;  %803 = vmatprep.mubr.bf16.mxu0 %v1028_v25 }
  0x37   :  { %859 = vmatprep.mubr.bf16.mxu1 %v1030_v30 }
  0x38   :  { %1193 = vmatpush3.bf16.msra.mxu0 %v1307_v9 }
  0x39   :  { %1227 = vmatpush3.bf16.msra.mxu1 %v1308_v10  ;;  %1194 = vmatprep.subr.bf16.mxu0 %v1311_v14 }
  0x3a   :  { %1228 = vmatprep.subr.bf16.mxu1 %v1312_v15 }
  0x3c   :  { %1195 = vmatpush3.bf16.msra.mxu0 %v1313_v16 }
  0x3d   :  { %1229 = vmatpush3.bf16.msra.mxu1 %v1314_v17  ;;  %1196 = vmatprep.subr.bf16.mxu0 %v1315_v18 }
  0x3e   :  { %1230 = vmatprep.subr.bf16.mxu1 %v1316_v19 }
  0x40   :  { %1197 = vmatpush3.bf16.msra.mxu0 %v1317_v20  ;;  %v889_v20 = vlaneseq }
  0x41   :  { %1231 = vmatpush3.bf16.msra.mxu1 %v1318_v21 }
  0x43   :  { %804 = vmatmul.mubr.bf16.vlgmr.msra.gmra.mrb[12].mxu0 %v1027_v24  ;;  %v890_v24 = vshrl.u32 %v889_v20, 7 }
  0x44   :  { %860 = vmatmul.mubr.bf16.vlgmr.msra.gmra.mrb[12].mxu1 %v1029_v29  ;;  %811 = vmatprep.mubr.bf16.mxu0 %v1036_v34 }
  0x45   :  { %867 = vmatprep.mubr.bf16.mxu1 %v1038_v35  ;;  %v892_v35 = vadd.s32 16, %v890_v24 }
  0x47   :  { %vm903_vm0 = vcmp.lt.s32.totalorder %v892_v35, 18  ;;  %vm918_vm1 = vcmp.ge.s32.totalorder %v892_v35, 18 }
  0x4b   :  { %812 = vmatmul.mubr.bf16.gmra.mrb[16].mxu0 %v1035_v38 }
  0x4c   :  { %868 = vmatmul.mubr.bf16.gmra.mrb[16].mxu1 %v1037_v39  ;;  %819 = vmatprep.mubr.bf16.mxu0 %v1044_v40 }
  0x4d   :  { %875 = vmatprep.mubr.bf16.mxu1 %v1046_v41 }
  0x53   :  { %820 = vmatmul.mubr.bf16.gmra.mrb[20].mxu0 %v1043_v42 }
  0x54   :  { %876 = vmatmul.mubr.bf16.gmra.mrb[20].mxu1 %v1045_v43 }
  0xf6   :  { %v1130_v45 = vpop.f32.mrb[0].mxu0 }
  0xf7   :  { %v1164_v46 = vpop.f32.mrb[0].mxu1  ;;  %v1131_v47 = vpop.f32.mrb[1].mxu0 }
  0xf8   :  { %v1132_v48 = vadd.f32 %v1131_v47, %v1130_v45  ;;  %v1165_v49 = vpop.f32.mrb[1].mxu1  ;;  %v1133_v50 = vpop.f32.mrb[2].mxu0 }
  0xf9   :  { %v1166_v51 = vadd.f32 %v1165_v49, %v1164_v46  ;;  %v1167_v52 = vpop.f32.mrb[2].mxu1  ;;  %v1134_v53 = vpop.f32.mrb[3].mxu0 }
  0xfa   :  { %v1135_v54 = vadd.f32 %v1134_v53, %v1133_v50  ;;  %v1168_v55 = vpop.f32.mrb[3].mxu1 }
  0xfb   :  { %v750_v56 = vadd.f32 %v1166_v51, %v1132_v48  ;;  %v1169_v57 = vadd.f32 %v1168_v55, %v1167_v52  ;;  %v894_v55 = vadd.s32 32, %v890_v24 }
  0xfd   :  { %v753_v58 = vadd.f32 %v1169_v57, %v1135_v54  ;;  %vm925_vm2 = vcmp.lt.s32.totalorder %v894_v55, 36 }
  0xfe   :  { %v1136_v59 = vpop.f32.mrb[4].mxu0 }
  0xff   :  { %v1170_v60 = vpop.f32.mrb[4].mxu1  ;;  %v1137_v61 = vpop.f32.mrb[5].mxu0 }
 0x100   :  { %v1138_v62 = vadd.f32 %v1137_v61, %v1136_v59  ;;  %v1171_v63 = vpop.f32.mrb[5].mxu1  ;;  %v1139_v0 = vpop.f32.mrb[6].mxu0 }
 0x101   :  { %v1172_v1 = vadd.f32 %v1171_v63, %v1170_v60  ;;  %v1173_v2 = vpop.f32.mrb[6].mxu1  ;;  %v1140_v3 = vpop.f32.mrb[7].mxu0 }
 0x102   :  { %v1141_v4 = vadd.f32 %v1140_v3, %v1139_v0  ;;  %v1174_v5 = vpop.f32.mrb[7].mxu1  ;;  %v1111_v0 = vsel %vm903_vm0, 1.0, %v1323_v44 }
 0x103   :  { %v758_v6 = vadd.f32 %v1172_v1, %v1138_v62  ;;  %v1175_v7 = vadd.f32 %v1174_v5, %v1173_v2  ;;  %v1112_v1 = vsel %vm918_vm1, 1.0, %v1323_v44 }
 0x105   :  { %v761_v8 = vadd.f32 %v1175_v7, %v1141_v4 }
 0x106   :  { %v1142_v9 = vpop.f32.mrb[8].mxu0 }
 0x107   :  { %v1143_v10 = vpop.f32.mrb[9].mxu0  ;;  %v1176_v14 = vpop.f32.mrb[8].mxu1 }
 0x108   :  { %v1144_v11 = vadd.f32 %v1143_v10, %v1142_v9  ;;  %v1145_v12 = vpop.f32.mrb[10].mxu0  ;;  %v1177_v15 = vpop.f32.mrb[9].mxu1 }
 0x109   :  { %v1146_v13 = vpop.f32.mrb[11].mxu0  ;;  %v1178_v16 = vadd.f32 %v1177_v15, %v1176_v14  ;;  %v1179_v17 = vpop.f32.mrb[10].mxu1 }
 0x10a   :  { %v1180_v18 = vpop.f32.mrb[11].mxu1 }
 0x10b   :  { %v1600_v19 = vadd.f32 %v1178_v16, %v1144_v11 }
 0x116   :  { %v1198_v21 = vpop.f32.mrb[12].mxu0 }
 0x117   :  { %v1232_v22 = vpop.f32.mrb[12].mxu1  ;;  %v1199_v23 = vpop.f32.mrb[13].mxu0 }
 0x118   :  { %v1200_v25 = vadd.f32 %v1199_v23, %v1198_v21  ;;  %v1233_v26 = vpop.f32.mrb[13].mxu1  ;;  %v1201_v27 = vpop.f32.mrb[14].mxu0 }
 0x119   :  { %v1234_v28 = vadd.f32 %v1233_v26, %v1232_v22  ;;  %v1235_v29 = vpop.f32.mrb[14].mxu1  ;;  %v1202_v30 = vpop.f32.mrb[15].mxu0 }
 0x11a   :  { %v806_v31 = vadd.f32 %v1200_v25, %v750_v56  ;;  %v1203_v32 = vadd.f32 %v1202_v30, %v1201_v27  ;;  %v1236_v33 = vpop.f32.mrb[15].mxu1 }
 0x11b   :  { %v1237_v34 = vadd.f32 %v1236_v33, %v1235_v29 }
 0x11c   :  { %v862_v36 = vadd.f32 %v1234_v28, %v806_v31  ;;  %v809_v37 = vadd.f32 %v1203_v32, %v753_v58 }
 0x11e   :  { %883 = vst [vmem:[%s1632_s2] sm:$0xff] %v862_v36  ;;  %v946_v38 = vmul.f32 0.0, %v862_v36  ;;  %v865_v39 = vadd.f32 %v1237_v34, %v809_v37  ;;  %v1204_v40 = vpop.f32.mrb[16].mxu0  ;;  %v964_v43 = vmul.f32 %v862_v36, %v862_v36 }
 0x11f   :  { %v1238_v41 = vpop.f32.mrb[16].mxu1  ;;  %v1205_v42 = vpop.f32.mrb[17].mxu0 }
 0x120   :  { %884 = vst [vmem:[%s1632_s2 + $0x8] sm:$0xff] %v865_v39  ;;  %v947_v45 = vmul.f32 0.0, %v865_v39  ;;  %v952_v46 = vadd.f32 %v865_v39, %v862_v36  ;;  %v965_v47 = vmul.f32 %v865_v39, %v865_v39  ;;  %v1239_v48 = vpop.f32.mrb[17].mxu1  ;;  %v1207_v49 = vpop.f32.mrb[18].mxu0  ;;  %v991_v50 = vmul.f32 %v946_v38, %v862_v36 }
 0x121   :  { %v1206_v51 = vadd.f32 %v1205_v42, %v1204_v40  ;;  %v1240_v52 = vadd.f32 %v1239_v48, %v1238_v41  ;;  %v1241_v53 = vpop.f32.mrb[18].mxu1  ;;  %v1208_v54 = vpop.f32.mrb[19].mxu0 }
 0x122   :  { %v969_v56 = vadd.f32 %v965_v47, %v964_v43  ;;  %v980_v57 = vadd.f32 %v947_v45, %v946_v38  ;;  %v992_v58 = vmul.f32 %v947_v45, %v865_v39  ;;  %v1209_v59 = vadd.f32 %v1208_v54, %v1207_v49  ;;  %v1242_v60 = vpop.f32.mrb[19].mxu1 }
 0x123   :  { %v814_v61 = vadd.f32 %v1206_v51, %v758_v6  ;;  %v1243_v62 = vadd.f32 %v1242_v60, %v1241_v53 }
 0x124   :  { %v996_v63 = vadd.f32 %v992_v58, %v991_v50  ;;  %v817_v2 = vadd.f32 %v1209_v59, %v761_v8  ;;  %v1113_v8 = vsel %vm925_vm2, 1.0, %v1323_v44 }
 0x125   :  { %v870_v3 = vadd.f32 %v1240_v52, %v814_v61 }
 0x126   :  { %v873_v4 = vadd.f32 %v1243_v62, %v817_v2  ;;  %v1210_v5 = vpop.f32.mrb[20].mxu0 }
 0x127   :  { %885 = vst [vmem:[%s1632_s2 + $0x10] sm:$0xff] %v870_v3  ;;  %v943_v7 = vmul.f32 %v1111_v0, %v870_v3  ;;  %v948_v9 = vmul.f32 %v1112_v1, %v870_v3  ;;  %v1244_v6 = vpop.f32.mrb[20].mxu1  ;;  %v1211_v10 = vpop.f32.mrb[21].mxu0 }
 0x128   :  { %886 = vst [vmem:[%s1632_s2 + $0x18] sm:$0xff] %v873_v4  ;;  %v944_v11 = vmul.f32 0.0, %v873_v4  ;;  %v1212_v12 = vadd.f32 %v1211_v10, %v1210_v5  ;;  %v1245_v13 = vpop.f32.mrb[21].mxu1  ;;  %v1213_v14 = vpop.f32.mrb[22].mxu0  ;;  %v994_v23 = vmul.f32 %v873_v4, %v873_v4 }
 0x129   :  { %v953_v15 = vadd.f32 %v952_v46, %v943_v7  ;;  %v966_v16 = vmul.f32 %v943_v7, %v870_v3  ;;  %v993_v17 = vmul.f32 %v948_v9, %v870_v3  ;;  %v981_v18 = vadd.f32 %v980_v57, %v948_v9  ;;  %v1247_v20 = vpop.f32.mrb[22].mxu1  ;;  %v1214_v21 = vpop.f32.mrb[23].mxu0 }
 0x12a   :  { %v967_v22 = vmul.f32 %v944_v11, %v873_v4  ;;  %v822_v24 = vadd.f32 %v1212_v12, %v1600_v19  ;;  %v1246_v25 = vadd.f32 %v1245_v13, %v1244_v6  ;;  %v1248_v26 = vpop.f32.mrb[23].mxu1 }
 0x12b   :  { %v970_v27 = vadd.f32 %v969_v56, %v966_v16  ;;  %v997_v28 = vadd.f32 %v996_v63, %v993_v17  ;;  %v954_v29 = vadd.f32 %v953_v15, %v944_v11  ;;  %v982_v30 = vadd.f32 %v981_v18, %v873_v4  ;;  %v951_v4 = vld [vmem:[%s1631_s3] sm:$0xf] }
 0x12c   :  { %v878_v31 = vadd.f32 %v1246_v25, %v822_v24 }
 0x12d   :  { %v971_v32 = vadd.f32 %v970_v27, %v967_v22  ;;  %v998_v44 = vadd.f32 %v997_v28, %v994_v23 }
 0x12e   :  { %887 = vst [vmem:[%s1632_s2 + $0x20] sm:$0xf] %v878_v31  ;;  %v945_v33 = vmul.f32 0.0, %v878_v31  ;;  %v950_v34 = vmul.f32 %v1113_v8, %v878_v31 }
 0x130   :  { %v956_v35 = vsel %vm955_vm3, %v945_v33, 0.0  ;;  %v968_v36 = vmul.f32 %v945_v33, %v878_v31  ;;  %v983_v37 = vsel %vm955_vm3, %v950_v34, 0.0  ;;  %v995_v19 = vmul.f32 %v950_v34, %v878_v31 }
 0x131   :  { %v957_v38 = vadd.f32 %v956_v35, %v954_v29  ;;  %v984_v39 = vadd.f32 %v983_v37, %v982_v30 }
 0x132   :  { %v972_v40 = vsel %vm955_vm3, %v968_v36, 0.0  ;;  %v999_v41 = vsel %vm955_vm3, %v995_v19, 0.0 }
 0x133   :  { %v958_v42 = vrot.slane %v957_v38, 4  ;;  %v973_v43 = vadd.f32 %v972_v40, %v971_v32  ;;  %v985_v45 = vrot.slane %v984_v39, 4  ;;  %v1000_v46 = vadd.f32 %v999_v41, %v998_v44 }
 0x135   :  { %v959_v47 = vadd.f32 %v958_v42, %v957_v38  ;;  %v974_v48 = vrot.slane %v973_v43, 4  ;;  %v986_v49 = vadd.f32 %v985_v45, %v984_v39  ;;  %v1001_v50 = vrot.slane %v1000_v46, 4 }
 0x137   :  { %v960_v51 = vrot.slane %v959_v47, 2  ;;  %v975_v52 = vadd.f32 %v974_v48, %v973_v43  ;;  %v987_v53 = vrot.slane %v986_v49, 2  ;;  %v1002_v54 = vadd.f32 %v1001_v50, %v1000_v46 }
 0x139   :  { %v961_v55 = vadd.f32 %v960_v51, %v959_v47  ;;  %v976_v56 = vrot.slane %v975_v52, 2  ;;  %v988_v57 = vadd.f32 %v987_v53, %v986_v49  ;;  %v1003_v58 = vrot.slane %v1002_v54, 2 }
 0x13b   :  { %v962_v59 = vrot.slane %v961_v55, 1  ;;  %v977_v60 = vadd.f32 %v976_v56, %v975_v52  ;;  %v1004_v61 = vadd.f32 %v1003_v58, %v1002_v54  ;;  %v989_v62 = vrot.slane %v988_v57, 1 }
 0x13d   :  { %v978_v63 = vrot.slane %v977_v60, 1  ;;  %v1005_v0 = vrot.slane %v1004_v61, 1  ;;  %v963_v1 = vadd.f32 %v962_v59, %v961_v55  ;;  %v990_v3 = vadd.f32 %v989_v62, %v988_v57 }
 0x13f   :  { %v979_v2 = vadd.f32 %v978_v63, %v977_v60  ;;  %v1006_v5 = vadd.f32 %v1005_v0, %v1004_v61 }
 0x141   :  { %v1008_v7 = vsel %vm1007_vm4, %v963_v1, %v979_v2 }
 0x142   :  { %v1010_v9 = vsel %vm1009_vm5, %v1008_v7, %v990_v3 }
 0x143   :  { %v1012_v6 = vsel %vm1011_vm6, %v1010_v9, %v1006_v5 }
 0x144   :  { %v1013_v10 = vadd.f32 %v1012_v6, %v951_v4 }
 0x146   :  { %1014 = vst [vmem:[%s1631_s3] sm:$0xf] %v1013_v10 }

// kernel: d_loss.15
= control target key start
LH: loop header
LB: loop body
LE: loop exit
PB: predicated region body
PF: predicated region fallthrough
CT: control target
= control target key end

     0   :  { %s2485_s0 = inlined_call_operand.vmem [shape: bf16[16,2048], index: 0, kind: input, shape index: {}]   ;;  %s2486_s1 = inlined_call_operand.vmem [shape: bf16[2048,1], index: 1, kind: input, shape index: {}]   ;;  %s2487_s2 = inlined_call_operand.<no memory space> [shape: f32[1,1], index: 2, kind: input, shape index: {}]   ;;  %s2488_s3 = inlined_call_operand.hbm [shape: f32[1,1], index: 3, kind: output, shape index: {}]  }
   0x1   :  { %v8_v0 = vstv %s2487_s2 }
   0x2   :  { %9 = vst [vmem:[#allocation2] sm:$0x1] %v8_v0 }
   0x3   :  { %v1862_v1 = vld [vmem:[%s2486_s1 + $0x40] sm:$0xff]   ;;  %v1866_v5 = vld [vmem:[%s2486_s1 + $0x48] sm:$0xff]   ;;  %v1870_v9 = vld [vmem:[%s2486_s1 + $0x50] sm:$0xff]  }
   0x4   :  { %v1863_v2 = vld [vmem:[%s2486_s1 + $0xc0] sm:$0xff]   ;;  %1682 = vmatprep.subr.bf16.mxu0 %v1862_v1  ;;  %v1867_v6 = vld [vmem:[%s2486_s1 + $0xc8] sm:$0xff]   ;;  %v1871_v10 = vld [vmem:[%s2486_s1 + $0xd0] sm:$0xff]  }
   0x5   :  { %v1864_v3 = vld [vmem:[%s2486_s1] sm:$0xff]   ;;  %1704 = vmatprep.subr.bf16.mxu1 %v1863_v2  ;;  %v1868_v7 = vld [vmem:[%s2486_s1 + $0x8] sm:$0xff]   ;;  %v1872_v11 = vld [vmem:[%s2486_s1 + $0x10] sm:$0xff]  }
   0x6   :  { %v1865_v4 = vld [vmem:[%s2486_s1 + $0x80] sm:$0xff]   ;;  %1683 = vmatpush3.bf16.msra.mxu0 %v1864_v3  ;;  %v1869_v8 = vld [vmem:[%s2486_s1 + $0x88] sm:$0xff]   ;;  %v1873_v12 = vld [vmem:[%s2486_s1 + $0x90] sm:$0xff]  }
   0x7   :  { %1705 = vmatpush3.bf16.msra.mxu1 %v1865_v4  ;;  %1684 = vmatprep.subr.bf16.mxu0 %v1866_v5  ;;  %v1874_v13 = vld [vmem:[%s2486_s1 + $0x58] sm:$0xff]   ;;  %v1878_v17 = vld [vmem:[%s2486_s1 + $0x60] sm:$0xff]   ;;  %v1882_v21 = vld [vmem:[%s2486_s1 + $0x68] sm:$0xff]  }
   0x8   :  { %1706 = vmatprep.subr.bf16.mxu1 %v1867_v6  ;;  %v1875_v14 = vld [vmem:[%s2486_s1 + $0xd8] sm:$0xff]   ;;  %v1879_v18 = vld [vmem:[%s2486_s1 + $0xe0] sm:$0xff]   ;;  %v1883_v22 = vld [vmem:[%s2486_s1 + $0xe8] sm:$0xff]  }
   0x9   :  { %v1876_v15 = vld [vmem:[%s2486_s1 + $0x18] sm:$0xff]   ;;  %v1880_v19 = vld [vmem:[%s2486_s1 + $0x20] sm:$0xff]   ;;  %v1884_v23 = vld [vmem:[%s2486_s1 + $0x28] sm:$0xff]  }
   0xa   :  { %1685 = vmatpush3.bf16.msra.mxu0 %v1868_v7  ;;  %v1877_v16 = vld [vmem:[%s2486_s1 + $0x98] sm:$0xff]   ;;  %v1881_v20 = vld [vmem:[%s2486_s1 + $0xa0] sm:$0xff]   ;;  %v1885_v24 = vld [vmem:[%s2486_s1 + $0xa8] sm:$0xff]  }
   0xb   :  { %1707 = vmatpush3.bf16.msra.mxu1 %v1869_v8  ;;  %1686 = vmatprep.subr.bf16.mxu0 %v1870_v9  ;;  %v1886_v25 = vld [vmem:[%s2486_s1 + $0x70] sm:$0xff]   ;;  %v1890_v29 = vld [vmem:[%s2486_s1 + $0x78] sm:$0xff]   ;;  %v24_v33 = vld [vmem:[%s2485_s0] sm:$0xff] }
   0xc   :  { %1708 = vmatprep.subr.bf16.mxu1 %v1871_v10  ;;  %v1887_v26 = vld [vmem:[%s2486_s1 + $0xf0] sm:$0xff]   ;;  %v1891_v30 = vld [vmem:[%s2486_s1 + $0xf8] sm:$0xff]   ;;  %v32_v34 = vld [vmem:[%s2485_s0 + $0x40] sm:$0xff] }
   0xd   :  { %v1888_v27 = vld [vmem:[%s2486_s1 + $0x30] sm:$0xff]   ;;  %v1892_v31 = vld [vmem:[%s2486_s1 + $0x38] sm:$0xff]   ;;  %v25_v35 = vld [vmem:[%s2485_s0 + $0x8] sm:$0xff]  ;;  %v1538_v36 = vcombine.low %v24_v33, %v32_v34  ;;  %v1539_v37 = vcombine.high %v24_v33, %v32_v34 }
   0xe   :  { %1687 = vmatpush3.bf16.msra.mxu0 %v1872_v11  ;;  %v1889_v28 = vld [vmem:[%s2486_s1 + $0xb0] sm:$0xff]   ;;  %v1893_v32 = vld [vmem:[%s2486_s1 + $0xb8] sm:$0xff]   ;;  %v33_v38 = vld [vmem:[%s2485_s0 + $0x48] sm:$0xff] }
   0xf   :  { %1709 = vmatpush3.bf16.msra.mxu1 %v1873_v12  ;;  %1688 = vmatprep.subr.bf16.mxu0 %v1874_v13  ;;  %v1540_v39 = vcombine.low %v25_v35, %v33_v38  ;;  %v1541_v40 = vcombine.high %v25_v35, %v33_v38  ;;  %v1894_v41 = vld [vmem:[%s2486_s1 + $0x140] sm:$0xff]   ;;  %v1898_v45 = vld [vmem:[%s2486_s1 + $0x148] sm:$0xff]   ;;  %v1902_v49 = vld [vmem:[%s2486_s1 + $0x150] sm:$0xff]  }
  0x10   :  { %1710 = vmatprep.subr.bf16.mxu1 %v1875_v14  ;;  %1183 = vmatprep.mubr.bf16.mxu0 %v1539_v37  ;;  %v1895_v42 = vld [vmem:[%s2486_s1 + $0x1c0] sm:$0xff]   ;;  %v1899_v46 = vld [vmem:[%s2486_s1 + $0x1c8] sm:$0xff]   ;;  %v1903_v50 = vld [vmem:[%s2486_s1 + $0x1d0] sm:$0xff]  }
  0x11   :  { %1224 = vmatprep.mubr.bf16.mxu1 %v1541_v40  ;;  %v1896_v43 = vld [vmem:[%s2486_s1 + $0x100] sm:$0xff]   ;;  %v1900_v47 = vld [vmem:[%s2486_s1 + $0x108] sm:$0xff]   ;;  %v1904_v51 = vld [vmem:[%s2486_s1 + $0x110] sm:$0xff]  }
  0x12   :  { %1689 = vmatpush3.bf16.msra.mxu0 %v1876_v15  ;;  %v1897_v44 = vld [vmem:[%s2486_s1 + $0x180] sm:$0xff]   ;;  %v1901_v48 = vld [vmem:[%s2486_s1 + $0x188] sm:$0xff]   ;;  %v1905_v52 = vld [vmem:[%s2486_s1 + $0x190] sm:$0xff]  }
  0x13   :  { %1711 = vmatpush3.bf16.msra.mxu1 %v1877_v16  ;;  %1690 = vmatprep.subr.bf16.mxu0 %v1878_v17  ;;  %v1906_v53 = vld [vmem:[%s2486_s1 + $0x158] sm:$0xff]   ;;  %v1910_v57 = vld [vmem:[%s2486_s1 + $0x160] sm:$0xff]   ;;  %v1914_v61 = vld [vmem:[%s2486_s1 + $0x168] sm:$0xff]  }
  0x14   :  { %1712 = vmatprep.subr.bf16.mxu1 %v1879_v18  ;;  %v1907_v54 = vld [vmem:[%s2486_s1 + $0x1d8] sm:$0xff]   ;;  %v1911_v58 = vld [vmem:[%s2486_s1 + $0x1e0] sm:$0xff]   ;;  %v1915_v62 = vld [vmem:[%s2486_s1 + $0x1e8] sm:$0xff]  }
  0x15   :  { %v1908_v55 = vld [vmem:[%s2486_s1 + $0x118] sm:$0xff]   ;;  %v1912_v59 = vld [vmem:[%s2486_s1 + $0x120] sm:$0xff]   ;;  %v1916_v63 = vld [vmem:[%s2486_s1 + $0x128] sm:$0xff]  }
  0x16   :  { %1691 = vmatpush3.bf16.msra.mxu0 %v1880_v19  ;;  %v1909_v56 = vld [vmem:[%s2486_s1 + $0x198] sm:$0xff]   ;;  %v1913_v60 = vld [vmem:[%s2486_s1 + $0x1a0] sm:$0xff]   ;;  %v1917_v0 = vld [vmem:[%s2486_s1 + $0x1a8] sm:$0xff]  }
  0x17   :  { %1713 = vmatpush3.bf16.msra.mxu1 %v1881_v20  ;;  %1692 = vmatprep.subr.bf16.mxu0 %v1882_v21  ;;  %v1918_v1 = vld [vmem:[%s2486_s1 + $0x170] sm:$0xff]   ;;  %v1922_v5 = vld [vmem:[%s2486_s1 + $0x178] sm:$0xff]   ;;  %v1926_v17 = vld [vmem:[%s2486_s1 + $0x240] sm:$0xff]  }
  0x18   :  { %1714 = vmatprep.subr.bf16.mxu1 %v1883_v22  ;;  %v1919_v2 = vld [vmem:[%s2486_s1 + $0x1f0] sm:$0xff]   ;;  %v1923_v6 = vld [vmem:[%s2486_s1 + $0x1f8] sm:$0xff]   ;;  %v1927_v18 = vld [vmem:[%s2486_s1 + $0x2c0] sm:$0xff]  }
  0x19   :  { %v1920_v3 = vld [vmem:[%s2486_s1 + $0x130] sm:$0xff]   ;;  %v1924_v7 = vld [vmem:[%s2486_s1 + $0x138] sm:$0xff]   ;;  %v1928_v19 = vld [vmem:[%s2486_s1 + $0x200] sm:$0xff]  }
  0x1a   :  { %1693 = vmatpush3.bf16.msra.mxu0 %v1884_v23  ;;  %v1921_v4 = vld [vmem:[%s2486_s1 + $0x1b0] sm:$0xff]   ;;  %v1925_v8 = vld [vmem:[%s2486_s1 + $0x1b8] sm:$0xff]   ;;  %v1929_v20 = vld [vmem:[%s2486_s1 + $0x280] sm:$0xff]  }
  0x1b   :  { %1715 = vmatpush3.bf16.msra.mxu1 %v1885_v24  ;;  %1694 = vmatprep.subr.bf16.mxu0 %v1886_v25  ;;  %v26_v9 = vld [vmem:[%s2485_s0 + $0x10] sm:$0xff]  ;;  %v27_v13 = vld [vmem:[%s2485_s0 + $0x18] sm:$0xff]  ;;  %v1930_v21 = vld [vmem:[%s2486_s1 + $0x248] sm:$0xff]  }
  0x1c   :  { %1716 = vmatprep.subr.bf16.mxu1 %v1887_v26  ;;  %v34_v10 = vld [vmem:[%s2485_s0 + $0x50] sm:$0xff]  ;;  %v35_v14 = vld [vmem:[%s2485_s0 + $0x58] sm:$0xff]  ;;  %v1931_v22 = vld [vmem:[%s2486_s1 + $0x2c8] sm:$0xff]  }
  0x1d   :  { %v1542_v11 = vcombine.low %v26_v9, %v34_v10  ;;  %v1543_v12 = vcombine.high %v26_v9, %v34_v10  ;;  %v1544_v15 = vcombine.low %v27_v13, %v35_v14  ;;  %v1545_v16 = vcombine.high %v27_v13, %v35_v14  ;;  %v1932_v23 = vld [vmem:[%s2486_s1 + $0x208] sm:$0xff]   ;;  %v1934_v25 = vld [vmem:[%s2486_s1 + $0x250] sm:$0xff]   ;;  %v1942_v33 = vld [vmem:[%s2486_s1 + $0x260] sm:$0xff]  }
  0x1e   :  { %1695 = vmatpush3.bf16.msra.mxu0 %v1888_v27  ;;  %v1933_v24 = vld [vmem:[%s2486_s1 + $0x288] sm:$0xff]   ;;  %v1935_v26 = vld [vmem:[%s2486_s1 + $0x2d0] sm:$0xff]   ;;  %v1943_v34 = vld [vmem:[%s2486_s1 + $0x2e0] sm:$0xff]  }
  0x1f   :  { %1717 = vmatpush3.bf16.msra.mxu1 %v1889_v28  ;;  %1696 = vmatprep.subr.bf16.mxu0 %v1890_v29  ;;  %v1936_v27 = vld [vmem:[%s2486_s1 + $0x210] sm:$0xff]   ;;  %v1938_v29 = vld [vmem:[%s2486_s1 + $0x258] sm:$0xff]   ;;  %v1944_v35 = vld [vmem:[%s2486_s1 + $0x220] sm:$0xff]  }
  0x20   :  { %1718 = vmatprep.subr.bf16.mxu1 %v1891_v30  ;;  %v1937_v28 = vld [vmem:[%s2486_s1 + $0x290] sm:$0xff]   ;;  %v1939_v30 = vld [vmem:[%s2486_s1 + $0x2d8] sm:$0xff]   ;;  %v1946_v37 = vld [vmem:[%s2486_s1 + $0x268] sm:$0xff]  }
  0x21   :  { %v1947_v38 = vld [vmem:[%s2486_s1 + $0x2e8] sm:$0xff]   ;;  %v1974_v9 = vld [vmem:[%s2486_s1 + $0x360] sm:$0xff]  }
  0x22   :  { %1697 = vmatpush3.bf16.msra.mxu0 %v1892_v31  ;;  %v1940_v31 = vld [vmem:[%s2486_s1 + $0x218] sm:$0xff]   ;;  %v1949_v40 = vld [vmem:[%s2486_s1 + $0x2a8] sm:$0xff]   ;;  %v1975_v10 = vld [vmem:[%s2486_s1 + $0x3e0] sm:$0xff]  }
  0x23   :  { %1719 = vmatpush3.bf16.msra.mxu1 %v1893_v32  ;;  %1726 = vmatprep.subr.bf16.mxu0 %v1894_v41  ;;  %v1941_v32 = vld [vmem:[%s2486_s1 + $0x298] sm:$0xff]   ;;  %v1950_v41 = vld [vmem:[%s2486_s1 + $0x270] sm:$0xff]   ;;  %v1978_v13 = vld [vmem:[%s2486_s1 + $0x368] sm:$0xff]  }
  0x24   :  { %1748 = vmatprep.subr.bf16.mxu1 %v1895_v42  ;;  %v1951_v42 = vld [vmem:[%s2486_s1 + $0x2f0] sm:$0xff]   ;;  %v1979_v14 = vld [vmem:[%s2486_s1 + $0x3e8] sm:$0xff]  }
  0x25   :  { %1184 = vmatmul.mubr.bf16.vlgmr.msra.gmra.mrb[0].mxu0 %v1538_v36  ;;  %v1945_v36 = vld [vmem:[%s2486_s1 + $0x2a0] sm:$0xff]  }
  0x26   :  { %1225 = vmatmul.mubr.bf16.vlgmr.msra.gmra.mrb[0].mxu1 %v1540_v39  ;;  %1727 = vmatpush3.bf16.msra.mxu0 %v1896_v43  ;;  %v1948_v39 = vld [vmem:[%s2486_s1 + $0x228] sm:$0xff]   ;;  %v1952_v43 = vld [vmem:[%s2486_s1 + $0x230] sm:$0xff]  }
  0x27   :  { %1749 = vmatpush3.bf16.msra.mxu1 %v1897_v44  ;;  %1728 = vmatprep.subr.bf16.mxu0 %v1898_v45  ;;  %v1953_v44 = vld [vmem:[%s2486_s1 + $0x2b0] sm:$0xff]   ;;  %v1954_v45 = vld [vmem:[%s2486_s1 + $0x278] sm:$0xff]  }
  0x28   :  { %1750 = vmatprep.subr.bf16.mxu1 %v1899_v46  ;;  %1265 = vmatprep.mubr.bf16.mxu0 %v1543_v12  ;;  %v1955_v46 = vld [vmem:[%s2486_s1 + $0x2f8] sm:$0xff]   ;;  %v1977_v12 = vld [vmem:[%s2486_s1 + $0x3a0] sm:$0xff]  }
  0x29   :  { %1306 = vmatprep.mubr.bf16.mxu1 %v1545_v16  ;;  %v1981_v16 = vld [vmem:[%s2486_s1 + $0x3a8] sm:$0xff]  }
  0x2a   :  { %1729 = vmatpush3.bf16.msra.mxu0 %v1900_v47  ;;  %v1956_v47 = vld [vmem:[%s2486_s1 + $0x238] sm:$0xff]  }
  0x2b   :  { %1751 = vmatpush3.bf16.msra.mxu1 %v1901_v48  ;;  %1730 = vmatprep.subr.bf16.mxu0 %v1902_v49  ;;  %v1957_v48 = vld [vmem:[%s2486_s1 + $0x2b8] sm:$0xff]   ;;  %v28_v49 = vld [vmem:[%s2485_s0 + $0x20] sm:$0xff] }
  0x2c   :  { %1752 = vmatprep.subr.bf16.mxu1 %v1903_v50  ;;  %v36_v50 = vld [vmem:[%s2485_s0 + $0x60] sm:$0xff] }
  0x2e   :  { %1731 = vmatpush3.bf16.msra.mxu0 %v1904_v51  ;;  %v29_v51 = vld [vmem:[%s2485_s0 + $0x28] sm:$0xff] }
  0x2f   :  { %1753 = vmatpush3.bf16.msra.mxu1 %v1905_v52  ;;  %1732 = vmatprep.subr.bf16.mxu0 %v1906_v53  ;;  %v37_v52 = vld [vmem:[%s2485_s0 + $0x68] sm:$0xff]  ;;  %v1546_v53 = vcombine.low %v28_v49, %v36_v50 }
  0x30   :  { %1754 = vmatprep.subr.bf16.mxu1 %v1907_v54  ;;  %v1547_v54 = vcombine.high %v28_v49, %v36_v50 }
  0x32   :  { %1733 = vmatpush3.bf16.msra.mxu0 %v1908_v55  ;;  %v1548_v55 = vcombine.low %v29_v51, %v37_v52 }
  0x33   :  { %1755 = vmatpush3.bf16.msra.mxu1 %v1909_v56  ;;  %1734 = vmatprep.subr.bf16.mxu0 %v1910_v57  ;;  %v1549_v56 = vcombine.high %v29_v51, %v37_v52  ;;  %v1958_v57 = vld [vmem:[%s2486_s1 + $0x340] sm:$0xff]  }
  0x34   :  { %1756 = vmatprep.subr.bf16.mxu1 %v1911_v58  ;;  %v1959_v58 = vld [vmem:[%s2486_s1 + $0x3c0] sm:$0xff]  }
  0x36   :  { %1735 = vmatpush3.bf16.msra.mxu0 %v1912_v59  ;;  %v1960_v59 = vld [vmem:[%s2486_s1 + $0x300] sm:$0xff]  }
  0x37   :  { %1757 = vmatpush3.bf16.msra.mxu1 %v1913_v60  ;;  %1736 = vmatprep.subr.bf16.mxu0 %v1914_v61  ;;  %v1961_v60 = vld [vmem:[%s2486_s1 + $0x380] sm:$0xff]   ;;  %v1962_v61 = vld [vmem:[%s2486_s1 + $0x348] sm:$0xff]  }
  0x38   :  { %1758 = vmatprep.subr.bf16.mxu1 %v1915_v62  ;;  %v1963_v62 = vld [vmem:[%s2486_s1 + $0x3c8] sm:$0xff]  }
  0x3a   :  { %1737 = vmatpush3.bf16.msra.mxu0 %v1916_v63  ;;  %v1964_v63 = vld [vmem:[%s2486_s1 + $0x308] sm:$0xff]  }
  0x3b   :  { %1759 = vmatpush3.bf16.msra.mxu1 %v1917_v0  ;;  %1738 = vmatprep.subr.bf16.mxu0 %v1918_v1  ;;  %v1965_v0 = vld [vmem:[%s2486_s1 + $0x388] sm:$0xff]   ;;  %v1966_v1 = vld [vmem:[%s2486_s1 + $0x350] sm:$0xff]  }
  0x3c   :  { %1760 = vmatprep.subr.bf16.mxu1 %v1919_v2  ;;  %v1967_v2 = vld [vmem:[%s2486_s1 + $0x3d0] sm:$0xff]  }
  0x3e   :  { %1739 = vmatpush3.bf16.msra.mxu0 %v1920_v3  ;;  %v1968_v3 = vld [vmem:[%s2486_s1 + $0x310] sm:$0xff]  }
  0x3f   :  { %1761 = vmatpush3.bf16.msra.mxu1 %v1921_v4  ;;  %1740 = vmatprep.subr.bf16.mxu0 %v1922_v5  ;;  %v1969_v4 = vld [vmem:[%s2486_s1 + $0x390] sm:$0xff]   ;;  %v1970_v5 = vld [vmem:[%s2486_s1 + $0x358] sm:$0xff]  }
  0x40   :  { %1762 = vmatprep.subr.bf16.mxu1 %v1923_v6  ;;  %v1971_v6 = vld [vmem:[%s2486_s1 + $0x3d8] sm:$0xff]  }
  0x42   :  { %1741 = vmatpush3.bf16.msra.mxu0 %v1924_v7  ;;  %v1972_v7 = vld [vmem:[%s2486_s1 + $0x318] sm:$0xff]  }
  0x43   :  { %1763 = vmatpush3.bf16.msra.mxu1 %v1925_v8  ;;  %1770 = vmatprep.subr.bf16.mxu0 %v1926_v17  ;;  %v1973_v8 = vld [vmem:[%s2486_s1 + $0x398] sm:$0xff]   ;;  %v1982_v17 = vld [vmem:[%s2486_s1 + $0x370] sm:$0xff]  }
  0x44   :  { %1792 = vmatprep.subr.bf16.mxu1 %v1927_v18  ;;  %v1983_v18 = vld [vmem:[%s2486_s1 + $0x3f0] sm:$0xff]  }
  0x45   :  { %1266 = vmatmul.mubr.bf16.vlgmr.msra.gmra.mrb[4].mxu0 %v1542_v11  ;;  %v1976_v11 = vld [vmem:[%s2486_s1 + $0x320] sm:$0xff]  }
  0x46   :  { %1307 = vmatmul.mubr.bf16.vlgmr.msra.gmra.mrb[4].mxu1 %v1544_v15  ;;  %1771 = vmatpush3.bf16.msra.mxu0 %v1928_v19  ;;  %v1980_v15 = vld [vmem:[%s2486_s1 + $0x328] sm:$0xff]   ;;  %v1984_v19 = vld [vmem:[%s2486_s1 + $0x330] sm:$0xff]  }
  0x47   :  { %1793 = vmatpush3.bf16.msra.mxu1 %v1929_v20  ;;  %1772 = vmatprep.subr.bf16.mxu0 %v1930_v21  ;;  %v1985_v20 = vld [vmem:[%s2486_s1 + $0x3b0] sm:$0xff]   ;;  %v1986_v21 = vld [vmem:[%s2486_s1 + $0x378] sm:$0xff]  }
  0x48   :  { %1794 = vmatprep.subr.bf16.mxu1 %v1931_v22  ;;  %1347 = vmatprep.mubr.bf16.mxu0 %v1547_v54  ;;  %v1987_v22 = vld [vmem:[%s2486_s1 + $0x3f8] sm:$0xff]  }
  0x49   :  { %1388 = vmatprep.mubr.bf16.mxu1 %v1549_v56 }
  0x4a   :  { %1773 = vmatpush3.bf16.msra.mxu0 %v1932_v23  ;;  %v1988_v23 = vld [vmem:[%s2486_s1 + $0x338] sm:$0xff]  }
  0x4b   :  { %1795 = vmatpush3.bf16.msra.mxu1 %v1933_v24  ;;  %1774 = vmatprep.subr.bf16.mxu0 %v1934_v25  ;;  %v1989_v24 = vld [vmem:[%s2486_s1 + $0x3b8] sm:$0xff]   ;;  %v30_v25 = vld [vmem:[%s2485_s0 + $0x30] sm:$0xff] }
  0x4c   :  { %1796 = vmatprep.subr.bf16.mxu1 %v1935_v26  ;;  %v38_v26 = vld [vmem:[%s2485_s0 + $0x70] sm:$0xff] }
  0x4e   :  { %1775 = vmatpush3.bf16.msra.mxu0 %v1936_v27  ;;  %v31_v27 = vld [vmem:[%s2485_s0 + $0x38] sm:$0xff] }
  0x4f   :  { %1797 = vmatpush3.bf16.msra.mxu1 %v1937_v28  ;;  %1776 = vmatprep.subr.bf16.mxu0 %v1938_v29  ;;  %v1550_v28 = vcombine.low %v30_v25, %v38_v26  ;;  %v1551_v29 = vcombine.high %v30_v25, %v38_v26 }
  0x50   :  { %1798 = vmatprep.subr.bf16.mxu1 %v1939_v30  ;;  %v39_v30 = vld [vmem:[%s2485_s0 + $0x78] sm:$0xff] }
  0x52   :  { %1777 = vmatpush3.bf16.msra.mxu0 %v1940_v31 }
  0x53   :  { %1799 = vmatpush3.bf16.msra.mxu1 %v1941_v32  ;;  %1778 = vmatprep.subr.bf16.mxu0 %v1942_v33 }
  0x54   :  { %1800 = vmatprep.subr.bf16.mxu1 %v1943_v34 }
  0x56   :  { %1779 = vmatpush3.bf16.msra.mxu0 %v1944_v35 }
  0x57   :  { %1801 = vmatpush3.bf16.msra.mxu1 %v1945_v36  ;;  %1780 = vmatprep.subr.bf16.mxu0 %v1946_v37 }
  0x58   :  { %1802 = vmatprep.subr.bf16.mxu1 %v1947_v38 }
  0x5a   :  { %1781 = vmatpush3.bf16.msra.mxu0 %v1948_v39 }
  0x5b   :  { %1803 = vmatpush3.bf16.msra.mxu1 %v1949_v40  ;;  %1782 = vmatprep.subr.bf16.mxu0 %v1950_v41 }
  0x5c   :  { %1804 = vmatprep.subr.bf16.mxu1 %v1951_v42 }
  0x5e   :  { %1783 = vmatpush3.bf16.msra.mxu0 %v1952_v43 }
  0x5f   :  { %1805 = vmatpush3.bf16.msra.mxu1 %v1953_v44  ;;  %1784 = vmatprep.subr.bf16.mxu0 %v1954_v45 }
  0x60   :  { %1806 = vmatprep.subr.bf16.mxu1 %v1955_v46 }
  0x62   :  { %1785 = vmatpush3.bf16.msra.mxu0 %v1956_v47 }
  0x63   :  { %1807 = vmatpush3.bf16.msra.mxu1 %v1957_v48  ;;  %1814 = vmatprep.subr.bf16.mxu0 %v1958_v57 }
  0x64   :  { %1836 = vmatprep.subr.bf16.mxu1 %v1959_v58 }
  0x65   :  { %1348 = vmatmul.mubr.bf16.vlgmr.msra.gmra.mrb[8].mxu0 %v1546_v53 }
  0x66   :  { %1389 = vmatmul.mubr.bf16.vlgmr.msra.gmra.mrb[8].mxu1 %v1548_v55  ;;  %1815 = vmatpush3.bf16.msra.mxu0 %v1960_v59 }
  0x67   :  { %1837 = vmatpush3.bf16.msra.mxu1 %v1961_v60  ;;  %1816 = vmatprep.subr.bf16.mxu0 %v1962_v61 }
  0x68   :  { %1838 = vmatprep.subr.bf16.mxu1 %v1963_v62 }
  0x6a   :  { %1817 = vmatpush3.bf16.msra.mxu0 %v1964_v63 }
  0x6b   :  { %1839 = vmatpush3.bf16.msra.mxu1 %v1965_v0  ;;  %1818 = vmatprep.subr.bf16.mxu0 %v1966_v1 }
  0x6c   :  { %1840 = vmatprep.subr.bf16.mxu1 %v1967_v2 }
  0x6e   :  { %1819 = vmatpush3.bf16.msra.mxu0 %v1968_v3 }
  0x6f   :  { %1841 = vmatpush3.bf16.msra.mxu1 %v1969_v4  ;;  %1820 = vmatprep.subr.bf16.mxu0 %v1970_v5 }
  0x70   :  { %1842 = vmatprep.subr.bf16.mxu1 %v1971_v6 }
  0x72   :  { %1821 = vmatpush3.bf16.msra.mxu0 %v1972_v7 }
  0x73   :  { %1843 = vmatpush3.bf16.msra.mxu1 %v1973_v8  ;;  %1822 = vmatprep.subr.bf16.mxu0 %v1974_v9 }
  0x74   :  { %1844 = vmatprep.subr.bf16.mxu1 %v1975_v10 }
  0x76   :  { %1823 = vmatpush3.bf16.msra.mxu0 %v1976_v11 }
  0x77   :  { %1845 = vmatpush3.bf16.msra.mxu1 %v1977_v12  ;;  %1824 = vmatprep.subr.bf16.mxu0 %v1978_v13 }
  0x78   :  { %1846 = vmatprep.subr.bf16.mxu1 %v1979_v14 }
  0x7a   :  { %1825 = vmatpush3.bf16.msra.mxu0 %v1980_v15 }
  0x7b   :  { %1847 = vmatpush3.bf16.msra.mxu1 %v1981_v16  ;;  %1826 = vmatprep.subr.bf16.mxu0 %v1982_v17 }
  0x7c   :  { %1848 = vmatprep.subr.bf16.mxu1 %v1983_v18 }
  0x7e   :  { %1827 = vmatpush3.bf16.msra.mxu0 %v1984_v19 }
  0x7f   :  { %1849 = vmatpush3.bf16.msra.mxu1 %v1985_v20  ;;  %1828 = vmatprep.subr.bf16.mxu0 %v1986_v21 }
  0x80   :  { %1850 = vmatprep.subr.bf16.mxu1 %v1987_v22 }
  0x82   :  { %1829 = vmatpush3.bf16.msra.mxu0 %v1988_v23 }
  0x83   :  { %1851 = vmatpush3.bf16.msra.mxu1 %v1989_v24 }
  0x84   :  { %10 = vsyncpa [#allocation4], 0  ;;  %v1552_v31 = vcombine.low %v31_v27, %v39_v30  ;;  %v1553_v32 = vcombine.high %v31_v27, %v39_v30  ;;  %1429 = vmatprep.mubr.bf16.mxu0 %v1551_v29  ;;  %v1537_v35 = vld [vmem:[#allocation2] ss:$0 sm:$0xff]  ;;  %vm1505_vm0 = vcmask 7168   ;;  %vm22_vm1 = vcmask 0  }
  0x85   :  { %1430 = vmatmul.mubr.bf16.vlgmr.msra.gmra.mrb[12].mxu0 %v1550_v28  ;;  %s2015_s2 = smov [#allocation3]  }
  0x86   :  { %1470 = vmatprep.mubr.bf16.mxu1 %v1553_v32  ;;  %s1529_s22 = sshll.u32 %s2015_s2, 4  ;;  %s1530_s22 = int_to_ptr.vmem [resolvable:$true] %s1529_s22 }
  0x87   :  { %1471 = vmatmul.mubr.bf16.vlgmr.msra.gmra.mrb[12].mxu1 %v1552_v31  ;;  %s1990_s23 = scalar_lea.vmem %s1530_s22, 16  ;;  %s1994_s24 = scalar_lea.vmem %s1530_s22, 32 }
  0x88   :  { %p1991_p0 = scmp.ne.s32.totalorder %s1530_s22, %s1990_s23  ;;  %p1995_p1 = scmp.lt.s32.totalorder %s1530_s22, %s1530_s22 }
  0x89   :  { %p1996_p2 = scmp.lt.s32.totalorder %s1994_s24, %s1990_s23 }
  0x8b   :  { %p1997_p3 = por %p1996_p2, %p1995_p1 }
  0x8d   :  { %p1998_p4 = pnand %p1997_p3, %p1991_p0 }
  0xf8   :  { %v1698_v33 = vpop.f32.mrb[0].mxu0 }
  0xf9   :  { %v1720_v34 = vpop.f32.mrb[0].mxu1  ;;  %v1699_v36 = vpop.f32.mrb[1].mxu0 }
  0xfa   :  { %v1700_v37 = vadd.f32 %v1699_v36, %v1698_v33  ;;  %v1721_v38 = vpop.f32.mrb[1].mxu1  ;;  %v1701_v39 = vpop.f32.mrb[2].mxu0 }
  0xfb   :  { %v1722_v40 = vadd.f32 %v1721_v38, %v1720_v34  ;;  %v1723_v41 = vpop.f32.mrb[2].mxu1  ;;  %v1702_v42 = vpop.f32.mrb[3].mxu0 }
  0xfc   :  { %v1186_v43 = vadd.f32 %v1700_v37, %v1537_v35  ;;  %v1703_v44 = vadd.f32 %v1702_v42, %v1701_v39  ;;  %v1724_v45 = vpop.f32.mrb[3].mxu1  ;;  %v2014_v42 = vmov 0.0  }
  0xfd   :  { %v1725_v46 = vadd.f32 %v1724_v45, %v1723_v41  ;;  %23 = vst.msk [vmem:[#allocation3] sm:$0x1] %vm22_vm1, %v2014_v42 }
  0xfe   :  { %v1227_v47 = vadd.f32 %v1722_v40, %v1186_v43  ;;  %v1189_v48 = vadd.f32 %v1703_v44, %v1537_v35 }
 0x100   :  { %v1230_v49 = vadd.f32 %v1725_v46, %v1189_v48 }
 0x118   :  { %v1742_v50 = vpop.f32.mrb[4].mxu0 }
 0x119   :  { %v1764_v51 = vpop.f32.mrb[4].mxu1  ;;  %v1743_v52 = vpop.f32.mrb[5].mxu0 }
 0x11a   :  { %v1744_v53 = vadd.f32 %v1743_v52, %v1742_v50  ;;  %v1765_v54 = vpop.f32.mrb[5].mxu1  ;;  %v1745_v55 = vpop.f32.mrb[6].mxu0  ;;  %v1504_v50 = vld [vmem:[#allocation3] sm:$0x1] }
 0x11b   :  { %v1766_v56 = vadd.f32 %v1765_v54, %v1764_v51  ;;  %v1767_v57 = vpop.f32.mrb[6].mxu1  ;;  %v1746_v58 = vpop.f32.mrb[7].mxu0 }
 0x11c   :  { %v1268_v59 = vadd.f32 %v1744_v53, %v1227_v47  ;;  %v1747_v60 = vadd.f32 %v1746_v58, %v1745_v55  ;;  %v1768_v61 = vpop.f32.mrb[7].mxu1 }
 0x11d   :  { %v1769_v62 = vadd.f32 %v1768_v61, %v1767_v57 }
 0x11e   :  { %v1309_v63 = vadd.f32 %v1766_v56, %v1268_v59  ;;  %v1271_v0 = vadd.f32 %v1747_v60, %v1230_v49 }
 0x120   :  { %v1312_v1 = vadd.f32 %v1769_v62, %v1271_v0 }
 0x138   :  { %v1786_v2 = vpop.f32.mrb[8].mxu0 }
 0x139   :  { %v1808_v3 = vpop.f32.mrb[8].mxu1  ;;  %v1787_v4 = vpop.f32.mrb[9].mxu0 }
 0x13a   :  { %v1809_v5 = vpop.f32.mrb[9].mxu1  ;;  %v1788_v6 = vadd.f32 %v1787_v4, %v1786_v2  ;;  %v1789_v8 = vpop.f32.mrb[10].mxu0 }
 0x13b   :  { %v1810_v7 = vadd.f32 %v1809_v5, %v1808_v3  ;;  %v1811_v9 = vpop.f32.mrb[10].mxu1  ;;  %v1790_v10 = vpop.f32.mrb[11].mxu0 }
 0x13c   :  { %v1812_v11 = vpop.f32.mrb[11].mxu1  ;;  %v1350_v12 = vadd.f32 %v1788_v6, %v1309_v63  ;;  %v1791_v13 = vadd.f32 %v1790_v10, %v1789_v8 }
 0x13d   :  { %v1813_v14 = vadd.f32 %v1812_v11, %v1811_v9 }
 0x13e   :  { %v1391_v15 = vadd.f32 %v1810_v7, %v1350_v12  ;;  %v1353_v16 = vadd.f32 %v1791_v13, %v1312_v1 }
 0x140   :  { %v1394_v17 = vadd.f32 %v1813_v14, %v1353_v16 }
 0x158   :  { %v1830_v18 = vpop.f32.mrb[12].mxu0 }
 0x159   :  { %v1831_v20 = vpop.f32.mrb[13].mxu0 }
 0x15a   :  { %v1852_v19 = vpop.f32.mrb[12].mxu1  ;;  %v1832_v21 = vadd.f32 %v1831_v20, %v1830_v18  ;;  %v1833_v23 = vpop.f32.mrb[14].mxu0 }
 0x15b   :  { %v1853_v22 = vpop.f32.mrb[13].mxu1  ;;  %v1834_v26 = vpop.f32.mrb[15].mxu0 }
 0x15c   :  { %v1854_v24 = vadd.f32 %v1853_v22, %v1852_v19  ;;  %v1855_v25 = vpop.f32.mrb[14].mxu1  ;;  %v1432_v27 = vadd.f32 %v1832_v21, %v1391_v15  ;;  %v1835_v28 = vadd.f32 %v1834_v26, %v1833_v23 }
 0x15d   :  { %v1856_v29 = vpop.f32.mrb[15].mxu1 }
 0x15e   :  { %v1857_v30 = vadd.f32 %v1856_v29, %v1855_v25  ;;  %v1473_v31 = vadd.f32 %v1854_v24, %v1432_v27  ;;  %v1435_v32 = vadd.f32 %v1835_v28, %v1394_v17 }
 0x160   :  { %v1498_v33 = vmul.f32 -1.0, %v1473_v31  ;;  %v1476_v34 = vadd.f32 %v1857_v30, %v1435_v32 }
 0x162   :  { %v1501_v35 = vadd.f32 1.0, %v1476_v34  ;;  %v1500_v36 = vadd.f32 1.0, %v1498_v33 }
 0x164   :  { %v1502_v37 = vmax.f32 %v1500_v36, 0.0  ;;  %v1503_v38 = vmax.f32 %v1501_v35, 0.0 }
 0x166   :  { %v1506_v39 = vsel %vm1505_vm0, %v1502_v37, 0.0  ;;  %v1507_v40 = vsel %vm1505_vm0, %v1503_v38, 0.0 }
 0x167   :  { %v1508_v41 = vadd.f32 %v1507_v40, %v1506_v39 }
 0x169   :  { %1509 = vadd.xlane.f32.xlu0 %v1508_v41 }
 0x1f6   :  { %v1510_v43 = vpop.xlane.xlu0 %1509 }
 0x1f7   :  { %v1511_v44 = vrot.slane %v1510_v43, 4 }
 0x1f9   :  { %v1512_v45 = vadd.f32 %v1511_v44, %v1510_v43 }
 0x1fb   :  { %v1513_v46 = vrot.slane %v1512_v45, 2 }
 0x1fd   :  { %v1514_v47 = vadd.f32 %v1513_v46, %v1512_v45 }
 0x1ff   :  { %v1515_v48 = vrot.slane %v1514_v47, 1 }
 0x201   :  { %v1516_v49 = vadd.f32 %v1515_v48, %v1514_v47 }
 0x203   :  { %1858 = vpush %v1516_v49 }
 0x234   :  { %s1859_s0 = spop %1858 }
 0x235   :  { %s1518_s1 = smul.f32 0.0625, %s1859_s0 }
 0x237   :  { %v1519_v51 = vstv %s1518_s1 }
 0x238   :  { %v1520_v52 = vadd.f32 %v1519_v51, %v1504_v50 }
 0x23a   :  { %1522 = vst.msk [vmem:[#allocation3] sm:$0x1] %vm22_vm1, %v1520_v52 }
 0x23b   :  { %2001 = shalt.err (!%p1998_p4)
}
 0x23c   :  { %s2002_s27 = scalar_lea.hbm %s2488_s3, 16 }
 0x23d   :  { %p2003_p5 = scmp.ne.s32.totalorder %s2488_s3, %s2002_s27  ;;  %p2006_p6 = scmp.lt.u32.totalorder %s2002_s27, %s2488_s3 }
 0x23f   :  { %p2008_p7 = pnand %p2006_p6, %p2003_p5 }
 0x241   :  { %2011 = shalt.err (!%p2008_p7)
}
 0x242   :  { %1532 = dma.vmem_to_hbm [thread:$0]  %s1530_s22, 16, %s2488_s3, [#allocation4]  }
 0x243   :  { %2012 = dma.done.wait [#allocation4], 16  }
 0x244   :  { %2013 = vsyncadd [#allocation4], 4294967280 }
 0x245   :  { %1536 = vsyncpa [#allocation4], 1 }

</bundles_post_ra>
